<compile_context>
chip_gen: v7x
topology: tpu7x:2x2x1
jax: 0.10.0
libtpu: 0.0.40
codegen_flags: <defaults>
</compile_context>

<pallas_src>
import jax
import jax.numpy as jnp
from jax.experimental import pallas as pl
from jax.experimental.pallas import tpu as pltpu

# ---------------- synthetic config (module __init__ shapes) ----------------
B = 2           # batch
T = 8           # sequence length
L = 3           # elmo_layers      (elmo_shape[0])
E = 32          # elmo_dims        (elmo_shape[1])
D = 16          # config.word_dims
H = 32          # config.lstm_hiddens
REL_SIZE = 10   # vocab.rel_size
TAG_SIZE = 5    # vocab.tag_size
PAD = 0


# ---------------------------------------------------------------------------
# Fused forward kernel
# ---------------------------------------------------------------------------
def _fused_forward_kernel(
    elmo_w_ref,     # SMEM (L,)        elmo layer-mix weights
    elmos_ref,      # (T*B, L*E)       time-major elmo features
    xrel_ref,       # (T*B, D)         rel-embedding lookup (time-major)
    mask_ref,       # (T*B, 1)         float mask (time-major)
    wmlp_t_ref,     # (E, D)           mlp_elmo weight, transposed
    wx_gru_ref,     # (2D, 6H)         [DT r|z|n  ,  TD r|z|n]
    wh_dt_ref,      # (H, 3H)
    b_dt_ref,       # (1, 3H)
    wh_td_ref,      # (H, 3H)
    b_td_ref,       # (1, 3H)
    wx_lstm_ref,    # (2H, 8H)         rows [dt-half, td-half]; cols [fwd i|f|g|o, bwd i|f|g|o]
    wh_lf_ref,      # (H, 4H)
    b_lf_ref,       # (1, 4H)
    wh_lb_ref,      # (H, 4H)
    b_lb_ref,       # (1, 4H)
    wproj_t_ref,    # (2H, TAG)
    out_ref,        # (B, TAG)
):
    f32 = jnp.float32

    # ---- 1) ELMo layer mix + mlp_elmo as a single (T*B, L*E) x (L*E, D) matmul ----
    w_mlp_t = wmlp_t_ref[...]                                           # (E, D)
    w_big = jnp.concatenate(
        [elmo_w_ref[l] * w_mlp_t for l in range(L)], axis=0)            # (L*E, D)
    x_embed = jnp.dot(elmos_ref[...], w_big,
                      preferred_element_type=f32)                       # (T*B, D)
    x_rel = xrel_ref[...]                                               # (T*B, D)

    # ---- 2) GRU input projections, all timesteps, both directions, hoisted -----
    # x_lexical = [x_embed | x_rel]; split the contraction to avoid a lane concat.
    xg_gru = (jnp.dot(x_embed, wx_gru_ref[:D, :], preferred_element_type=f32)
              + jnp.dot(x_rel, wx_gru_ref[D:, :], preferred_element_type=f32))  # (T*B, 6H)

    wh_dt = wh_dt_ref[...]
    b_dt = b_dt_ref[...]
    wh_td = wh_td_ref[...]
    b_td = b_td_ref[...]

    def gru_cell(xg, h, wh, b):
        hg = jnp.dot(h, wh, preferred_element_type=f32) + b             # (B, 3H)
        r = jax.nn.sigmoid(xg[:, :H] + hg[:, :H])
        z = jax.nn.sigmoid(xg[:, H:2 * H] + hg[:, H:2 * H])
        n = jnp.tanh(xg[:, 2 * H:] + r * hg[:, 2 * H:])
        return (1.0 - z) * n + z * h

    # ---- 3) DT (forward) and TD (backward) scans, interleaved, fully unrolled ----
    h_dt = jnp.zeros((B, H), f32)
    h_td = jnp.zeros((B, H), f32)
    dt_rows = [None] * T
    td_rows = [None] * T
    for s in range(T):
        t_f = s
        t_b = T - 1 - s
        xg_f = xg_gru[t_f * B:(t_f + 1) * B, :3 * H]
        xg_b = xg_gru[t_b * B:(t_b + 1) * B, 3 * H:]
        h_dt = gru_cell(xg_f, h_dt, wh_dt, b_dt)
        h_td = gru_cell(xg_b, h_td, wh_td, b_td)
        dt_rows[t_f] = h_dt
        td_rows[t_b] = h_td
    dt_all = jnp.concatenate(dt_rows, axis=0)                           # (T*B, H)
    td_all = jnp.concatenate(td_rows, axis=0)                           # (T*B, H)

    # ---- 4) LSTM input projections, all timesteps, both directions (8H = 256 lanes) ----
    xg_lstm = (jnp.dot(dt_all, wx_lstm_ref[:H, :], preferred_element_type=f32)
               + jnp.dot(td_all, wx_lstm_ref[H:, :], preferred_element_type=f32))  # (T*B, 8H)

    wh_lf = wh_lf_ref[...]
    b_lf = b_lf_ref[...]
    wh_lb = wh_lb_ref[...]
    b_lb = b_lb_ref[...]
    mask = mask_ref[...]                                                # (T*B, 1)

    def lstm_cell(xg, h, c, wh, b):
        pre = xg + jnp.dot(h, wh, preferred_element_type=f32) + b       # (B, 4H)
        i = jax.nn.sigmoid(pre[:, :H])
        f = jax.nn.sigmoid(pre[:, H:2 * H])
        g = jnp.tanh(pre[:, 2 * H:3 * H])
        o = jax.nn.sigmoid(pre[:, 3 * H:])
        c_new = f * c + i * g
        h_new = o * jnp.tanh(c_new)
        return h_new, c_new

    # ---- 5) masked BiLSTM (fwd/bwd interleaved) + fused masked max-pool ----------
    zeros = jnp.zeros((B, H), f32)
    h_f, c_f = zeros, zeros
    h_b, c_b = zeros, zeros
    mx_f = jnp.full((B, H), -jnp.inf, f32)
    mx_b = jnp.full((B, H), -jnp.inf, f32)
    for s in range(T):
        t_f = s
        t_b = T - 1 - s
        m_f = mask[t_f * B:(t_f + 1) * B]                               # (B, 1)
        m_b = mask[t_b * B:(t_b + 1) * B]
        h_f, c_f = lstm_cell(xg_lstm[t_f * B:(t_f + 1) * B, :4 * H], h_f, c_f, wh_lf, b_lf)
        h_b, c_b = lstm_cell(xg_lstm[t_b * B:(t_b + 1) * B, 4 * H:], h_b, c_b, wh_lb, b_lb)
        # TODO(synk): MyLSTM masking approximated by zeroing h/c at padded steps.
        h_f = h_f * m_f
        c_f = c_f * m_f
        h_b = h_b * m_b
        c_b = c_b * m_b
        # running masked max-pool over time (additive -1e6 at padded positions)
        mx_f = jnp.maximum(mx_f, h_f + (m_f - 1.0) * 1e6)
        mx_b = jnp.maximum(mx_b, h_b + (m_b - 1.0) * 1e6)

    # ---- 6) final projection (split over fwd/bwd halves of the 2H feature) -------
    out_ref[...] = (jnp.dot(mx_f, wproj_t_ref[:H, :], preferred_element_type=f32)
                    + jnp.dot(mx_b, wproj_t_ref[H:, :], preferred_element_type=f32))


# ---------------------------------------------------------------------------
# Parameter fusion helpers (gate-stacked -> lane-dense fused weights)
# ---------------------------------------------------------------------------
def _fuse_gru(p):
    wx, wh, b = p                                     # (3, I, H), (3, H, H), (3, 1, H)
    wx_f = jnp.transpose(wx, (1, 0, 2)).reshape(wx.shape[1], 3 * H)   # cols [r|z|n]
    wh_f = jnp.transpose(wh, (1, 0, 2)).reshape(H, 3 * H)
    b_f = jnp.transpose(b, (1, 0, 2)).reshape(1, 3 * H)
    return wx_f, wh_f, b_f


def _fuse_lstm(p):
    wx, wh, b = p                                     # (4, 2H, H), (4, H, H), (4, 1, H)
    wx_f = jnp.transpose(wx, (1, 0, 2)).reshape(wx.shape[1], 4 * H)   # cols [i|f|g|o]
    wh_f = jnp.transpose(wh, (1, 0, 2)).reshape(H, 4 * H)
    b_f = jnp.transpose(b, (1, 0, 2)).reshape(1, 4 * H)
    return wx_f, wh_f, b_f


# ---------------------------------------------------------------------------
# Full forward (eval mode)
# ---------------------------------------------------------------------------
def bilstm_model_forward(params, elmos, rels, heads, masks, lengths):
    del heads, lengths  # TODO(synk): tree structure unused (tree GRU approximated)

    # glue: embedding lookup + tiny layout prep (time-major rows t*B + b)
    x_rel = params["rel_table"][rels]                                   # (B, T, D)
    x_rel_tm = jnp.transpose(x_rel, (1, 0, 2)).reshape(T * B, D)
    elmos_tm = jnp.transpose(elmos, (2, 0, 1, 3)).reshape(T * B, L * E)
    mask_tm = jnp.transpose(masks, (1, 0)).reshape(T * B, 1)

    wx_dt, wh_dt, b_dt = _fuse_gru(params["dt_gru"])
    wx_td, wh_td, b_td = _fuse_gru(params["td_gru"])
    wx_gru_both = jnp.concatenate([wx_dt, wx_td], axis=1)               # (2D, 6H)

    wx_lf, wh_lf, b_lf = _fuse_lstm(params["lstm_f"])
    wx_lb, wh_lb, b_lb = _fuse_lstm(params["lstm_b"])
    wx_lstm_both = jnp.concatenate([wx_lf, wx_lb], axis=1)              # (2H, 8H)

    vmem = pl.BlockSpec(memory_space=pltpu.MemorySpace.VMEM)
    smem = pl.BlockSpec(memory_space=pltpu.MemorySpace.SMEM)

    return pl.pallas_call(
        _fused_forward_kernel,
        out_shape=jax.ShapeDtypeStruct((B, TAG_SIZE), jnp.float32),
        in_specs=[smem] + [vmem] * 15,
        out_specs=vmem,
    )(
        params["elmo_w"], elmos_tm, x_rel_tm, mask_tm,
        params["w_mlp"].T, wx_gru_both, wh_dt, b_dt, wh_td, b_td,
        wx_lstm_both, wh_lf, b_lf, wh_lb, b_lb,
        params["w_proj"].T,
    )


# ---------------------------------------------------------------------------
# Pure-JAX reference (same approximation semantics) for a correctness check
# ---------------------------------------------------------------------------
def reference_forward(params, elmos, rels, masks):
    mixed = jnp.einsum("l,blte->bte", params["elmo_w"], elmos)          # (B,T,E)
    x_embed = mixed @ params["w_mlp"].T                                 # (B,T,D)
    x_rel = params["rel_table"][rels]                                   # (B,T,D)
    x_tm = jnp.transpose(jnp.concatenate([x_embed, x_rel], axis=2), (1, 0, 2))  # (T,B,2D)

    def gru_step(x_t, h, p):
        wx, wh, b = p
        r = jax.nn.sigmoid(x_t @ wx[0] + h @ wh[0] + b[0])
        z = jax.nn.sigmoid(x_t @ wx[1] + h @ wh[1] + b[1])
        n = jnp.tanh(x_t @ wx[2] + r * (h @ wh[2] + b[2]))
        return (1.0 - z) * n + z * h

    h = jnp.zeros((B, H), jnp.float32)
    dt = [None] * T
    for t in range(T):
        h = gru_step(x_tm[t], h, params["dt_gru"])
        dt[t] = h
    h = jnp.zeros((B, H), jnp.float32)
    td = [None] * T
    for s in range(T):
        t = T - 1 - s
        h = gru_step(x_tm[t], h, params["td_gru"])
        td[t] = h
    tree = [jnp.concatenate([dt[t], td[t]], axis=1) for t in range(T)]  # (B,2H) each

    def lstm_step(x_t, h, c, p):
        wx, wh, b = p
        i = jax.nn.sigmoid(x_t @ wx[0] + h @ wh[0] + b[0])
        f = jax.nn.sigmoid(x_t @ wx[1] + h @ wh[1] + b[1])
        g = jnp.tanh(x_t @ wx[2] + h @ wh[2] + b[2])
        o = jax.nn.sigmoid(x_t @ wx[3] + h @ wh[3] + b[3])
        c_new = f * c + i * g
        return o * jnp.tanh(c_new), c_new

    mask_tb = masks.T
    hf = [None] * T
    hb = [None] * T
    h = c = jnp.zeros((B, H), jnp.float32)
    for t in range(T):
        h, c = lstm_step(tree[t], h, c, params["lstm_f"])
        m = mask_tb[t][:, None]
        h, c = h * m, c * m
        hf[t] = h
    h = c = jnp.zeros((B, H), jnp.float32)
    for s in range(T):
        t = T - 1 - s
        h, c = lstm_step(tree[t], h, c, params["lstm_b"])
        m = mask_tb[t][:, None]
        h, c = h * m, c * m
        hb[t] = h
    hidd = jnp.stack([jnp.concatenate([hf[t], hb[t]], axis=1) for t in range(T)], axis=0)
    hidd = jnp.transpose(hidd, (1, 0, 2))                               # (B,T,2H)
    pooled = jnp.max(hidd + (masks[:, :, None] - 1.0) * 1e6, axis=1)    # (B,2H)
    return pooled @ params["w_proj"].T


# ---------------------------------------------------------------------------
if __name__ == "__main__":
    key = jax.random.PRNGKey(0)
    ks = jax.random.split(key, 16)

    # ---- deterministic inputs ----
    elmos = jax.random.normal(ks[0], (B, L, T, E), jnp.float32)
    rels = jax.random.randint(ks[1], (B, T), 0, REL_SIZE, dtype=jnp.int32)
    heads = jnp.zeros((B, T), jnp.int32)   # TODO(synk): heads/creatTree unused
    lengths = jnp.array([T, T - 2], jnp.int32)
    masks = (jnp.arange(T)[None, :] < lengths[:, None]).astype(jnp.float32)   # (B, T)

    # ---- deterministic parameters (same structure as the PyTorch module) ----
    def gru_params(k):
        k1, k2, k3 = jax.random.split(k, 3)
        return (jax.random.normal(k1, (3, 2 * D, H), jnp.float32) * 0.1,
                jax.random.normal(k2, (3, H, H), jnp.float32) * 0.1,
                jax.random.normal(k3, (3, 1, H), jnp.float32) * 0.1)

    def lstm_params(k):
        k1, k2, k3 = jax.random.split(k, 3)
        return (jax.random.normal(k1, (4, 2 * H, H), jnp.float32) * 0.1,
                jax.random.normal(k2, (4, H, H), jnp.float32) * 0.1,
                jax.random.normal(k3, (4, 1, H), jnp.float32) * 0.1)

    params = {
        "elmo_w": jax.random.normal(ks[2], (L,), jnp.float32),                 # self.weights
        "w_mlp": jax.random.normal(ks[3], (D, E), jnp.float32) * 0.1,          # Linear(E->D), (out,in)
        "rel_table": jax.random.normal(ks[4], (REL_SIZE, D), jnp.float32),     # rel_embed weight
        "dt_gru": gru_params(ks[5]),
        "td_gru": gru_params(ks[6]),
        "lstm_f": lstm_params(ks[7]),
        "lstm_b": lstm_params(ks[8]),
        "w_proj": jax.random.normal(ks[9], (TAG_SIZE, 2 * H), jnp.float32) * 0.1,  # proj (out,in)
    }

    forward = jax.jit(bilstm_model_forward)
    out = jax.block_until_ready(forward(params, elmos, rels, heads, masks, lengths))

    assert out.shape == (B, TAG_SIZE)
    assert bool(jnp.all(jnp.isfinite(out)))

    ref = reference_forward(params, elmos, rels, masks)
    assert jnp.allclose(out, ref, rtol=2e-3, atol=2e-3), (out, ref)

    print("KERNEL_OK")
</pallas_src>

<mosaic_0001>
module attributes {stable_mosaic.version = 11 : i64} {
  func.func @_fused_forward_kernel(%arg0: memref<3xf32, #tpu.memory_space<smem>>, %arg1: memref<16x96xf32, #tpu.memory_space<vmem>>, %arg2: memref<16x16xf32, #tpu.memory_space<vmem>>, %arg3: memref<16x1xf32, #tpu.memory_space<vmem>>, %arg4: memref<32x16xf32, #tpu.memory_space<vmem>>, %arg5: memref<32x192xf32, #tpu.memory_space<vmem>>, %arg6: memref<32x96xf32, #tpu.memory_space<vmem>>, %arg7: memref<1x96xf32, #tpu.memory_space<vmem>>, %arg8: memref<32x96xf32, #tpu.memory_space<vmem>>, %arg9: memref<1x96xf32, #tpu.memory_space<vmem>>, %arg10: memref<64x256xf32, #tpu.memory_space<vmem>>, %arg11: memref<32x128xf32, #tpu.memory_space<vmem>>, %arg12: memref<1x128xf32, #tpu.memory_space<vmem>>, %arg13: memref<32x128xf32, #tpu.memory_space<vmem>>, %arg14: memref<1x128xf32, #tpu.memory_space<vmem>>, %arg15: memref<64x5xf32, #tpu.memory_space<vmem>>, %arg16: memref<2x5xf32, #tpu.memory_space<vmem>>) attributes {dimension_semantics = [], scalar_prefetch = 0 : i64, scratch_operands = 0 : i64, tpu.core_type = #tpu.core_type<tc>} {
    %c0 = arith.constant 0 : index
    %c0_0 = arith.constant 0 : index
    %0 = vector.load %arg4[%c0, %c0_0] : memref<32x16xf32, #tpu.memory_space<vmem>>, vector<32x16xf32>
    %c0_1 = arith.constant 0 : index
    %1 = memref.load %arg0[%c0_1] : memref<3xf32, #tpu.memory_space<smem>>
    %2 = vector.broadcast %1 : f32 to vector<32x16xf32>
    %3 = arith.mulf %2, %0 : vector<32x16xf32>
    %c1 = arith.constant 1 : index
    %4 = memref.load %arg0[%c1] : memref<3xf32, #tpu.memory_space<smem>>
    %5 = vector.broadcast %4 : f32 to vector<32x16xf32>
    %6 = arith.mulf %5, %0 : vector<32x16xf32>
    %c2 = arith.constant 2 : index
    %7 = memref.load %arg0[%c2] : memref<3xf32, #tpu.memory_space<smem>>
    %8 = vector.broadcast %7 : f32 to vector<32x16xf32>
    %9 = arith.mulf %8, %0 : vector<32x16xf32>
    %10 = tpu.concatenate %3, %6, %9 in 0 : vector<32x16xf32>, vector<32x16xf32>, vector<32x16xf32> -> vector<96x16xf32>
    %c0_2 = arith.constant 0 : index
    %c0_3 = arith.constant 0 : index
    %11 = vector.load %arg1[%c0_2, %c0_3] : memref<16x96xf32, #tpu.memory_space<vmem>>, vector<16x96xf32>
    %cst = arith.constant dense<0.000000e+00> : vector<16x16xf32>
    %12 = tpu.matmul %11, %10, %cst {dimension_numbers = #tpu.dot_dimension_numbers<[1], [0], [0], [1], [0, 0, 1, 1], [], []>} : vector<16x96xf32>, vector<96x16xf32>, vector<16x16xf32> -> vector<16x16xf32>
    %c0_4 = arith.constant 0 : index
    %c0_5 = arith.constant 0 : index
    %13 = vector.load %arg2[%c0_4, %c0_5] : memref<16x16xf32, #tpu.memory_space<vmem>>, vector<16x16xf32>
    %c0_6 = arith.constant 0 : index
    %c0_7 = arith.constant 0 : index
    %14 = vector.load %arg5[%c0_6, %c0_7] : memref<32x192xf32, #tpu.memory_space<vmem>>, vector<16x192xf32>
    %cst_8 = arith.constant dense<0.000000e+00> : vector<16x192xf32>
    %15 = tpu.matmul %12, %14, %cst_8 {dimension_numbers = #tpu.dot_dimension_numbers<[1], [0], [0], [1], [0, 0, 1, 1], [], []>} : vector<16x16xf32>, vector<16x192xf32>, vector<16x192xf32> -> vector<16x192xf32>
    %c16 = arith.constant 16 : index
    %c0_9 = arith.constant 0 : index
    %16 = vector.load %arg5[%c16, %c0_9] : memref<32x192xf32, #tpu.memory_space<vmem>>, vector<16x192xf32>
    %cst_10 = arith.constant dense<0.000000e+00> : vector<16x192xf32>
    %17 = tpu.matmul %13, %16, %cst_10 {dimension_numbers = #tpu.dot_dimension_numbers<[1], [0], [0], [1], [0, 0, 1, 1], [], []>} : vector<16x16xf32>, vector<16x192xf32>, vector<16x192xf32> -> vector<16x192xf32>
    %18 = arith.addf %15, %17 : vector<16x192xf32>
    %c0_11 = arith.constant 0 : index
    %c0_12 = arith.constant 0 : index
    %19 = vector.load %arg6[%c0_11, %c0_12] : memref<32x96xf32, #tpu.memory_space<vmem>>, vector<32x96xf32>
    %c0_13 = arith.constant 0 : index
    %c0_14 = arith.constant 0 : index
    %20 = vector.load %arg7[%c0_13, %c0_14] : memref<1x96xf32, #tpu.memory_space<vmem>>, vector<1x96xf32>
    %c0_15 = arith.constant 0 : index
    %c0_16 = arith.constant 0 : index
    %21 = vector.load %arg8[%c0_15, %c0_16] : memref<32x96xf32, #tpu.memory_space<vmem>>, vector<32x96xf32>
    %c0_17 = arith.constant 0 : index
    %c0_18 = arith.constant 0 : index
    %22 = vector.load %arg9[%c0_17, %c0_18] : memref<1x96xf32, #tpu.memory_space<vmem>>, vector<1x96xf32>
    %cst_19 = arith.constant 0.000000e+00 : f32
    %23 = vector.broadcast %cst_19 : f32 to vector<2x32xf32>
    %cst_20 = arith.constant 0.000000e+00 : f32
    %24 = vector.broadcast %cst_20 : f32 to vector<2x32xf32>
    %25 = vector.extract_strided_slice %18 {offsets = [0, 0], sizes = [2, 96], strides = [1, 1]} : vector<16x192xf32> to vector<2x96xf32>
    %26 = vector.extract_strided_slice %18 {offsets = [14, 96], sizes = [2, 96], strides = [1, 1]} : vector<16x192xf32> to vector<2x96xf32>
    %cst_21 = arith.constant dense<0.000000e+00> : vector<2x96xf32>
    %27 = tpu.matmul %23, %19, %cst_21 {dimension_numbers = #tpu.dot_dimension_numbers<[1], [0], [0], [1], [0, 0, 1, 1], [], []>} : vector<2x32xf32>, vector<32x96xf32>, vector<2x96xf32> -> vector<2x96xf32>
    %28 = vector.broadcast %20 : vector<1x96xf32> to vector<2x96xf32>
    %29 = arith.addf %27, %28 : vector<2x96xf32>
    %30 = vector.extract_strided_slice %25 {offsets = [0, 0], sizes = [2, 32], strides = [1, 1]} : vector<2x96xf32> to vector<2x32xf32>
    %31 = vector.extract_strided_slice %29 {offsets = [0, 0], sizes = [2, 32], strides = [1, 1]} : vector<2x96xf32> to vector<2x32xf32>
    %32 = arith.addf %30, %31 : vector<2x32xf32>
    %33 = arith.negf %32 : vector<2x32xf32>
    %34 = math.exp %33 : vector<2x32xf32>
    %cst_22 = arith.constant 1.000000e+00 : f32
    %35 = vector.broadcast %cst_22 : f32 to vector<2x32xf32>
    %36 = arith.addf %35, %34 : vector<2x32xf32>
    %37 = arith.divf %35, %36 : vector<2x32xf32>
    %38 = vector.extract_strided_slice %25 {offsets = [0, 32], sizes = [2, 32], strides = [1, 1]} : vector<2x96xf32> to vector<2x32xf32>
    %39 = vector.extract_strided_slice %29 {offsets = [0, 32], sizes = [2, 32], strides = [1, 1]} : vector<2x96xf32> to vector<2x32xf32>
    %40 = arith.addf %38, %39 : vector<2x32xf32>
    %41 = arith.negf %40 : vector<2x32xf32>
    %42 = math.exp %41 : vector<2x32xf32>
    %cst_23 = arith.constant 1.000000e+00 : f32
    %43 = vector.broadcast %cst_23 : f32 to vector<2x32xf32>
    %44 = arith.addf %43, %42 : vector<2x32xf32>
    %45 = arith.divf %43, %44 : vector<2x32xf32>
    %46 = vector.extract_strided_slice %25 {offsets = [0, 64], sizes = [2, 32], strides = [1, 1]} : vector<2x96xf32> to vector<2x32xf32>
    %47 = vector.extract_strided_slice %29 {offsets = [0, 64], sizes = [2, 32], strides = [1, 1]} : vector<2x96xf32> to vector<2x32xf32>
    %48 = arith.mulf %37, %47 : vector<2x32xf32>
    %49 = arith.addf %46, %48 : vector<2x32xf32>
    %50 = math.tanh %49 : vector<2x32xf32>
    %cst_24 = arith.constant 1.000000e+00 : f32
    %51 = vector.broadcast %cst_24 : f32 to vector<2x32xf32>
    %52 = arith.subf %51, %45 : vector<2x32xf32>
    %53 = arith.mulf %52, %50 : vector<2x32xf32>
    %54 = arith.mulf %45, %23 : vector<2x32xf32>
    %55 = arith.addf %53, %54 : vector<2x32xf32>
    %cst_25 = arith.constant dense<0.000000e+00> : vector<2x96xf32>
    %56 = tpu.matmul %24, %21, %cst_25 {dimension_numbers = #tpu.dot_dimension_numbers<[1], [0], [0], [1], [0, 0, 1, 1], [], []>} : vector<2x32xf32>, vector<32x96xf32>, vector<2x96xf32> -> vector<2x96xf32>
    %57 = vector.broadcast %22 : vector<1x96xf32> to vector<2x96xf32>
    %58 = arith.addf %56, %57 : vector<2x96xf32>
    %59 = vector.extract_strided_slice %26 {offsets = [0, 0], sizes = [2, 32], strides = [1, 1]} : vector<2x96xf32> to vector<2x32xf32>
    %60 = vector.extract_strided_slice %58 {offsets = [0, 0], sizes = [2, 32], strides = [1, 1]} : vector<2x96xf32> to vector<2x32xf32>
    %61 = arith.addf %59, %60 : vector<2x32xf32>
    %62 = arith.negf %61 : vector<2x32xf32>
    %63 = math.exp %62 : vector<2x32xf32>
    %cst_26 = arith.constant 1.000000e+00 : f32
    %64 = vector.broadcast %cst_26 : f32 to vector<2x32xf32>
    %65 = arith.addf %64, %63 : vector<2x32xf32>
    %66 = arith.divf %64, %65 : vector<2x32xf32>
    %67 = vector.extract_strided_slice %26 {offsets = [0, 32], sizes = [2, 32], strides = [1, 1]} : vector<2x96xf32> to vector<2x32xf32>
    %68 = vector.extract_strided_slice %58 {offsets = [0, 32], sizes = [2, 32], strides = [1, 1]} : vector<2x96xf32> to vector<2x32xf32>
    %69 = arith.addf %67, %68 : vector<2x32xf32>
    %70 = arith.negf %69 : vector<2x32xf32>
    %71 = math.exp %70 : vector<2x32xf32>
    %cst_27 = arith.constant 1.000000e+00 : f32
    %72 = vector.broadcast %cst_27 : f32 to vector<2x32xf32>
    %73 = arith.addf %72, %71 : vector<2x32xf32>
    %74 = arith.divf %72, %73 : vector<2x32xf32>
    %75 = vector.extract_strided_slice %26 {offsets = [0, 64], sizes = [2, 32], strides = [1, 1]} : vector<2x96xf32> to vector<2x32xf32>
    %76 = vector.extract_strided_slice %58 {offsets = [0, 64], sizes = [2, 32], strides = [1, 1]} : vector<2x96xf32> to vector<2x32xf32>
    %77 = arith.mulf %66, %76 : vector<2x32xf32>
    %78 = arith.addf %75, %77 : vector<2x32xf32>
    %79 = math.tanh %78 : vector<2x32xf32>
    %cst_28 = arith.constant 1.000000e+00 : f32
    %80 = vector.broadcast %cst_28 : f32 to vector<2x32xf32>
    %81 = arith.subf %80, %74 : vector<2x32xf32>
    %82 = arith.mulf %81, %79 : vector<2x32xf32>
    %83 = arith.mulf %74, %24 : vector<2x32xf32>
    %84 = arith.addf %82, %83 : vector<2x32xf32>
    %85 = vector.extract_strided_slice %18 {offsets = [2, 0], sizes = [2, 96], strides = [1, 1]} : vector<16x192xf32> to vector<2x96xf32>
    %86 = vector.extract_strided_slice %18 {offsets = [12, 96], sizes = [2, 96], strides = [1, 1]} : vector<16x192xf32> to vector<2x96xf32>
    %cst_29 = arith.constant dense<0.000000e+00> : vector<2x96xf32>
    %87 = tpu.matmul %55, %19, %cst_29 {dimension_numbers = #tpu.dot_dimension_numbers<[1], [0], [0], [1], [0, 0, 1, 1], [], []>} : vector<2x32xf32>, vector<32x96xf32>, vector<2x96xf32> -> vector<2x96xf32>
    %88 = vector.broadcast %20 : vector<1x96xf32> to vector<2x96xf32>
    %89 = arith.addf %87, %88 : vector<2x96xf32>
    %90 = vector.extract_strided_slice %85 {offsets = [0, 0], sizes = [2, 32], strides = [1, 1]} : vector<2x96xf32> to vector<2x32xf32>
    %91 = vector.extract_strided_slice %89 {offsets = [0, 0], sizes = [2, 32], strides = [1, 1]} : vector<2x96xf32> to vector<2x32xf32>
    %92 = arith.addf %90, %91 : vector<2x32xf32>
    %93 = arith.negf %92 : vector<2x32xf32>
    %94 = math.exp %93 : vector<2x32xf32>
    %cst_30 = arith.constant 1.000000e+00 : f32
    %95 = vector.broadcast %cst_30 : f32 to vector<2x32xf32>
    %96 = arith.addf %95, %94 : vector<2x32xf32>
    %97 = arith.divf %95, %96 : vector<2x32xf32>
    %98 = vector.extract_strided_slice %85 {offsets = [0, 32], sizes = [2, 32], strides = [1, 1]} : vector<2x96xf32> to vector<2x32xf32>
    %99 = vector.extract_strided_slice %89 {offsets = [0, 32], sizes = [2, 32], strides = [1, 1]} : vector<2x96xf32> to vector<2x32xf32>
    %100 = arith.addf %98, %99 : vector<2x32xf32>
    %101 = arith.negf %100 : vector<2x32xf32>
    %102 = math.exp %101 : vector<2x32xf32>
    %cst_31 = arith.constant 1.000000e+00 : f32
    %103 = vector.broadcast %cst_31 : f32 to vector<2x32xf32>
    %104 = arith.addf %103, %102 : vector<2x32xf32>
    %105 = arith.divf %103, %104 : vector<2x32xf32>
    %106 = vector.extract_strided_slice %85 {offsets = [0, 64], sizes = [2, 32], strides = [1, 1]} : vector<2x96xf32> to vector<2x32xf32>
    %107 = vector.extract_strided_slice %89 {offsets = [0, 64], sizes = [2, 32], strides = [1, 1]} : vector<2x96xf32> to vector<2x32xf32>
    %108 = arith.mulf %97, %107 : vector<2x32xf32>
    %109 = arith.addf %106, %108 : vector<2x32xf32>
    %110 = math.tanh %109 : vector<2x32xf32>
    %cst_32 = arith.constant 1.000000e+00 : f32
    %111 = vector.broadcast %cst_32 : f32 to vector<2x32xf32>
    %112 = arith.subf %111, %105 : vector<2x32xf32>
    %113 = arith.mulf %112, %110 : vector<2x32xf32>
    %114 = arith.mulf %105, %55 : vector<2x32xf32>
    %115 = arith.addf %113, %114 : vector<2x32xf32>
    %cst_33 = arith.constant dense<0.000000e+00> : vector<2x96xf32>
    %116 = tpu.matmul %84, %21, %cst_33 {dimension_numbers = #tpu.dot_dimension_numbers<[1], [0], [0], [1], [0, 0, 1, 1], [], []>} : vector<2x32xf32>, vector<32x96xf32>, vector<2x96xf32> -> vector<2x96xf32>
    %117 = vector.broadcast %22 : vector<1x96xf32> to vector<2x96xf32>
    %118 = arith.addf %116, %117 : vector<2x96xf32>
    %119 = vector.extract_strided_slice %86 {offsets = [0, 0], sizes = [2, 32], strides = [1, 1]} : vector<2x96xf32> to vector<2x32xf32>
    %120 = vector.extract_strided_slice %118 {offsets = [0, 0], sizes = [2, 32], strides = [1, 1]} : vector<2x96xf32> to vector<2x32xf32>
    %121 = arith.addf %119, %120 : vector<2x32xf32>
    %122 = arith.negf %121 : vector<2x32xf32>
    %123 = math.exp %122 : vector<2x32xf32>
    %cst_34 = arith.constant 1.000000e+00 : f32
    %124 = vector.broadcast %cst_34 : f32 to vector<2x32xf32>
    %125 = arith.addf %124, %123 : vector<2x32xf32>
    %126 = arith.divf %124, %125 : vector<2x32xf32>
    %127 = vector.extract_strided_slice %86 {offsets = [0, 32], sizes = [2, 32], strides = [1, 1]} : vector<2x96xf32> to vector<2x32xf32>
    %128 = vector.extract_strided_slice %118 {offsets = [0, 32], sizes = [2, 32], strides = [1, 1]} : vector<2x96xf32> to vector<2x32xf32>
    %129 = arith.addf %127, %128 : vector<2x32xf32>
    %130 = arith.negf %129 : vector<2x32xf32>
    %131 = math.exp %130 : vector<2x32xf32>
    %cst_35 = arith.constant 1.000000e+00 : f32
    %132 = vector.broadcast %cst_35 : f32 to vector<2x32xf32>
    %133 = arith.addf %132, %131 : vector<2x32xf32>
    %134 = arith.divf %132, %133 : vector<2x32xf32>
    %135 = vector.extract_strided_slice %86 {offsets = [0, 64], sizes = [2, 32], strides = [1, 1]} : vector<2x96xf32> to vector<2x32xf32>
    %136 = vector.extract_strided_slice %118 {offsets = [0, 64], sizes = [2, 32], strides = [1, 1]} : vector<2x96xf32> to vector<2x32xf32>
    %137 = arith.mulf %126, %136 : vector<2x32xf32>
    %138 = arith.addf %135, %137 : vector<2x32xf32>
    %139 = math.tanh %138 : vector<2x32xf32>
    %cst_36 = arith.constant 1.000000e+00 : f32
    %140 = vector.broadcast %cst_36 : f32 to vector<2x32xf32>
    %141 = arith.subf %140, %134 : vector<2x32xf32>
    %142 = arith.mulf %141, %139 : vector<2x32xf32>
    %143 = arith.mulf %134, %84 : vector<2x32xf32>
    %144 = arith.addf %142, %143 : vector<2x32xf32>
    %145 = vector.extract_strided_slice %18 {offsets = [4, 0], sizes = [2, 96], strides = [1, 1]} : vector<16x192xf32> to vector<2x96xf32>
    %146 = vector.extract_strided_slice %18 {offsets = [10, 96], sizes = [2, 96], strides = [1, 1]} : vector<16x192xf32> to vector<2x96xf32>
    %cst_37 = arith.constant dense<0.000000e+00> : vector<2x96xf32>
    %147 = tpu.matmul %115, %19, %cst_37 {dimension_numbers = #tpu.dot_dimension_numbers<[1], [0], [0], [1], [0, 0, 1, 1], [], []>} : vector<2x32xf32>, vector<32x96xf32>, vector<2x96xf32> -> vector<2x96xf32>
    %148 = vector.broadcast %20 : vector<1x96xf32> to vector<2x96xf32>
    %149 = arith.addf %147, %148 : vector<2x96xf32>
    %150 = vector.extract_strided_slice %145 {offsets = [0, 0], sizes = [2, 32], strides = [1, 1]} : vector<2x96xf32> to vector<2x32xf32>
    %151 = vector.extract_strided_slice %149 {offsets = [0, 0], sizes = [2, 32], strides = [1, 1]} : vector<2x96xf32> to vector<2x32xf32>
    %152 = arith.addf %150, %151 : vector<2x32xf32>
    %153 = arith.negf %152 : vector<2x32xf32>
    %154 = math.exp %153 : vector<2x32xf32>
    %cst_38 = arith.constant 1.000000e+00 : f32
    %155 = vector.broadcast %cst_38 : f32 to vector<2x32xf32>
    %156 = arith.addf %155, %154 : vector<2x32xf32>
    %157 = arith.divf %155, %156 : vector<2x32xf32>
    %158 = vector.extract_strided_slice %145 {offsets = [0, 32], sizes = [2, 32], strides = [1, 1]} : vector<2x96xf32> to vector<2x32xf32>
    %159 = vector.extract_strided_slice %149 {offsets = [0, 32], sizes = [2, 32], strides = [1, 1]} : vector<2x96xf32> to vector<2x32xf32>
    %160 = arith.addf %158, %159 : vector<2x32xf32>
    %161 = arith.negf %160 : vector<2x32xf32>
    %162 = math.exp %161 : vector<2x32xf32>
    %cst_39 = arith.constant 1.000000e+00 : f32
    %163 = vector.broadcast %cst_39 : f32 to vector<2x32xf32>
    %164 = arith.addf %163, %162 : vector<2x32xf32>
    %165 = arith.divf %163, %164 : vector<2x32xf32>
    %166 = vector.extract_strided_slice %145 {offsets = [0, 64], sizes = [2, 32], strides = [1, 1]} : vector<2x96xf32> to vector<2x32xf32>
    %167 = vector.extract_strided_slice %149 {offsets = [0, 64], sizes = [2, 32], strides = [1, 1]} : vector<2x96xf32> to vector<2x32xf32>
    %168 = arith.mulf %157, %167 : vector<2x32xf32>
    %169 = arith.addf %166, %168 : vector<2x32xf32>
    %170 = math.tanh %169 : vector<2x32xf32>
    %cst_40 = arith.constant 1.000000e+00 : f32
    %171 = vector.broadcast %cst_40 : f32 to vector<2x32xf32>
    %172 = arith.subf %171, %165 : vector<2x32xf32>
    %173 = arith.mulf %172, %170 : vector<2x32xf32>
    %174 = arith.mulf %165, %115 : vector<2x32xf32>
    %175 = arith.addf %173, %174 : vector<2x32xf32>
    %cst_41 = arith.constant dense<0.000000e+00> : vector<2x96xf32>
    %176 = tpu.matmul %144, %21, %cst_41 {dimension_numbers = #tpu.dot_dimension_numbers<[1], [0], [0], [1], [0, 0, 1, 1], [], []>} : vector<2x32xf32>, vector<32x96xf32>, vector<2x96xf32> -> vector<2x96xf32>
    %177 = vector.broadcast %22 : vector<1x96xf32> to vector<2x96xf32>
    %178 = arith.addf %176, %177 : vector<2x96xf32>
    %179 = vector.extract_strided_slice %146 {offsets = [0, 0], sizes = [2, 32], strides = [1, 1]} : vector<2x96xf32> to vector<2x32xf32>
    %180 = vector.extract_strided_slice %178 {offsets = [0, 0], sizes = [2, 32], strides = [1, 1]} : vector<2x96xf32> to vector<2x32xf32>
    %181 = arith.addf %179, %180 : vector<2x32xf32>
    %182 = arith.negf %181 : vector<2x32xf32>
    %183 = math.exp %182 : vector<2x32xf32>
    %cst_42 = arith.constant 1.000000e+00 : f32
    %184 = vector.broadcast %cst_42 : f32 to vector<2x32xf32>
    %185 = arith.addf %184, %183 : vector<2x32xf32>
    %186 = arith.divf %184, %185 : vector<2x32xf32>
    %187 = vector.extract_strided_slice %146 {offsets = [0, 32], sizes = [2, 32], strides = [1, 1]} : vector<2x96xf32> to vector<2x32xf32>
    %188 = vector.extract_strided_slice %178 {offsets = [0, 32], sizes = [2, 32], strides = [1, 1]} : vector<2x96xf32> to vector<2x32xf32>
    %189 = arith.addf %187, %188 : vector<2x32xf32>
    %190 = arith.negf %189 : vector<2x32xf32>
    %191 = math.exp %190 : vector<2x32xf32>
    %cst_43 = arith.constant 1.000000e+00 : f32
    %192 = vector.broadcast %cst_43 : f32 to vector<2x32xf32>
    %193 = arith.addf %192, %191 : vector<2x32xf32>
    %194 = arith.divf %192, %193 : vector<2x32xf32>
    %195 = vector.extract_strided_slice %146 {offsets = [0, 64], sizes = [2, 32], strides = [1, 1]} : vector<2x96xf32> to vector<2x32xf32>
    %196 = vector.extract_strided_slice %178 {offsets = [0, 64], sizes = [2, 32], strides = [1, 1]} : vector<2x96xf32> to vector<2x32xf32>
    %197 = arith.mulf %186, %196 : vector<2x32xf32>
    %198 = arith.addf %195, %197 : vector<2x32xf32>
    %199 = math.tanh %198 : vector<2x32xf32>
    %cst_44 = arith.constant 1.000000e+00 : f32
    %200 = vector.broadcast %cst_44 : f32 to vector<2x32xf32>
    %201 = arith.subf %200, %194 : vector<2x32xf32>
    %202 = arith.mulf %201, %199 : vector<2x32xf32>
    %203 = arith.mulf %194, %144 : vector<2x32xf32>
    %204 = arith.addf %202, %203 : vector<2x32xf32>
    %205 = vector.extract_strided_slice %18 {offsets = [6, 0], sizes = [2, 96], strides = [1, 1]} : vector<16x192xf32> to vector<2x96xf32>
    %206 = vector.extract_strided_slice %18 {offsets = [8, 96], sizes = [2, 96], strides = [1, 1]} : vector<16x192xf32> to vector<2x96xf32>
    %cst_45 = arith.constant dense<0.000000e+00> : vector<2x96xf32>
    %207 = tpu.matmul %175, %19, %cst_45 {dimension_numbers = #tpu.dot_dimension_numbers<[1], [0], [0], [1], [0, 0, 1, 1], [], []>} : vector<2x32xf32>, vector<32x96xf32>, vector<2x96xf32> -> vector<2x96xf32>
    %208 = vector.broadcast %20 : vector<1x96xf32> to vector<2x96xf32>
    %209 = arith.addf %207, %208 : vector<2x96xf32>
    %210 = vector.extract_strided_slice %205 {offsets = [0, 0], sizes = [2, 32], strides = [1, 1]} : vector<2x96xf32> to vector<2x32xf32>
    %211 = vector.extract_strided_slice %209 {offsets = [0, 0], sizes = [2, 32], strides = [1, 1]} : vector<2x96xf32> to vector<2x32xf32>
    %212 = arith.addf %210, %211 : vector<2x32xf32>
    %213 = arith.negf %212 : vector<2x32xf32>
    %214 = math.exp %213 : vector<2x32xf32>
    %cst_46 = arith.constant 1.000000e+00 : f32
    %215 = vector.broadcast %cst_46 : f32 to vector<2x32xf32>
    %216 = arith.addf %215, %214 : vector<2x32xf32>
    %217 = arith.divf %215, %216 : vector<2x32xf32>
    %218 = vector.extract_strided_slice %205 {offsets = [0, 32], sizes = [2, 32], strides = [1, 1]} : vector<2x96xf32> to vector<2x32xf32>
    %219 = vector.extract_strided_slice %209 {offsets = [0, 32], sizes = [2, 32], strides = [1, 1]} : vector<2x96xf32> to vector<2x32xf32>
    %220 = arith.addf %218, %219 : vector<2x32xf32>
    %221 = arith.negf %220 : vector<2x32xf32>
    %222 = math.exp %221 : vector<2x32xf32>
    %cst_47 = arith.constant 1.000000e+00 : f32
    %223 = vector.broadcast %cst_47 : f32 to vector<2x32xf32>
    %224 = arith.addf %223, %222 : vector<2x32xf32>
    %225 = arith.divf %223, %224 : vector<2x32xf32>
    %226 = vector.extract_strided_slice %205 {offsets = [0, 64], sizes = [2, 32], strides = [1, 1]} : vector<2x96xf32> to vector<2x32xf32>
    %227 = vector.extract_strided_slice %209 {offsets = [0, 64], sizes = [2, 32], strides = [1, 1]} : vector<2x96xf32> to vector<2x32xf32>
    %228 = arith.mulf %217, %227 : vector<2x32xf32>
    %229 = arith.addf %226, %228 : vector<2x32xf32>
    %230 = math.tanh %229 : vector<2x32xf32>
    %cst_48 = arith.constant 1.000000e+00 : f32
    %231 = vector.broadcast %cst_48 : f32 to vector<2x32xf32>
    %232 = arith.subf %231, %225 : vector<2x32xf32>
    %233 = arith.mulf %232, %230 : vector<2x32xf32>
    %234 = arith.mulf %225, %175 : vector<2x32xf32>
    %235 = arith.addf %233, %234 : vector<2x32xf32>
    %cst_49 = arith.constant dense<0.000000e+00> : vector<2x96xf32>
    %236 = tpu.matmul %204, %21, %cst_49 {dimension_numbers = #tpu.dot_dimension_numbers<[1], [0], [0], [1], [0, 0, 1, 1], [], []>} : vector<2x32xf32>, vector<32x96xf32>, vector<2x96xf32> -> vector<2x96xf32>
    %237 = vector.broadcast %22 : vector<1x96xf32> to vector<2x96xf32>
    %238 = arith.addf %236, %237 : vector<2x96xf32>
    %239 = vector.extract_strided_slice %206 {offsets = [0, 0], sizes = [2, 32], strides = [1, 1]} : vector<2x96xf32> to vector<2x32xf32>
    %240 = vector.extract_strided_slice %238 {offsets = [0, 0], sizes = [2, 32], strides = [1, 1]} : vector<2x96xf32> to vector<2x32xf32>
    %241 = arith.addf %239, %240 : vector<2x32xf32>
    %242 = arith.negf %241 : vector<2x32xf32>
    %243 = math.exp %242 : vector<2x32xf32>
    %cst_50 = arith.constant 1.000000e+00 : f32
    %244 = vector.broadcast %cst_50 : f32 to vector<2x32xf32>
    %245 = arith.addf %244, %243 : vector<2x32xf32>
    %246 = arith.divf %244, %245 : vector<2x32xf32>
    %247 = vector.extract_strided_slice %206 {offsets = [0, 32], sizes = [2, 32], strides = [1, 1]} : vector<2x96xf32> to vector<2x32xf32>
    %248 = vector.extract_strided_slice %238 {offsets = [0, 32], sizes = [2, 32], strides = [1, 1]} : vector<2x96xf32> to vector<2x32xf32>
    %249 = arith.addf %247, %248 : vector<2x32xf32>
    %250 = arith.negf %249 : vector<2x32xf32>
    %251 = math.exp %250 : vector<2x32xf32>
    %cst_51 = arith.constant 1.000000e+00 : f32
    %252 = vector.broadcast %cst_51 : f32 to vector<2x32xf32>
    %253 = arith.addf %252, %251 : vector<2x32xf32>
    %254 = arith.divf %252, %253 : vector<2x32xf32>
    %255 = vector.extract_strided_slice %206 {offsets = [0, 64], sizes = [2, 32], strides = [1, 1]} : vector<2x96xf32> to vector<2x32xf32>
    %256 = vector.extract_strided_slice %238 {offsets = [0, 64], sizes = [2, 32], strides = [1, 1]} : vector<2x96xf32> to vector<2x32xf32>
    %257 = arith.mulf %246, %256 : vector<2x32xf32>
    %258 = arith.addf %255, %257 : vector<2x32xf32>
    %259 = math.tanh %258 : vector<2x32xf32>
    %cst_52 = arith.constant 1.000000e+00 : f32
    %260 = vector.broadcast %cst_52 : f32 to vector<2x32xf32>
    %261 = arith.subf %260, %254 : vector<2x32xf32>
    %262 = arith.mulf %261, %259 : vector<2x32xf32>
    %263 = arith.mulf %254, %204 : vector<2x32xf32>
    %264 = arith.addf %262, %263 : vector<2x32xf32>
    %265 = vector.extract_strided_slice %18 {offsets = [8, 0], sizes = [2, 96], strides = [1, 1]} : vector<16x192xf32> to vector<2x96xf32>
    %266 = vector.extract_strided_slice %18 {offsets = [6, 96], sizes = [2, 96], strides = [1, 1]} : vector<16x192xf32> to vector<2x96xf32>
    %cst_53 = arith.constant dense<0.000000e+00> : vector<2x96xf32>
    %267 = tpu.matmul %235, %19, %cst_53 {dimension_numbers = #tpu.dot_dimension_numbers<[1], [0], [0], [1], [0, 0, 1, 1], [], []>} : vector<2x32xf32>, vector<32x96xf32>, vector<2x96xf32> -> vector<2x96xf32>
    %268 = vector.broadcast %20 : vector<1x96xf32> to vector<2x96xf32>
    %269 = arith.addf %267, %268 : vector<2x96xf32>
    %270 = vector.extract_strided_slice %265 {offsets = [0, 0], sizes = [2, 32], strides = [1, 1]} : vector<2x96xf32> to vector<2x32xf32>
    %271 = vector.extract_strided_slice %269 {offsets = [0, 0], sizes = [2, 32], strides = [1, 1]} : vector<2x96xf32> to vector<2x32xf32>
    %272 = arith.addf %270, %271 : vector<2x32xf32>
    %273 = arith.negf %272 : vector<2x32xf32>
    %274 = math.exp %273 : vector<2x32xf32>
    %cst_54 = arith.constant 1.000000e+00 : f32
    %275 = vector.broadcast %cst_54 : f32 to vector<2x32xf32>
    %276 = arith.addf %275, %274 : vector<2x32xf32>
    %277 = arith.divf %275, %276 : vector<2x32xf32>
    %278 = vector.extract_strided_slice %265 {offsets = [0, 32], sizes = [2, 32], strides = [1, 1]} : vector<2x96xf32> to vector<2x32xf32>
    %279 = vector.extract_strided_slice %269 {offsets = [0, 32], sizes = [2, 32], strides = [1, 1]} : vector<2x96xf32> to vector<2x32xf32>
    %280 = arith.addf %278, %279 : vector<2x32xf32>
    %281 = arith.negf %280 : vector<2x32xf32>
    %282 = math.exp %281 : vector<2x32xf32>
    %cst_55 = arith.constant 1.000000e+00 : f32
    %283 = vector.broadcast %cst_55 : f32 to vector<2x32xf32>
    %284 = arith.addf %283, %282 : vector<2x32xf32>
    %285 = arith.divf %283, %284 : vector<2x32xf32>
    %286 = vector.extract_strided_slice %265 {offsets = [0, 64], sizes = [2, 32], strides = [1, 1]} : vector<2x96xf32> to vector<2x32xf32>
    %287 = vector.extract_strided_slice %269 {offsets = [0, 64], sizes = [2, 32], strides = [1, 1]} : vector<2x96xf32> to vector<2x32xf32>
    %288 = arith.mulf %277, %287 : vector<2x32xf32>
    %289 = arith.addf %286, %288 : vector<2x32xf32>
    %290 = math.tanh %289 : vector<2x32xf32>
    %cst_56 = arith.constant 1.000000e+00 : f32
    %291 = vector.broadcast %cst_56 : f32 to vector<2x32xf32>
    %292 = arith.subf %291, %285 : vector<2x32xf32>
    %293 = arith.mulf %292, %290 : vector<2x32xf32>
    %294 = arith.mulf %285, %235 : vector<2x32xf32>
    %295 = arith.addf %293, %294 : vector<2x32xf32>
    %cst_57 = arith.constant dense<0.000000e+00> : vector<2x96xf32>
    %296 = tpu.matmul %264, %21, %cst_57 {dimension_numbers = #tpu.dot_dimension_numbers<[1], [0], [0], [1], [0, 0, 1, 1], [], []>} : vector<2x32xf32>, vector<32x96xf32>, vector<2x96xf32> -> vector<2x96xf32>
    %297 = vector.broadcast %22 : vector<1x96xf32> to vector<2x96xf32>
    %298 = arith.addf %296, %297 : vector<2x96xf32>
    %299 = vector.extract_strided_slice %266 {offsets = [0, 0], sizes = [2, 32], strides = [1, 1]} : vector<2x96xf32> to vector<2x32xf32>
    %300 = vector.extract_strided_slice %298 {offsets = [0, 0], sizes = [2, 32], strides = [1, 1]} : vector<2x96xf32> to vector<2x32xf32>
    %301 = arith.addf %299, %300 : vector<2x32xf32>
    %302 = arith.negf %301 : vector<2x32xf32>
    %303 = math.exp %302 : vector<2x32xf32>
    %cst_58 = arith.constant 1.000000e+00 : f32
    %304 = vector.broadcast %cst_58 : f32 to vector<2x32xf32>
    %305 = arith.addf %304, %303 : vector<2x32xf32>
    %306 = arith.divf %304, %305 : vector<2x32xf32>
    %307 = vector.extract_strided_slice %266 {offsets = [0, 32], sizes = [2, 32], strides = [1, 1]} : vector<2x96xf32> to vector<2x32xf32>
    %308 = vector.extract_strided_slice %298 {offsets = [0, 32], sizes = [2, 32], strides = [1, 1]} : vector<2x96xf32> to vector<2x32xf32>
    %309 = arith.addf %307, %308 : vector<2x32xf32>
    %310 = arith.negf %309 : vector<2x32xf32>
    %311 = math.exp %310 : vector<2x32xf32>
    %cst_59 = arith.constant 1.000000e+00 : f32
    %312 = vector.broadcast %cst_59 : f32 to vector<2x32xf32>
    %313 = arith.addf %312, %311 : vector<2x32xf32>
    %314 = arith.divf %312, %313 : vector<2x32xf32>
    %315 = vector.extract_strided_slice %266 {offsets = [0, 64], sizes = [2, 32], strides = [1, 1]} : vector<2x96xf32> to vector<2x32xf32>
    %316 = vector.extract_strided_slice %298 {offsets = [0, 64], sizes = [2, 32], strides = [1, 1]} : vector<2x96xf32> to vector<2x32xf32>
    %317 = arith.mulf %306, %316 : vector<2x32xf32>
    %318 = arith.addf %315, %317 : vector<2x32xf32>
    %319 = math.tanh %318 : vector<2x32xf32>
    %cst_60 = arith.constant 1.000000e+00 : f32
    %320 = vector.broadcast %cst_60 : f32 to vector<2x32xf32>
    %321 = arith.subf %320, %314 : vector<2x32xf32>
    %322 = arith.mulf %321, %319 : vector<2x32xf32>
    %323 = arith.mulf %314, %264 : vector<2x32xf32>
    %324 = arith.addf %322, %323 : vector<2x32xf32>
    %325 = vector.extract_strided_slice %18 {offsets = [10, 0], sizes = [2, 96], strides = [1, 1]} : vector<16x192xf32> to vector<2x96xf32>
    %326 = vector.extract_strided_slice %18 {offsets = [4, 96], sizes = [2, 96], strides = [1, 1]} : vector<16x192xf32> to vector<2x96xf32>
    %cst_61 = arith.constant dense<0.000000e+00> : vector<2x96xf32>
    %327 = tpu.matmul %295, %19, %cst_61 {dimension_numbers = #tpu.dot_dimension_numbers<[1], [0], [0], [1], [0, 0, 1, 1], [], []>} : vector<2x32xf32>, vector<32x96xf32>, vector<2x96xf32> -> vector<2x96xf32>
    %328 = vector.broadcast %20 : vector<1x96xf32> to vector<2x96xf32>
    %329 = arith.addf %327, %328 : vector<2x96xf32>
    %330 = vector.extract_strided_slice %325 {offsets = [0, 0], sizes = [2, 32], strides = [1, 1]} : vector<2x96xf32> to vector<2x32xf32>
    %331 = vector.extract_strided_slice %329 {offsets = [0, 0], sizes = [2, 32], strides = [1, 1]} : vector<2x96xf32> to vector<2x32xf32>
    %332 = arith.addf %330, %331 : vector<2x32xf32>
    %333 = arith.negf %332 : vector<2x32xf32>
    %334 = math.exp %333 : vector<2x32xf32>
    %cst_62 = arith.constant 1.000000e+00 : f32
    %335 = vector.broadcast %cst_62 : f32 to vector<2x32xf32>
    %336 = arith.addf %335, %334 : vector<2x32xf32>
    %337 = arith.divf %335, %336 : vector<2x32xf32>
    %338 = vector.extract_strided_slice %325 {offsets = [0, 32], sizes = [2, 32], strides = [1, 1]} : vector<2x96xf32> to vector<2x32xf32>
    %339 = vector.extract_strided_slice %329 {offsets = [0, 32], sizes = [2, 32], strides = [1, 1]} : vector<2x96xf32> to vector<2x32xf32>
    %340 = arith.addf %338, %339 : vector<2x32xf32>
    %341 = arith.negf %340 : vector<2x32xf32>
    %342 = math.exp %341 : vector<2x32xf32>
    %cst_63 = arith.constant 1.000000e+00 : f32
    %343 = vector.broadcast %cst_63 : f32 to vector<2x32xf32>
    %344 = arith.addf %343, %342 : vector<2x32xf32>
    %345 = arith.divf %343, %344 : vector<2x32xf32>
    %346 = vector.extract_strided_slice %325 {offsets = [0, 64], sizes = [2, 32], strides = [1, 1]} : vector<2x96xf32> to vector<2x32xf32>
    %347 = vector.extract_strided_slice %329 {offsets = [0, 64], sizes = [2, 32], strides = [1, 1]} : vector<2x96xf32> to vector<2x32xf32>
    %348 = arith.mulf %337, %347 : vector<2x32xf32>
    %349 = arith.addf %346, %348 : vector<2x32xf32>
    %350 = math.tanh %349 : vector<2x32xf32>
    %cst_64 = arith.constant 1.000000e+00 : f32
    %351 = vector.broadcast %cst_64 : f32 to vector<2x32xf32>
    %352 = arith.subf %351, %345 : vector<2x32xf32>
    %353 = arith.mulf %352, %350 : vector<2x32xf32>
    %354 = arith.mulf %345, %295 : vector<2x32xf32>
    %355 = arith.addf %353, %354 : vector<2x32xf32>
    %cst_65 = arith.constant dense<0.000000e+00> : vector<2x96xf32>
    %356 = tpu.matmul %324, %21, %cst_65 {dimension_numbers = #tpu.dot_dimension_numbers<[1], [0], [0], [1], [0, 0, 1, 1], [], []>} : vector<2x32xf32>, vector<32x96xf32>, vector<2x96xf32> -> vector<2x96xf32>
    %357 = vector.broadcast %22 : vector<1x96xf32> to vector<2x96xf32>
    %358 = arith.addf %356, %357 : vector<2x96xf32>
    %359 = vector.extract_strided_slice %326 {offsets = [0, 0], sizes = [2, 32], strides = [1, 1]} : vector<2x96xf32> to vector<2x32xf32>
    %360 = vector.extract_strided_slice %358 {offsets = [0, 0], sizes = [2, 32], strides = [1, 1]} : vector<2x96xf32> to vector<2x32xf32>
    %361 = arith.addf %359, %360 : vector<2x32xf32>
    %362 = arith.negf %361 : vector<2x32xf32>
    %363 = math.exp %362 : vector<2x32xf32>
    %cst_66 = arith.constant 1.000000e+00 : f32
    %364 = vector.broadcast %cst_66 : f32 to vector<2x32xf32>
    %365 = arith.addf %364, %363 : vector<2x32xf32>
    %366 = arith.divf %364, %365 : vector<2x32xf32>
    %367 = vector.extract_strided_slice %326 {offsets = [0, 32], sizes = [2, 32], strides = [1, 1]} : vector<2x96xf32> to vector<2x32xf32>
    %368 = vector.extract_strided_slice %358 {offsets = [0, 32], sizes = [2, 32], strides = [1, 1]} : vector<2x96xf32> to vector<2x32xf32>
    %369 = arith.addf %367, %368 : vector<2x32xf32>
    %370 = arith.negf %369 : vector<2x32xf32>
    %371 = math.exp %370 : vector<2x32xf32>
    %cst_67 = arith.constant 1.000000e+00 : f32
    %372 = vector.broadcast %cst_67 : f32 to vector<2x32xf32>
    %373 = arith.addf %372, %371 : vector<2x32xf32>
    %374 = arith.divf %372, %373 : vector<2x32xf32>
    %375 = vector.extract_strided_slice %326 {offsets = [0, 64], sizes = [2, 32], strides = [1, 1]} : vector<2x96xf32> to vector<2x32xf32>
    %376 = vector.extract_strided_slice %358 {offsets = [0, 64], sizes = [2, 32], strides = [1, 1]} : vector<2x96xf32> to vector<2x32xf32>
    %377 = arith.mulf %366, %376 : vector<2x32xf32>
    %378 = arith.addf %375, %377 : vector<2x32xf32>
    %379 = math.tanh %378 : vector<2x32xf32>
    %cst_68 = arith.constant 1.000000e+00 : f32
    %380 = vector.broadcast %cst_68 : f32 to vector<2x32xf32>
    %381 = arith.subf %380, %374 : vector<2x32xf32>
    %382 = arith.mulf %381, %379 : vector<2x32xf32>
    %383 = arith.mulf %374, %324 : vector<2x32xf32>
    %384 = arith.addf %382, %383 : vector<2x32xf32>
    %385 = vector.extract_strided_slice %18 {offsets = [12, 0], sizes = [2, 96], strides = [1, 1]} : vector<16x192xf32> to vector<2x96xf32>
    %386 = vector.extract_strided_slice %18 {offsets = [2, 96], sizes = [2, 96], strides = [1, 1]} : vector<16x192xf32> to vector<2x96xf32>
    %cst_69 = arith.constant dense<0.000000e+00> : vector<2x96xf32>
    %387 = tpu.matmul %355, %19, %cst_69 {dimension_numbers = #tpu.dot_dimension_numbers<[1], [0], [0], [1], [0, 0, 1, 1], [], []>} : vector<2x32xf32>, vector<32x96xf32>, vector<2x96xf32> -> vector<2x96xf32>
    %388 = vector.broadcast %20 : vector<1x96xf32> to vector<2x96xf32>
    %389 = arith.addf %387, %388 : vector<2x96xf32>
    %390 = vector.extract_strided_slice %385 {offsets = [0, 0], sizes = [2, 32], strides = [1, 1]} : vector<2x96xf32> to vector<2x32xf32>
    %391 = vector.extract_strided_slice %389 {offsets = [0, 0], sizes = [2, 32], strides = [1, 1]} : vector<2x96xf32> to vector<2x32xf32>
    %392 = arith.addf %390, %391 : vector<2x32xf32>
    %393 = arith.negf %392 : vector<2x32xf32>
    %394 = math.exp %393 : vector<2x32xf32>
    %cst_70 = arith.constant 1.000000e+00 : f32
    %395 = vector.broadcast %cst_70 : f32 to vector<2x32xf32>
    %396 = arith.addf %395, %394 : vector<2x32xf32>
    %397 = arith.divf %395, %396 : vector<2x32xf32>
    %398 = vector.extract_strided_slice %385 {offsets = [0, 32], sizes = [2, 32], strides = [1, 1]} : vector<2x96xf32> to vector<2x32xf32>
    %399 = vector.extract_strided_slice %389 {offsets = [0, 32], sizes = [2, 32], strides = [1, 1]} : vector<2x96xf32> to vector<2x32xf32>
    %400 = arith.addf %398, %399 : vector<2x32xf32>
    %401 = arith.negf %400 : vector<2x32xf32>
    %402 = math.exp %401 : vector<2x32xf32>
    %cst_71 = arith.constant 1.000000e+00 : f32
    %403 = vector.broadcast %cst_71 : f32 to vector<2x32xf32>
    %404 = arith.addf %403, %402 : vector<2x32xf32>
    %405 = arith.divf %403, %404 : vector<2x32xf32>
    %406 = vector.extract_strided_slice %385 {offsets = [0, 64], sizes = [2, 32], strides = [1, 1]} : vector<2x96xf32> to vector<2x32xf32>
    %407 = vector.extract_strided_slice %389 {offsets = [0, 64], sizes = [2, 32], strides = [1, 1]} : vector<2x96xf32> to vector<2x32xf32>
    %408 = arith.mulf %397, %407 : vector<2x32xf32>
    %409 = arith.addf %406, %408 : vector<2x32xf32>
    %410 = math.tanh %409 : vector<2x32xf32>
    %cst_72 = arith.constant 1.000000e+00 : f32
    %411 = vector.broadcast %cst_72 : f32 to vector<2x32xf32>
    %412 = arith.subf %411, %405 : vector<2x32xf32>
    %413 = arith.mulf %412, %410 : vector<2x32xf32>
    %414 = arith.mulf %405, %355 : vector<2x32xf32>
    %415 = arith.addf %413, %414 : vector<2x32xf32>
    %cst_73 = arith.constant dense<0.000000e+00> : vector<2x96xf32>
    %416 = tpu.matmul %384, %21, %cst_73 {dimension_numbers = #tpu.dot_dimension_numbers<[1], [0], [0], [1], [0, 0, 1, 1], [], []>} : vector<2x32xf32>, vector<32x96xf32>, vector<2x96xf32> -> vector<2x96xf32>
    %417 = vector.broadcast %22 : vector<1x96xf32> to vector<2x96xf32>
    %418 = arith.addf %416, %417 : vector<2x96xf32>
    %419 = vector.extract_strided_slice %386 {offsets = [0, 0], sizes = [2, 32], strides = [1, 1]} : vector<2x96xf32> to vector<2x32xf32>
    %420 = vector.extract_strided_slice %418 {offsets = [0, 0], sizes = [2, 32], strides = [1, 1]} : vector<2x96xf32> to vector<2x32xf32>
    %421 = arith.addf %419, %420 : vector<2x32xf32>
    %422 = arith.negf %421 : vector<2x32xf32>
    %423 = math.exp %422 : vector<2x32xf32>
    %cst_74 = arith.constant 1.000000e+00 : f32
    %424 = vector.broadcast %cst_74 : f32 to vector<2x32xf32>
    %425 = arith.addf %424, %423 : vector<2x32xf32>
    %426 = arith.divf %424, %425 : vector<2x32xf32>
    %427 = vector.extract_strided_slice %386 {offsets = [0, 32], sizes = [2, 32], strides = [1, 1]} : vector<2x96xf32> to vector<2x32xf32>
    %428 = vector.extract_strided_slice %418 {offsets = [0, 32], sizes = [2, 32], strides = [1, 1]} : vector<2x96xf32> to vector<2x32xf32>
    %429 = arith.addf %427, %428 : vector<2x32xf32>
    %430 = arith.negf %429 : vector<2x32xf32>
    %431 = math.exp %430 : vector<2x32xf32>
    %cst_75 = arith.constant 1.000000e+00 : f32
    %432 = vector.broadcast %cst_75 : f32 to vector<2x32xf32>
    %433 = arith.addf %432, %431 : vector<2x32xf32>
    %434 = arith.divf %432, %433 : vector<2x32xf32>
    %435 = vector.extract_strided_slice %386 {offsets = [0, 64], sizes = [2, 32], strides = [1, 1]} : vector<2x96xf32> to vector<2x32xf32>
    %436 = vector.extract_strided_slice %418 {offsets = [0, 64], sizes = [2, 32], strides = [1, 1]} : vector<2x96xf32> to vector<2x32xf32>
    %437 = arith.mulf %426, %436 : vector<2x32xf32>
    %438 = arith.addf %435, %437 : vector<2x32xf32>
    %439 = math.tanh %438 : vector<2x32xf32>
    %cst_76 = arith.constant 1.000000e+00 : f32
    %440 = vector.broadcast %cst_76 : f32 to vector<2x32xf32>
    %441 = arith.subf %440, %434 : vector<2x32xf32>
    %442 = arith.mulf %441, %439 : vector<2x32xf32>
    %443 = arith.mulf %434, %384 : vector<2x32xf32>
    %444 = arith.addf %442, %443 : vector<2x32xf32>
    %445 = vector.extract_strided_slice %18 {offsets = [14, 0], sizes = [2, 96], strides = [1, 1]} : vector<16x192xf32> to vector<2x96xf32>
    %446 = vector.extract_strided_slice %18 {offsets = [0, 96], sizes = [2, 96], strides = [1, 1]} : vector<16x192xf32> to vector<2x96xf32>
    %cst_77 = arith.constant dense<0.000000e+00> : vector<2x96xf32>
    %447 = tpu.matmul %415, %19, %cst_77 {dimension_numbers = #tpu.dot_dimension_numbers<[1], [0], [0], [1], [0, 0, 1, 1], [], []>} : vector<2x32xf32>, vector<32x96xf32>, vector<2x96xf32> -> vector<2x96xf32>
    %448 = vector.broadcast %20 : vector<1x96xf32> to vector<2x96xf32>
    %449 = arith.addf %447, %448 : vector<2x96xf32>
    %450 = vector.extract_strided_slice %445 {offsets = [0, 0], sizes = [2, 32], strides = [1, 1]} : vector<2x96xf32> to vector<2x32xf32>
    %451 = vector.extract_strided_slice %449 {offsets = [0, 0], sizes = [2, 32], strides = [1, 1]} : vector<2x96xf32> to vector<2x32xf32>
    %452 = arith.addf %450, %451 : vector<2x32xf32>
    %453 = arith.negf %452 : vector<2x32xf32>
    %454 = math.exp %453 : vector<2x32xf32>
    %cst_78 = arith.constant 1.000000e+00 : f32
    %455 = vector.broadcast %cst_78 : f32 to vector<2x32xf32>
    %456 = arith.addf %455, %454 : vector<2x32xf32>
    %457 = arith.divf %455, %456 : vector<2x32xf32>
    %458 = vector.extract_strided_slice %445 {offsets = [0, 32], sizes = [2, 32], strides = [1, 1]} : vector<2x96xf32> to vector<2x32xf32>
    %459 = vector.extract_strided_slice %449 {offsets = [0, 32], sizes = [2, 32], strides = [1, 1]} : vector<2x96xf32> to vector<2x32xf32>
    %460 = arith.addf %458, %459 : vector<2x32xf32>
    %461 = arith.negf %460 : vector<2x32xf32>
    %462 = math.exp %461 : vector<2x32xf32>
    %cst_79 = arith.constant 1.000000e+00 : f32
    %463 = vector.broadcast %cst_79 : f32 to vector<2x32xf32>
    %464 = arith.addf %463, %462 : vector<2x32xf32>
    %465 = arith.divf %463, %464 : vector<2x32xf32>
    %466 = vector.extract_strided_slice %445 {offsets = [0, 64], sizes = [2, 32], strides = [1, 1]} : vector<2x96xf32> to vector<2x32xf32>
    %467 = vector.extract_strided_slice %449 {offsets = [0, 64], sizes = [2, 32], strides = [1, 1]} : vector<2x96xf32> to vector<2x32xf32>
    %468 = arith.mulf %457, %467 : vector<2x32xf32>
    %469 = arith.addf %466, %468 : vector<2x32xf32>
    %470 = math.tanh %469 : vector<2x32xf32>
    %cst_80 = arith.constant 1.000000e+00 : f32
    %471 = vector.broadcast %cst_80 : f32 to vector<2x32xf32>
    %472 = arith.subf %471, %465 : vector<2x32xf32>
    %473 = arith.mulf %472, %470 : vector<2x32xf32>
    %474 = arith.mulf %465, %415 : vector<2x32xf32>
    %475 = arith.addf %473, %474 : vector<2x32xf32>
    %cst_81 = arith.constant dense<0.000000e+00> : vector<2x96xf32>
    %476 = tpu.matmul %444, %21, %cst_81 {dimension_numbers = #tpu.dot_dimension_numbers<[1], [0], [0], [1], [0, 0, 1, 1], [], []>} : vector<2x32xf32>, vector<32x96xf32>, vector<2x96xf32> -> vector<2x96xf32>
    %477 = vector.broadcast %22 : vector<1x96xf32> to vector<2x96xf32>
    %478 = arith.addf %476, %477 : vector<2x96xf32>
    %479 = vector.extract_strided_slice %446 {offsets = [0, 0], sizes = [2, 32], strides = [1, 1]} : vector<2x96xf32> to vector<2x32xf32>
    %480 = vector.extract_strided_slice %478 {offsets = [0, 0], sizes = [2, 32], strides = [1, 1]} : vector<2x96xf32> to vector<2x32xf32>
    %481 = arith.addf %479, %480 : vector<2x32xf32>
    %482 = arith.negf %481 : vector<2x32xf32>
    %483 = math.exp %482 : vector<2x32xf32>
    %cst_82 = arith.constant 1.000000e+00 : f32
    %484 = vector.broadcast %cst_82 : f32 to vector<2x32xf32>
    %485 = arith.addf %484, %483 : vector<2x32xf32>
    %486 = arith.divf %484, %485 : vector<2x32xf32>
    %487 = vector.extract_strided_slice %446 {offsets = [0, 32], sizes = [2, 32], strides = [1, 1]} : vector<2x96xf32> to vector<2x32xf32>
    %488 = vector.extract_strided_slice %478 {offsets = [0, 32], sizes = [2, 32], strides = [1, 1]} : vector<2x96xf32> to vector<2x32xf32>
    %489 = arith.addf %487, %488 : vector<2x32xf32>
    %490 = arith.negf %489 : vector<2x32xf32>
    %491 = math.exp %490 : vector<2x32xf32>
    %cst_83 = arith.constant 1.000000e+00 : f32
    %492 = vector.broadcast %cst_83 : f32 to vector<2x32xf32>
    %493 = arith.addf %492, %491 : vector<2x32xf32>
    %494 = arith.divf %492, %493 : vector<2x32xf32>
    %495 = vector.extract_strided_slice %446 {offsets = [0, 64], sizes = [2, 32], strides = [1, 1]} : vector<2x96xf32> to vector<2x32xf32>
    %496 = vector.extract_strided_slice %478 {offsets = [0, 64], sizes = [2, 32], strides = [1, 1]} : vector<2x96xf32> to vector<2x32xf32>
    %497 = arith.mulf %486, %496 : vector<2x32xf32>
    %498 = arith.addf %495, %497 : vector<2x32xf32>
    %499 = math.tanh %498 : vector<2x32xf32>
    %cst_84 = arith.constant 1.000000e+00 : f32
    %500 = vector.broadcast %cst_84 : f32 to vector<2x32xf32>
    %501 = arith.subf %500, %494 : vector<2x32xf32>
    %502 = arith.mulf %501, %499 : vector<2x32xf32>
    %503 = arith.mulf %494, %444 : vector<2x32xf32>
    %504 = arith.addf %502, %503 : vector<2x32xf32>
    %505 = tpu.concatenate %55, %115, %175, %235, %295, %355, %415, %475 in 0 : vector<2x32xf32>, vector<2x32xf32>, vector<2x32xf32>, vector<2x32xf32>, vector<2x32xf32>, vector<2x32xf32>, vector<2x32xf32>, vector<2x32xf32> -> vector<16x32xf32>
    %506 = tpu.concatenate %504, %444, %384, %324, %264, %204, %144, %84 in 0 : vector<2x32xf32>, vector<2x32xf32>, vector<2x32xf32>, vector<2x32xf32>, vector<2x32xf32>, vector<2x32xf32>, vector<2x32xf32>, vector<2x32xf32> -> vector<16x32xf32>
    %c0_85 = arith.constant 0 : index
    %c0_86 = arith.constant 0 : index
    %507 = vector.load %arg10[%c0_85, %c0_86] : memref<64x256xf32, #tpu.memory_space<vmem>>, vector<32x256xf32>
    %cst_87 = arith.constant dense<0.000000e+00> : vector<16x256xf32>
    %508 = tpu.matmul %505, %507, %cst_87 {dimension_numbers = #tpu.dot_dimension_numbers<[1], [0], [0], [1], [0, 0, 1, 1], [], []>} : vector<16x32xf32>, vector<32x256xf32>, vector<16x256xf32> -> vector<16x256xf32>
    %c32 = arith.constant 32 : index
    %c0_88 = arith.constant 0 : index
    %509 = vector.load %arg10[%c32, %c0_88] : memref<64x256xf32, #tpu.memory_space<vmem>>, vector<32x256xf32>
    %cst_89 = arith.constant dense<0.000000e+00> : vector<16x256xf32>
    %510 = tpu.matmul %506, %509, %cst_89 {dimension_numbers = #tpu.dot_dimension_numbers<[1], [0], [0], [1], [0, 0, 1, 1], [], []>} : vector<16x32xf32>, vector<32x256xf32>, vector<16x256xf32> -> vector<16x256xf32>
    %511 = arith.addf %508, %510 : vector<16x256xf32>
    %c0_90 = arith.constant 0 : index
    %c0_91 = arith.constant 0 : index
    %512 = vector.load %arg11[%c0_90, %c0_91] : memref<32x128xf32, #tpu.memory_space<vmem>>, vector<32x128xf32>
    %c0_92 = arith.constant 0 : index
    %c0_93 = arith.constant 0 : index
    %513 = vector.load %arg12[%c0_92, %c0_93] : memref<1x128xf32, #tpu.memory_space<vmem>>, vector<1x128xf32>
    %c0_94 = arith.constant 0 : index
    %c0_95 = arith.constant 0 : index
    %514 = vector.load %arg13[%c0_94, %c0_95] : memref<32x128xf32, #tpu.memory_space<vmem>>, vector<32x128xf32>
    %c0_96 = arith.constant 0 : index
    %c0_97 = arith.constant 0 : index
    %515 = vector.load %arg14[%c0_96, %c0_97] : memref<1x128xf32, #tpu.memory_space<vmem>>, vector<1x128xf32>
    %c0_98 = arith.constant 0 : index
    %c0_99 = arith.constant 0 : index
    %516 = vector.load %arg3[%c0_98, %c0_99] : memref<16x1xf32, #tpu.memory_space<vmem>>, vector<16x1xf32>
    %cst_100 = arith.constant 0.000000e+00 : f32
    %517 = vector.broadcast %cst_100 : f32 to vector<2x32xf32>
    %cst_101 = arith.constant 0xFF800000 : f32
    %518 = vector.broadcast %cst_101 : f32 to vector<2x32xf32>
    %cst_102 = arith.constant 0xFF800000 : f32
    %519 = vector.broadcast %cst_102 : f32 to vector<2x32xf32>
    %520 = vector.extract_strided_slice %516 {offsets = [0, 0], sizes = [2, 1], strides = [1, 1]} : vector<16x1xf32> to vector<2x1xf32>
    %521 = vector.extract_strided_slice %516 {offsets = [14, 0], sizes = [2, 1], strides = [1, 1]} : vector<16x1xf32> to vector<2x1xf32>
    %522 = vector.extract_strided_slice %511 {offsets = [0, 0], sizes = [2, 128], strides = [1, 1]} : vector<16x256xf32> to vector<2x128xf32>
    %cst_103 = arith.constant dense<0.000000e+00> : vector<2x128xf32>
    %523 = tpu.matmul %517, %512, %cst_103 {dimension_numbers = #tpu.dot_dimension_numbers<[1], [0], [0], [1], [0, 0, 1, 1], [], []>} : vector<2x32xf32>, vector<32x128xf32>, vector<2x128xf32> -> vector<2x128xf32>
    %524 = arith.addf %522, %523 : vector<2x128xf32>
    %525 = vector.broadcast %513 : vector<1x128xf32> to vector<2x128xf32>
    %526 = arith.addf %524, %525 : vector<2x128xf32>
    %527 = vector.extract_strided_slice %526 {offsets = [0, 0], sizes = [2, 32], strides = [1, 1]} : vector<2x128xf32> to vector<2x32xf32>
    %528 = arith.negf %527 : vector<2x32xf32>
    %529 = math.exp %528 : vector<2x32xf32>
    %cst_104 = arith.constant 1.000000e+00 : f32
    %530 = vector.broadcast %cst_104 : f32 to vector<2x32xf32>
    %531 = arith.addf %530, %529 : vector<2x32xf32>
    %532 = arith.divf %530, %531 : vector<2x32xf32>
    %533 = vector.extract_strided_slice %526 {offsets = [0, 32], sizes = [2, 32], strides = [1, 1]} : vector<2x128xf32> to vector<2x32xf32>
    %534 = arith.negf %533 : vector<2x32xf32>
    %535 = math.exp %534 : vector<2x32xf32>
    %cst_105 = arith.constant 1.000000e+00 : f32
    %536 = vector.broadcast %cst_105 : f32 to vector<2x32xf32>
    %537 = arith.addf %536, %535 : vector<2x32xf32>
    %538 = arith.divf %536, %537 : vector<2x32xf32>
    %539 = vector.extract_strided_slice %526 {offsets = [0, 64], sizes = [2, 32], strides = [1, 1]} : vector<2x128xf32> to vector<2x32xf32>
    %540 = math.tanh %539 : vector<2x32xf32>
    %541 = vector.extract_strided_slice %526 {offsets = [0, 96], sizes = [2, 32], strides = [1, 1]} : vector<2x128xf32> to vector<2x32xf32>
    %542 = arith.negf %541 : vector<2x32xf32>
    %543 = math.exp %542 : vector<2x32xf32>
    %cst_106 = arith.constant 1.000000e+00 : f32
    %544 = vector.broadcast %cst_106 : f32 to vector<2x32xf32>
    %545 = arith.addf %544, %543 : vector<2x32xf32>
    %546 = arith.divf %544, %545 : vector<2x32xf32>
    %547 = arith.mulf %538, %517 : vector<2x32xf32>
    %548 = arith.mulf %532, %540 : vector<2x32xf32>
    %549 = arith.addf %547, %548 : vector<2x32xf32>
    %550 = math.tanh %549 : vector<2x32xf32>
    %551 = arith.mulf %546, %550 : vector<2x32xf32>
    %552 = vector.extract_strided_slice %511 {offsets = [14, 128], sizes = [2, 128], strides = [1, 1]} : vector<16x256xf32> to vector<2x128xf32>
    %cst_107 = arith.constant dense<0.000000e+00> : vector<2x128xf32>
    %553 = tpu.matmul %517, %514, %cst_107 {dimension_numbers = #tpu.dot_dimension_numbers<[1], [0], [0], [1], [0, 0, 1, 1], [], []>} : vector<2x32xf32>, vector<32x128xf32>, vector<2x128xf32> -> vector<2x128xf32>
    %554 = arith.addf %552, %553 : vector<2x128xf32>
    %555 = vector.broadcast %515 : vector<1x128xf32> to vector<2x128xf32>
    %556 = arith.addf %554, %555 : vector<2x128xf32>
    %557 = vector.extract_strided_slice %556 {offsets = [0, 0], sizes = [2, 32], strides = [1, 1]} : vector<2x128xf32> to vector<2x32xf32>
    %558 = arith.negf %557 : vector<2x32xf32>
    %559 = math.exp %558 : vector<2x32xf32>
    %cst_108 = arith.constant 1.000000e+00 : f32
    %560 = vector.broadcast %cst_108 : f32 to vector<2x32xf32>
    %561 = arith.addf %560, %559 : vector<2x32xf32>
    %562 = arith.divf %560, %561 : vector<2x32xf32>
    %563 = vector.extract_strided_slice %556 {offsets = [0, 32], sizes = [2, 32], strides = [1, 1]} : vector<2x128xf32> to vector<2x32xf32>
    %564 = arith.negf %563 : vector<2x32xf32>
    %565 = math.exp %564 : vector<2x32xf32>
    %cst_109 = arith.constant 1.000000e+00 : f32
    %566 = vector.broadcast %cst_109 : f32 to vector<2x32xf32>
    %567 = arith.addf %566, %565 : vector<2x32xf32>
    %568 = arith.divf %566, %567 : vector<2x32xf32>
    %569 = vector.extract_strided_slice %556 {offsets = [0, 64], sizes = [2, 32], strides = [1, 1]} : vector<2x128xf32> to vector<2x32xf32>
    %570 = math.tanh %569 : vector<2x32xf32>
    %571 = vector.extract_strided_slice %556 {offsets = [0, 96], sizes = [2, 32], strides = [1, 1]} : vector<2x128xf32> to vector<2x32xf32>
    %572 = arith.negf %571 : vector<2x32xf32>
    %573 = math.exp %572 : vector<2x32xf32>
    %cst_110 = arith.constant 1.000000e+00 : f32
    %574 = vector.broadcast %cst_110 : f32 to vector<2x32xf32>
    %575 = arith.addf %574, %573 : vector<2x32xf32>
    %576 = arith.divf %574, %575 : vector<2x32xf32>
    %577 = arith.mulf %568, %517 : vector<2x32xf32>
    %578 = arith.mulf %562, %570 : vector<2x32xf32>
    %579 = arith.addf %577, %578 : vector<2x32xf32>
    %580 = math.tanh %579 : vector<2x32xf32>
    %581 = arith.mulf %576, %580 : vector<2x32xf32>
    %582 = vector.broadcast %520 : vector<2x1xf32> to vector<2x32xf32>
    %583 = arith.mulf %551, %582 : vector<2x32xf32>
    %584 = vector.broadcast %520 : vector<2x1xf32> to vector<2x32xf32>
    %585 = arith.mulf %549, %584 : vector<2x32xf32>
    %586 = vector.broadcast %521 : vector<2x1xf32> to vector<2x32xf32>
    %587 = arith.mulf %581, %586 : vector<2x32xf32>
    %588 = vector.broadcast %521 : vector<2x1xf32> to vector<2x32xf32>
    %589 = arith.mulf %579, %588 : vector<2x32xf32>
    %cst_111 = arith.constant 1.000000e+00 : f32
    %590 = vector.broadcast %cst_111 : f32 to vector<2x1xf32>
    %591 = arith.subf %520, %590 : vector<2x1xf32>
    %cst_112 = arith.constant 1.000000e+06 : f32
    %592 = vector.broadcast %cst_112 : f32 to vector<2x1xf32>
    %593 = arith.mulf %591, %592 : vector<2x1xf32>
    %594 = vector.broadcast %593 : vector<2x1xf32> to vector<2x32xf32>
    %595 = arith.addf %583, %594 : vector<2x32xf32>
    %596 = arith.maximumf %518, %595 : vector<2x32xf32>
    %cst_113 = arith.constant 1.000000e+00 : f32
    %597 = vector.broadcast %cst_113 : f32 to vector<2x1xf32>
    %598 = arith.subf %521, %597 : vector<2x1xf32>
    %cst_114 = arith.constant 1.000000e+06 : f32
    %599 = vector.broadcast %cst_114 : f32 to vector<2x1xf32>
    %600 = arith.mulf %598, %599 : vector<2x1xf32>
    %601 = vector.broadcast %600 : vector<2x1xf32> to vector<2x32xf32>
    %602 = arith.addf %587, %601 : vector<2x32xf32>
    %603 = arith.maximumf %519, %602 : vector<2x32xf32>
    %604 = vector.extract_strided_slice %516 {offsets = [2, 0], sizes = [2, 1], strides = [1, 1]} : vector<16x1xf32> to vector<2x1xf32>
    %605 = vector.extract_strided_slice %516 {offsets = [12, 0], sizes = [2, 1], strides = [1, 1]} : vector<16x1xf32> to vector<2x1xf32>
    %606 = vector.extract_strided_slice %511 {offsets = [2, 0], sizes = [2, 128], strides = [1, 1]} : vector<16x256xf32> to vector<2x128xf32>
    %cst_115 = arith.constant dense<0.000000e+00> : vector<2x128xf32>
    %607 = tpu.matmul %583, %512, %cst_115 {dimension_numbers = #tpu.dot_dimension_numbers<[1], [0], [0], [1], [0, 0, 1, 1], [], []>} : vector<2x32xf32>, vector<32x128xf32>, vector<2x128xf32> -> vector<2x128xf32>
    %608 = arith.addf %606, %607 : vector<2x128xf32>
    %609 = vector.broadcast %513 : vector<1x128xf32> to vector<2x128xf32>
    %610 = arith.addf %608, %609 : vector<2x128xf32>
    %611 = vector.extract_strided_slice %610 {offsets = [0, 0], sizes = [2, 32], strides = [1, 1]} : vector<2x128xf32> to vector<2x32xf32>
    %612 = arith.negf %611 : vector<2x32xf32>
    %613 = math.exp %612 : vector<2x32xf32>
    %cst_116 = arith.constant 1.000000e+00 : f32
    %614 = vector.broadcast %cst_116 : f32 to vector<2x32xf32>
    %615 = arith.addf %614, %613 : vector<2x32xf32>
    %616 = arith.divf %614, %615 : vector<2x32xf32>
    %617 = vector.extract_strided_slice %610 {offsets = [0, 32], sizes = [2, 32], strides = [1, 1]} : vector<2x128xf32> to vector<2x32xf32>
    %618 = arith.negf %617 : vector<2x32xf32>
    %619 = math.exp %618 : vector<2x32xf32>
    %cst_117 = arith.constant 1.000000e+00 : f32
    %620 = vector.broadcast %cst_117 : f32 to vector<2x32xf32>
    %621 = arith.addf %620, %619 : vector<2x32xf32>
    %622 = arith.divf %620, %621 : vector<2x32xf32>
    %623 = vector.extract_strided_slice %610 {offsets = [0, 64], sizes = [2, 32], strides = [1, 1]} : vector<2x128xf32> to vector<2x32xf32>
    %624 = math.tanh %623 : vector<2x32xf32>
    %625 = vector.extract_strided_slice %610 {offsets = [0, 96], sizes = [2, 32], strides = [1, 1]} : vector<2x128xf32> to vector<2x32xf32>
    %626 = arith.negf %625 : vector<2x32xf32>
    %627 = math.exp %626 : vector<2x32xf32>
    %cst_118 = arith.constant 1.000000e+00 : f32
    %628 = vector.broadcast %cst_118 : f32 to vector<2x32xf32>
    %629 = arith.addf %628, %627 : vector<2x32xf32>
    %630 = arith.divf %628, %629 : vector<2x32xf32>
    %631 = arith.mulf %622, %585 : vector<2x32xf32>
    %632 = arith.mulf %616, %624 : vector<2x32xf32>
    %633 = arith.addf %631, %632 : vector<2x32xf32>
    %634 = math.tanh %633 : vector<2x32xf32>
    %635 = arith.mulf %630, %634 : vector<2x32xf32>
    %636 = vector.extract_strided_slice %511 {offsets = [12, 128], sizes = [2, 128], strides = [1, 1]} : vector<16x256xf32> to vector<2x128xf32>
    %cst_119 = arith.constant dense<0.000000e+00> : vector<2x128xf32>
    %637 = tpu.matmul %587, %514, %cst_119 {dimension_numbers = #tpu.dot_dimension_numbers<[1], [0], [0], [1], [0, 0, 1, 1], [], []>} : vector<2x32xf32>, vector<32x128xf32>, vector<2x128xf32> -> vector<2x128xf32>
    %638 = arith.addf %636, %637 : vector<2x128xf32>
    %639 = vector.broadcast %515 : vector<1x128xf32> to vector<2x128xf32>
    %640 = arith.addf %638, %639 : vector<2x128xf32>
    %641 = vector.extract_strided_slice %640 {offsets = [0, 0], sizes = [2, 32], strides = [1, 1]} : vector<2x128xf32> to vector<2x32xf32>
    %642 = arith.negf %641 : vector<2x32xf32>
    %643 = math.exp %642 : vector<2x32xf32>
    %cst_120 = arith.constant 1.000000e+00 : f32
    %644 = vector.broadcast %cst_120 : f32 to vector<2x32xf32>
    %645 = arith.addf %644, %643 : vector<2x32xf32>
    %646 = arith.divf %644, %645 : vector<2x32xf32>
    %647 = vector.extract_strided_slice %640 {offsets = [0, 32], sizes = [2, 32], strides = [1, 1]} : vector<2x128xf32> to vector<2x32xf32>
    %648 = arith.negf %647 : vector<2x32xf32>
    %649 = math.exp %648 : vector<2x32xf32>
    %cst_121 = arith.constant 1.000000e+00 : f32
    %650 = vector.broadcast %cst_121 : f32 to vector<2x32xf32>
    %651 = arith.addf %650, %649 : vector<2x32xf32>
    %652 = arith.divf %650, %651 : vector<2x32xf32>
    %653 = vector.extract_strided_slice %640 {offsets = [0, 64], sizes = [2, 32], strides = [1, 1]} : vector<2x128xf32> to vector<2x32xf32>
    %654 = math.tanh %653 : vector<2x32xf32>
    %655 = vector.extract_strided_slice %640 {offsets = [0, 96], sizes = [2, 32], strides = [1, 1]} : vector<2x128xf32> to vector<2x32xf32>
    %656 = arith.negf %655 : vector<2x32xf32>
    %657 = math.exp %656 : vector<2x32xf32>
    %cst_122 = arith.constant 1.000000e+00 : f32
    %658 = vector.broadcast %cst_122 : f32 to vector<2x32xf32>
    %659 = arith.addf %658, %657 : vector<2x32xf32>
    %660 = arith.divf %658, %659 : vector<2x32xf32>
    %661 = arith.mulf %652, %589 : vector<2x32xf32>
    %662 = arith.mulf %646, %654 : vector<2x32xf32>
    %663 = arith.addf %661, %662 : vector<2x32xf32>
    %664 = math.tanh %663 : vector<2x32xf32>
    %665 = arith.mulf %660, %664 : vector<2x32xf32>
    %666 = vector.broadcast %604 : vector<2x1xf32> to vector<2x32xf32>
    %667 = arith.mulf %635, %666 : vector<2x32xf32>
    %668 = vector.broadcast %604 : vector<2x1xf32> to vector<2x32xf32>
    %669 = arith.mulf %633, %668 : vector<2x32xf32>
    %670 = vector.broadcast %605 : vector<2x1xf32> to vector<2x32xf32>
    %671 = arith.mulf %665, %670 : vector<2x32xf32>
    %672 = vector.broadcast %605 : vector<2x1xf32> to vector<2x32xf32>
    %673 = arith.mulf %663, %672 : vector<2x32xf32>
    %cst_123 = arith.constant 1.000000e+00 : f32
    %674 = vector.broadcast %cst_123 : f32 to vector<2x1xf32>
    %675 = arith.subf %604, %674 : vector<2x1xf32>
    %cst_124 = arith.constant 1.000000e+06 : f32
    %676 = vector.broadcast %cst_124 : f32 to vector<2x1xf32>
    %677 = arith.mulf %675, %676 : vector<2x1xf32>
    %678 = vector.broadcast %677 : vector<2x1xf32> to vector<2x32xf32>
    %679 = arith.addf %667, %678 : vector<2x32xf32>
    %680 = arith.maximumf %596, %679 : vector<2x32xf32>
    %cst_125 = arith.constant 1.000000e+00 : f32
    %681 = vector.broadcast %cst_125 : f32 to vector<2x1xf32>
    %682 = arith.subf %605, %681 : vector<2x1xf32>
    %cst_126 = arith.constant 1.000000e+06 : f32
    %683 = vector.broadcast %cst_126 : f32 to vector<2x1xf32>
    %684 = arith.mulf %682, %683 : vector<2x1xf32>
    %685 = vector.broadcast %684 : vector<2x1xf32> to vector<2x32xf32>
    %686 = arith.addf %671, %685 : vector<2x32xf32>
    %687 = arith.maximumf %603, %686 : vector<2x32xf32>
    %688 = vector.extract_strided_slice %516 {offsets = [4, 0], sizes = [2, 1], strides = [1, 1]} : vector<16x1xf32> to vector<2x1xf32>
    %689 = vector.extract_strided_slice %516 {offsets = [10, 0], sizes = [2, 1], strides = [1, 1]} : vector<16x1xf32> to vector<2x1xf32>
    %690 = vector.extract_strided_slice %511 {offsets = [4, 0], sizes = [2, 128], strides = [1, 1]} : vector<16x256xf32> to vector<2x128xf32>
    %cst_127 = arith.constant dense<0.000000e+00> : vector<2x128xf32>
    %691 = tpu.matmul %667, %512, %cst_127 {dimension_numbers = #tpu.dot_dimension_numbers<[1], [0], [0], [1], [0, 0, 1, 1], [], []>} : vector<2x32xf32>, vector<32x128xf32>, vector<2x128xf32> -> vector<2x128xf32>
    %692 = arith.addf %690, %691 : vector<2x128xf32>
    %693 = vector.broadcast %513 : vector<1x128xf32> to vector<2x128xf32>
    %694 = arith.addf %692, %693 : vector<2x128xf32>
    %695 = vector.extract_strided_slice %694 {offsets = [0, 0], sizes = [2, 32], strides = [1, 1]} : vector<2x128xf32> to vector<2x32xf32>
    %696 = arith.negf %695 : vector<2x32xf32>
    %697 = math.exp %696 : vector<2x32xf32>
    %cst_128 = arith.constant 1.000000e+00 : f32
    %698 = vector.broadcast %cst_128 : f32 to vector<2x32xf32>
    %699 = arith.addf %698, %697 : vector<2x32xf32>
    %700 = arith.divf %698, %699 : vector<2x32xf32>
    %701 = vector.extract_strided_slice %694 {offsets = [0, 32], sizes = [2, 32], strides = [1, 1]} : vector<2x128xf32> to vector<2x32xf32>
    %702 = arith.negf %701 : vector<2x32xf32>
    %703 = math.exp %702 : vector<2x32xf32>
    %cst_129 = arith.constant 1.000000e+00 : f32
    %704 = vector.broadcast %cst_129 : f32 to vector<2x32xf32>
    %705 = arith.addf %704, %703 : vector<2x32xf32>
    %706 = arith.divf %704, %705 : vector<2x32xf32>
    %707 = vector.extract_strided_slice %694 {offsets = [0, 64], sizes = [2, 32], strides = [1, 1]} : vector<2x128xf32> to vector<2x32xf32>
    %708 = math.tanh %707 : vector<2x32xf32>
    %709 = vector.extract_strided_slice %694 {offsets = [0, 96], sizes = [2, 32], strides = [1, 1]} : vector<2x128xf32> to vector<2x32xf32>
    %710 = arith.negf %709 : vector<2x32xf32>
    %711 = math.exp %710 : vector<2x32xf32>
    %cst_130 = arith.constant 1.000000e+00 : f32
    %712 = vector.broadcast %cst_130 : f32 to vector<2x32xf32>
    %713 = arith.addf %712, %711 : vector<2x32xf32>
    %714 = arith.divf %712, %713 : vector<2x32xf32>
    %715 = arith.mulf %706, %669 : vector<2x32xf32>
    %716 = arith.mulf %700, %708 : vector<2x32xf32>
    %717 = arith.addf %715, %716 : vector<2x32xf32>
    %718 = math.tanh %717 : vector<2x32xf32>
    %719 = arith.mulf %714, %718 : vector<2x32xf32>
    %720 = vector.extract_strided_slice %511 {offsets = [10, 128], sizes = [2, 128], strides = [1, 1]} : vector<16x256xf32> to vector<2x128xf32>
    %cst_131 = arith.constant dense<0.000000e+00> : vector<2x128xf32>
    %721 = tpu.matmul %671, %514, %cst_131 {dimension_numbers = #tpu.dot_dimension_numbers<[1], [0], [0], [1], [0, 0, 1, 1], [], []>} : vector<2x32xf32>, vector<32x128xf32>, vector<2x128xf32> -> vector<2x128xf32>
    %722 = arith.addf %720, %721 : vector<2x128xf32>
    %723 = vector.broadcast %515 : vector<1x128xf32> to vector<2x128xf32>
    %724 = arith.addf %722, %723 : vector<2x128xf32>
    %725 = vector.extract_strided_slice %724 {offsets = [0, 0], sizes = [2, 32], strides = [1, 1]} : vector<2x128xf32> to vector<2x32xf32>
    %726 = arith.negf %725 : vector<2x32xf32>
    %727 = math.exp %726 : vector<2x32xf32>
    %cst_132 = arith.constant 1.000000e+00 : f32
    %728 = vector.broadcast %cst_132 : f32 to vector<2x32xf32>
    %729 = arith.addf %728, %727 : vector<2x32xf32>
    %730 = arith.divf %728, %729 : vector<2x32xf32>
    %731 = vector.extract_strided_slice %724 {offsets = [0, 32], sizes = [2, 32], strides = [1, 1]} : vector<2x128xf32> to vector<2x32xf32>
    %732 = arith.negf %731 : vector<2x32xf32>
    %733 = math.exp %732 : vector<2x32xf32>
    %cst_133 = arith.constant 1.000000e+00 : f32
    %734 = vector.broadcast %cst_133 : f32 to vector<2x32xf32>
    %735 = arith.addf %734, %733 : vector<2x32xf32>
    %736 = arith.divf %734, %735 : vector<2x32xf32>
    %737 = vector.extract_strided_slice %724 {offsets = [0, 64], sizes = [2, 32], strides = [1, 1]} : vector<2x128xf32> to vector<2x32xf32>
    %738 = math.tanh %737 : vector<2x32xf32>
    %739 = vector.extract_strided_slice %724 {offsets = [0, 96], sizes = [2, 32], strides = [1, 1]} : vector<2x128xf32> to vector<2x32xf32>
    %740 = arith.negf %739 : vector<2x32xf32>
    %741 = math.exp %740 : vector<2x32xf32>
    %cst_134 = arith.constant 1.000000e+00 : f32
    %742 = vector.broadcast %cst_134 : f32 to vector<2x32xf32>
    %743 = arith.addf %742, %741 : vector<2x32xf32>
    %744 = arith.divf %742, %743 : vector<2x32xf32>
    %745 = arith.mulf %736, %673 : vector<2x32xf32>
    %746 = arith.mulf %730, %738 : vector<2x32xf32>
    %747 = arith.addf %745, %746 : vector<2x32xf32>
    %748 = math.tanh %747 : vector<2x32xf32>
    %749 = arith.mulf %744, %748 : vector<2x32xf32>
    %750 = vector.broadcast %688 : vector<2x1xf32> to vector<2x32xf32>
    %751 = arith.mulf %719, %750 : vector<2x32xf32>
    %752 = vector.broadcast %688 : vector<2x1xf32> to vector<2x32xf32>
    %753 = arith.mulf %717, %752 : vector<2x32xf32>
    %754 = vector.broadcast %689 : vector<2x1xf32> to vector<2x32xf32>
    %755 = arith.mulf %749, %754 : vector<2x32xf32>
    %756 = vector.broadcast %689 : vector<2x1xf32> to vector<2x32xf32>
    %757 = arith.mulf %747, %756 : vector<2x32xf32>
    %cst_135 = arith.constant 1.000000e+00 : f32
    %758 = vector.broadcast %cst_135 : f32 to vector<2x1xf32>
    %759 = arith.subf %688, %758 : vector<2x1xf32>
    %cst_136 = arith.constant 1.000000e+06 : f32
    %760 = vector.broadcast %cst_136 : f32 to vector<2x1xf32>
    %761 = arith.mulf %759, %760 : vector<2x1xf32>
    %762 = vector.broadcast %761 : vector<2x1xf32> to vector<2x32xf32>
    %763 = arith.addf %751, %762 : vector<2x32xf32>
    %764 = arith.maximumf %680, %763 : vector<2x32xf32>
    %cst_137 = arith.constant 1.000000e+00 : f32
    %765 = vector.broadcast %cst_137 : f32 to vector<2x1xf32>
    %766 = arith.subf %689, %765 : vector<2x1xf32>
    %cst_138 = arith.constant 1.000000e+06 : f32
    %767 = vector.broadcast %cst_138 : f32 to vector<2x1xf32>
    %768 = arith.mulf %766, %767 : vector<2x1xf32>
    %769 = vector.broadcast %768 : vector<2x1xf32> to vector<2x32xf32>
    %770 = arith.addf %755, %769 : vector<2x32xf32>
    %771 = arith.maximumf %687, %770 : vector<2x32xf32>
    %772 = vector.extract_strided_slice %516 {offsets = [6, 0], sizes = [2, 1], strides = [1, 1]} : vector<16x1xf32> to vector<2x1xf32>
    %773 = vector.extract_strided_slice %516 {offsets = [8, 0], sizes = [2, 1], strides = [1, 1]} : vector<16x1xf32> to vector<2x1xf32>
    %774 = vector.extract_strided_slice %511 {offsets = [6, 0], sizes = [2, 128], strides = [1, 1]} : vector<16x256xf32> to vector<2x128xf32>
    %cst_139 = arith.constant dense<0.000000e+00> : vector<2x128xf32>
    %775 = tpu.matmul %751, %512, %cst_139 {dimension_numbers = #tpu.dot_dimension_numbers<[1], [0], [0], [1], [0, 0, 1, 1], [], []>} : vector<2x32xf32>, vector<32x128xf32>, vector<2x128xf32> -> vector<2x128xf32>
    %776 = arith.addf %774, %775 : vector<2x128xf32>
    %777 = vector.broadcast %513 : vector<1x128xf32> to vector<2x128xf32>
    %778 = arith.addf %776, %777 : vector<2x128xf32>
    %779 = vector.extract_strided_slice %778 {offsets = [0, 0], sizes = [2, 32], strides = [1, 1]} : vector<2x128xf32> to vector<2x32xf32>
    %780 = arith.negf %779 : vector<2x32xf32>
    %781 = math.exp %780 : vector<2x32xf32>
    %cst_140 = arith.constant 1.000000e+00 : f32
    %782 = vector.broadcast %cst_140 : f32 to vector<2x32xf32>
    %783 = arith.addf %782, %781 : vector<2x32xf32>
    %784 = arith.divf %782, %783 : vector<2x32xf32>
    %785 = vector.extract_strided_slice %778 {offsets = [0, 32], sizes = [2, 32], strides = [1, 1]} : vector<2x128xf32> to vector<2x32xf32>
    %786 = arith.negf %785 : vector<2x32xf32>
    %787 = math.exp %786 : vector<2x32xf32>
    %cst_141 = arith.constant 1.000000e+00 : f32
    %788 = vector.broadcast %cst_141 : f32 to vector<2x32xf32>
    %789 = arith.addf %788, %787 : vector<2x32xf32>
    %790 = arith.divf %788, %789 : vector<2x32xf32>
    %791 = vector.extract_strided_slice %778 {offsets = [0, 64], sizes = [2, 32], strides = [1, 1]} : vector<2x128xf32> to vector<2x32xf32>
    %792 = math.tanh %791 : vector<2x32xf32>
    %793 = vector.extract_strided_slice %778 {offsets = [0, 96], sizes = [2, 32], strides = [1, 1]} : vector<2x128xf32> to vector<2x32xf32>
    %794 = arith.negf %793 : vector<2x32xf32>
    %795 = math.exp %794 : vector<2x32xf32>
    %cst_142 = arith.constant 1.000000e+00 : f32
    %796 = vector.broadcast %cst_142 : f32 to vector<2x32xf32>
    %797 = arith.addf %796, %795 : vector<2x32xf32>
    %798 = arith.divf %796, %797 : vector<2x32xf32>
    %799 = arith.mulf %790, %753 : vector<2x32xf32>
    %800 = arith.mulf %784, %792 : vector<2x32xf32>
    %801 = arith.addf %799, %800 : vector<2x32xf32>
    %802 = math.tanh %801 : vector<2x32xf32>
    %803 = arith.mulf %798, %802 : vector<2x32xf32>
    %804 = vector.extract_strided_slice %511 {offsets = [8, 128], sizes = [2, 128], strides = [1, 1]} : vector<16x256xf32> to vector<2x128xf32>
    %cst_143 = arith.constant dense<0.000000e+00> : vector<2x128xf32>
    %805 = tpu.matmul %755, %514, %cst_143 {dimension_numbers = #tpu.dot_dimension_numbers<[1], [0], [0], [1], [0, 0, 1, 1], [], []>} : vector<2x32xf32>, vector<32x128xf32>, vector<2x128xf32> -> vector<2x128xf32>
    %806 = arith.addf %804, %805 : vector<2x128xf32>
    %807 = vector.broadcast %515 : vector<1x128xf32> to vector<2x128xf32>
    %808 = arith.addf %806, %807 : vector<2x128xf32>
    %809 = vector.extract_strided_slice %808 {offsets = [0, 0], sizes = [2, 32], strides = [1, 1]} : vector<2x128xf32> to vector<2x32xf32>
    %810 = arith.negf %809 : vector<2x32xf32>
    %811 = math.exp %810 : vector<2x32xf32>
    %cst_144 = arith.constant 1.000000e+00 : f32
    %812 = vector.broadcast %cst_144 : f32 to vector<2x32xf32>
    %813 = arith.addf %812, %811 : vector<2x32xf32>
    %814 = arith.divf %812, %813 : vector<2x32xf32>
    %815 = vector.extract_strided_slice %808 {offsets = [0, 32], sizes = [2, 32], strides = [1, 1]} : vector<2x128xf32> to vector<2x32xf32>
    %816 = arith.negf %815 : vector<2x32xf32>
    %817 = math.exp %816 : vector<2x32xf32>
    %cst_145 = arith.constant 1.000000e+00 : f32
    %818 = vector.broadcast %cst_145 : f32 to vector<2x32xf32>
    %819 = arith.addf %818, %817 : vector<2x32xf32>
    %820 = arith.divf %818, %819 : vector<2x32xf32>
    %821 = vector.extract_strided_slice %808 {offsets = [0, 64], sizes = [2, 32], strides = [1, 1]} : vector<2x128xf32> to vector<2x32xf32>
    %822 = math.tanh %821 : vector<2x32xf32>
    %823 = vector.extract_strided_slice %808 {offsets = [0, 96], sizes = [2, 32], strides = [1, 1]} : vector<2x128xf32> to vector<2x32xf32>
    %824 = arith.negf %823 : vector<2x32xf32>
    %825 = math.exp %824 : vector<2x32xf32>
    %cst_146 = arith.constant 1.000000e+00 : f32
    %826 = vector.broadcast %cst_146 : f32 to vector<2x32xf32>
    %827 = arith.addf %826, %825 : vector<2x32xf32>
    %828 = arith.divf %826, %827 : vector<2x32xf32>
    %829 = arith.mulf %820, %757 : vector<2x32xf32>
    %830 = arith.mulf %814, %822 : vector<2x32xf32>
    %831 = arith.addf %829, %830 : vector<2x32xf32>
    %832 = math.tanh %831 : vector<2x32xf32>
    %833 = arith.mulf %828, %832 : vector<2x32xf32>
    %834 = vector.broadcast %772 : vector<2x1xf32> to vector<2x32xf32>
    %835 = arith.mulf %803, %834 : vector<2x32xf32>
    %836 = vector.broadcast %772 : vector<2x1xf32> to vector<2x32xf32>
    %837 = arith.mulf %801, %836 : vector<2x32xf32>
    %838 = vector.broadcast %773 : vector<2x1xf32> to vector<2x32xf32>
    %839 = arith.mulf %833, %838 : vector<2x32xf32>
    %840 = vector.broadcast %773 : vector<2x1xf32> to vector<2x32xf32>
    %841 = arith.mulf %831, %840 : vector<2x32xf32>
    %cst_147 = arith.constant 1.000000e+00 : f32
    %842 = vector.broadcast %cst_147 : f32 to vector<2x1xf32>
    %843 = arith.subf %772, %842 : vector<2x1xf32>
    %cst_148 = arith.constant 1.000000e+06 : f32
    %844 = vector.broadcast %cst_148 : f32 to vector<2x1xf32>
    %845 = arith.mulf %843, %844 : vector<2x1xf32>
    %846 = vector.broadcast %845 : vector<2x1xf32> to vector<2x32xf32>
    %847 = arith.addf %835, %846 : vector<2x32xf32>
    %848 = arith.maximumf %764, %847 : vector<2x32xf32>
    %cst_149 = arith.constant 1.000000e+00 : f32
    %849 = vector.broadcast %cst_149 : f32 to vector<2x1xf32>
    %850 = arith.subf %773, %849 : vector<2x1xf32>
    %cst_150 = arith.constant 1.000000e+06 : f32
    %851 = vector.broadcast %cst_150 : f32 to vector<2x1xf32>
    %852 = arith.mulf %850, %851 : vector<2x1xf32>
    %853 = vector.broadcast %852 : vector<2x1xf32> to vector<2x32xf32>
    %854 = arith.addf %839, %853 : vector<2x32xf32>
    %855 = arith.maximumf %771, %854 : vector<2x32xf32>
    %856 = vector.extract_strided_slice %516 {offsets = [8, 0], sizes = [2, 1], strides = [1, 1]} : vector<16x1xf32> to vector<2x1xf32>
    %857 = vector.extract_strided_slice %516 {offsets = [6, 0], sizes = [2, 1], strides = [1, 1]} : vector<16x1xf32> to vector<2x1xf32>
    %858 = vector.extract_strided_slice %511 {offsets = [8, 0], sizes = [2, 128], strides = [1, 1]} : vector<16x256xf32> to vector<2x128xf32>
    %cst_151 = arith.constant dense<0.000000e+00> : vector<2x128xf32>
    %859 = tpu.matmul %835, %512, %cst_151 {dimension_numbers = #tpu.dot_dimension_numbers<[1], [0], [0], [1], [0, 0, 1, 1], [], []>} : vector<2x32xf32>, vector<32x128xf32>, vector<2x128xf32> -> vector<2x128xf32>
    %860 = arith.addf %858, %859 : vector<2x128xf32>
    %861 = vector.broadcast %513 : vector<1x128xf32> to vector<2x128xf32>
    %862 = arith.addf %860, %861 : vector<2x128xf32>
    %863 = vector.extract_strided_slice %862 {offsets = [0, 0], sizes = [2, 32], strides = [1, 1]} : vector<2x128xf32> to vector<2x32xf32>
    %864 = arith.negf %863 : vector<2x32xf32>
    %865 = math.exp %864 : vector<2x32xf32>
    %cst_152 = arith.constant 1.000000e+00 : f32
    %866 = vector.broadcast %cst_152 : f32 to vector<2x32xf32>
    %867 = arith.addf %866, %865 : vector<2x32xf32>
    %868 = arith.divf %866, %867 : vector<2x32xf32>
    %869 = vector.extract_strided_slice %862 {offsets = [0, 32], sizes = [2, 32], strides = [1, 1]} : vector<2x128xf32> to vector<2x32xf32>
    %870 = arith.negf %869 : vector<2x32xf32>
    %871 = math.exp %870 : vector<2x32xf32>
    %cst_153 = arith.constant 1.000000e+00 : f32
    %872 = vector.broadcast %cst_153 : f32 to vector<2x32xf32>
    %873 = arith.addf %872, %871 : vector<2x32xf32>
    %874 = arith.divf %872, %873 : vector<2x32xf32>
    %875 = vector.extract_strided_slice %862 {offsets = [0, 64], sizes = [2, 32], strides = [1, 1]} : vector<2x128xf32> to vector<2x32xf32>
    %876 = math.tanh %875 : vector<2x32xf32>
    %877 = vector.extract_strided_slice %862 {offsets = [0, 96], sizes = [2, 32], strides = [1, 1]} : vector<2x128xf32> to vector<2x32xf32>
    %878 = arith.negf %877 : vector<2x32xf32>
    %879 = math.exp %878 : vector<2x32xf32>
    %cst_154 = arith.constant 1.000000e+00 : f32
    %880 = vector.broadcast %cst_154 : f32 to vector<2x32xf32>
    %881 = arith.addf %880, %879 : vector<2x32xf32>
    %882 = arith.divf %880, %881 : vector<2x32xf32>
    %883 = arith.mulf %874, %837 : vector<2x32xf32>
    %884 = arith.mulf %868, %876 : vector<2x32xf32>
    %885 = arith.addf %883, %884 : vector<2x32xf32>
    %886 = math.tanh %885 : vector<2x32xf32>
    %887 = arith.mulf %882, %886 : vector<2x32xf32>
    %888 = vector.extract_strided_slice %511 {offsets = [6, 128], sizes = [2, 128], strides = [1, 1]} : vector<16x256xf32> to vector<2x128xf32>
    %cst_155 = arith.constant dense<0.000000e+00> : vector<2x128xf32>
    %889 = tpu.matmul %839, %514, %cst_155 {dimension_numbers = #tpu.dot_dimension_numbers<[1], [0], [0], [1], [0, 0, 1, 1], [], []>} : vector<2x32xf32>, vector<32x128xf32>, vector<2x128xf32> -> vector<2x128xf32>
    %890 = arith.addf %888, %889 : vector<2x128xf32>
    %891 = vector.broadcast %515 : vector<1x128xf32> to vector<2x128xf32>
    %892 = arith.addf %890, %891 : vector<2x128xf32>
    %893 = vector.extract_strided_slice %892 {offsets = [0, 0], sizes = [2, 32], strides = [1, 1]} : vector<2x128xf32> to vector<2x32xf32>
    %894 = arith.negf %893 : vector<2x32xf32>
    %895 = math.exp %894 : vector<2x32xf32>
    %cst_156 = arith.constant 1.000000e+00 : f32
    %896 = vector.broadcast %cst_156 : f32 to vector<2x32xf32>
    %897 = arith.addf %896, %895 : vector<2x32xf32>
    %898 = arith.divf %896, %897 : vector<2x32xf32>
    %899 = vector.extract_strided_slice %892 {offsets = [0, 32], sizes = [2, 32], strides = [1, 1]} : vector<2x128xf32> to vector<2x32xf32>
    %900 = arith.negf %899 : vector<2x32xf32>
    %901 = math.exp %900 : vector<2x32xf32>
    %cst_157 = arith.constant 1.000000e+00 : f32
    %902 = vector.broadcast %cst_157 : f32 to vector<2x32xf32>
    %903 = arith.addf %902, %901 : vector<2x32xf32>
    %904 = arith.divf %902, %903 : vector<2x32xf32>
    %905 = vector.extract_strided_slice %892 {offsets = [0, 64], sizes = [2, 32], strides = [1, 1]} : vector<2x128xf32> to vector<2x32xf32>
    %906 = math.tanh %905 : vector<2x32xf32>
    %907 = vector.extract_strided_slice %892 {offsets = [0, 96], sizes = [2, 32], strides = [1, 1]} : vector<2x128xf32> to vector<2x32xf32>
    %908 = arith.negf %907 : vector<2x32xf32>
    %909 = math.exp %908 : vector<2x32xf32>
    %cst_158 = arith.constant 1.000000e+00 : f32
    %910 = vector.broadcast %cst_158 : f32 to vector<2x32xf32>
    %911 = arith.addf %910, %909 : vector<2x32xf32>
    %912 = arith.divf %910, %911 : vector<2x32xf32>
    %913 = arith.mulf %904, %841 : vector<2x32xf32>
    %914 = arith.mulf %898, %906 : vector<2x32xf32>
    %915 = arith.addf %913, %914 : vector<2x32xf32>
    %916 = math.tanh %915 : vector<2x32xf32>
    %917 = arith.mulf %912, %916 : vector<2x32xf32>
    %918 = vector.broadcast %856 : vector<2x1xf32> to vector<2x32xf32>
    %919 = arith.mulf %887, %918 : vector<2x32xf32>
    %920 = vector.broadcast %856 : vector<2x1xf32> to vector<2x32xf32>
    %921 = arith.mulf %885, %920 : vector<2x32xf32>
    %922 = vector.broadcast %857 : vector<2x1xf32> to vector<2x32xf32>
    %923 = arith.mulf %917, %922 : vector<2x32xf32>
    %924 = vector.broadcast %857 : vector<2x1xf32> to vector<2x32xf32>
    %925 = arith.mulf %915, %924 : vector<2x32xf32>
    %cst_159 = arith.constant 1.000000e+00 : f32
    %926 = vector.broadcast %cst_159 : f32 to vector<2x1xf32>
    %927 = arith.subf %856, %926 : vector<2x1xf32>
    %cst_160 = arith.constant 1.000000e+06 : f32
    %928 = vector.broadcast %cst_160 : f32 to vector<2x1xf32>
    %929 = arith.mulf %927, %928 : vector<2x1xf32>
    %930 = vector.broadcast %929 : vector<2x1xf32> to vector<2x32xf32>
    %931 = arith.addf %919, %930 : vector<2x32xf32>
    %932 = arith.maximumf %848, %931 : vector<2x32xf32>
    %cst_161 = arith.constant 1.000000e+00 : f32
    %933 = vector.broadcast %cst_161 : f32 to vector<2x1xf32>
    %934 = arith.subf %857, %933 : vector<2x1xf32>
    %cst_162 = arith.constant 1.000000e+06 : f32
    %935 = vector.broadcast %cst_162 : f32 to vector<2x1xf32>
    %936 = arith.mulf %934, %935 : vector<2x1xf32>
    %937 = vector.broadcast %936 : vector<2x1xf32> to vector<2x32xf32>
    %938 = arith.addf %923, %937 : vector<2x32xf32>
    %939 = arith.maximumf %855, %938 : vector<2x32xf32>
    %940 = vector.extract_strided_slice %516 {offsets = [10, 0], sizes = [2, 1], strides = [1, 1]} : vector<16x1xf32> to vector<2x1xf32>
    %941 = vector.extract_strided_slice %516 {offsets = [4, 0], sizes = [2, 1], strides = [1, 1]} : vector<16x1xf32> to vector<2x1xf32>
    %942 = vector.extract_strided_slice %511 {offsets = [10, 0], sizes = [2, 128], strides = [1, 1]} : vector<16x256xf32> to vector<2x128xf32>
    %cst_163 = arith.constant dense<0.000000e+00> : vector<2x128xf32>
    %943 = tpu.matmul %919, %512, %cst_163 {dimension_numbers = #tpu.dot_dimension_numbers<[1], [0], [0], [1], [0, 0, 1, 1], [], []>} : vector<2x32xf32>, vector<32x128xf32>, vector<2x128xf32> -> vector<2x128xf32>
    %944 = arith.addf %942, %943 : vector<2x128xf32>
    %945 = vector.broadcast %513 : vector<1x128xf32> to vector<2x128xf32>
    %946 = arith.addf %944, %945 : vector<2x128xf32>
    %947 = vector.extract_strided_slice %946 {offsets = [0, 0], sizes = [2, 32], strides = [1, 1]} : vector<2x128xf32> to vector<2x32xf32>
    %948 = arith.negf %947 : vector<2x32xf32>
    %949 = math.exp %948 : vector<2x32xf32>
    %cst_164 = arith.constant 1.000000e+00 : f32
    %950 = vector.broadcast %cst_164 : f32 to vector<2x32xf32>
    %951 = arith.addf %950, %949 : vector<2x32xf32>
    %952 = arith.divf %950, %951 : vector<2x32xf32>
    %953 = vector.extract_strided_slice %946 {offsets = [0, 32], sizes = [2, 32], strides = [1, 1]} : vector<2x128xf32> to vector<2x32xf32>
    %954 = arith.negf %953 : vector<2x32xf32>
    %955 = math.exp %954 : vector<2x32xf32>
    %cst_165 = arith.constant 1.000000e+00 : f32
    %956 = vector.broadcast %cst_165 : f32 to vector<2x32xf32>
    %957 = arith.addf %956, %955 : vector<2x32xf32>
    %958 = arith.divf %956, %957 : vector<2x32xf32>
    %959 = vector.extract_strided_slice %946 {offsets = [0, 64], sizes = [2, 32], strides = [1, 1]} : vector<2x128xf32> to vector<2x32xf32>
    %960 = math.tanh %959 : vector<2x32xf32>
    %961 = vector.extract_strided_slice %946 {offsets = [0, 96], sizes = [2, 32], strides = [1, 1]} : vector<2x128xf32> to vector<2x32xf32>
    %962 = arith.negf %961 : vector<2x32xf32>
    %963 = math.exp %962 : vector<2x32xf32>
    %cst_166 = arith.constant 1.000000e+00 : f32
    %964 = vector.broadcast %cst_166 : f32 to vector<2x32xf32>
    %965 = arith.addf %964, %963 : vector<2x32xf32>
    %966 = arith.divf %964, %965 : vector<2x32xf32>
    %967 = arith.mulf %958, %921 : vector<2x32xf32>
    %968 = arith.mulf %952, %960 : vector<2x32xf32>
    %969 = arith.addf %967, %968 : vector<2x32xf32>
    %970 = math.tanh %969 : vector<2x32xf32>
    %971 = arith.mulf %966, %970 : vector<2x32xf32>
    %972 = vector.extract_strided_slice %511 {offsets = [4, 128], sizes = [2, 128], strides = [1, 1]} : vector<16x256xf32> to vector<2x128xf32>
    %cst_167 = arith.constant dense<0.000000e+00> : vector<2x128xf32>
    %973 = tpu.matmul %923, %514, %cst_167 {dimension_numbers = #tpu.dot_dimension_numbers<[1], [0], [0], [1], [0, 0, 1, 1], [], []>} : vector<2x32xf32>, vector<32x128xf32>, vector<2x128xf32> -> vector<2x128xf32>
    %974 = arith.addf %972, %973 : vector<2x128xf32>
    %975 = vector.broadcast %515 : vector<1x128xf32> to vector<2x128xf32>
    %976 = arith.addf %974, %975 : vector<2x128xf32>
    %977 = vector.extract_strided_slice %976 {offsets = [0, 0], sizes = [2, 32], strides = [1, 1]} : vector<2x128xf32> to vector<2x32xf32>
    %978 = arith.negf %977 : vector<2x32xf32>
    %979 = math.exp %978 : vector<2x32xf32>
    %cst_168 = arith.constant 1.000000e+00 : f32
    %980 = vector.broadcast %cst_168 : f32 to vector<2x32xf32>
    %981 = arith.addf %980, %979 : vector<2x32xf32>
    %982 = arith.divf %980, %981 : vector<2x32xf32>
    %983 = vector.extract_strided_slice %976 {offsets = [0, 32], sizes = [2, 32], strides = [1, 1]} : vector<2x128xf32> to vector<2x32xf32>
    %984 = arith.negf %983 : vector<2x32xf32>
    %985 = math.exp %984 : vector<2x32xf32>
    %cst_169 = arith.constant 1.000000e+00 : f32
    %986 = vector.broadcast %cst_169 : f32 to vector<2x32xf32>
    %987 = arith.addf %986, %985 : vector<2x32xf32>
    %988 = arith.divf %986, %987 : vector<2x32xf32>
    %989 = vector.extract_strided_slice %976 {offsets = [0, 64], sizes = [2, 32], strides = [1, 1]} : vector<2x128xf32> to vector<2x32xf32>
    %990 = math.tanh %989 : vector<2x32xf32>
    %991 = vector.extract_strided_slice %976 {offsets = [0, 96], sizes = [2, 32], strides = [1, 1]} : vector<2x128xf32> to vector<2x32xf32>
    %992 = arith.negf %991 : vector<2x32xf32>
    %993 = math.exp %992 : vector<2x32xf32>
    %cst_170 = arith.constant 1.000000e+00 : f32
    %994 = vector.broadcast %cst_170 : f32 to vector<2x32xf32>
    %995 = arith.addf %994, %993 : vector<2x32xf32>
    %996 = arith.divf %994, %995 : vector<2x32xf32>
    %997 = arith.mulf %988, %925 : vector<2x32xf32>
    %998 = arith.mulf %982, %990 : vector<2x32xf32>
    %999 = arith.addf %997, %998 : vector<2x32xf32>
    %1000 = math.tanh %999 : vector<2x32xf32>
    %1001 = arith.mulf %996, %1000 : vector<2x32xf32>
    %1002 = vector.broadcast %940 : vector<2x1xf32> to vector<2x32xf32>
    %1003 = arith.mulf %971, %1002 : vector<2x32xf32>
    %1004 = vector.broadcast %940 : vector<2x1xf32> to vector<2x32xf32>
    %1005 = arith.mulf %969, %1004 : vector<2x32xf32>
    %1006 = vector.broadcast %941 : vector<2x1xf32> to vector<2x32xf32>
    %1007 = arith.mulf %1001, %1006 : vector<2x32xf32>
    %1008 = vector.broadcast %941 : vector<2x1xf32> to vector<2x32xf32>
    %1009 = arith.mulf %999, %1008 : vector<2x32xf32>
    %cst_171 = arith.constant 1.000000e+00 : f32
    %1010 = vector.broadcast %cst_171 : f32 to vector<2x1xf32>
    %1011 = arith.subf %940, %1010 : vector<2x1xf32>
    %cst_172 = arith.constant 1.000000e+06 : f32
    %1012 = vector.broadcast %cst_172 : f32 to vector<2x1xf32>
    %1013 = arith.mulf %1011, %1012 : vector<2x1xf32>
    %1014 = vector.broadcast %1013 : vector<2x1xf32> to vector<2x32xf32>
    %1015 = arith.addf %1003, %1014 : vector<2x32xf32>
    %1016 = arith.maximumf %932, %1015 : vector<2x32xf32>
    %cst_173 = arith.constant 1.000000e+00 : f32
    %1017 = vector.broadcast %cst_173 : f32 to vector<2x1xf32>
    %1018 = arith.subf %941, %1017 : vector<2x1xf32>
    %cst_174 = arith.constant 1.000000e+06 : f32
    %1019 = vector.broadcast %cst_174 : f32 to vector<2x1xf32>
    %1020 = arith.mulf %1018, %1019 : vector<2x1xf32>
    %1021 = vector.broadcast %1020 : vector<2x1xf32> to vector<2x32xf32>
    %1022 = arith.addf %1007, %1021 : vector<2x32xf32>
    %1023 = arith.maximumf %939, %1022 : vector<2x32xf32>
    %1024 = vector.extract_strided_slice %516 {offsets = [12, 0], sizes = [2, 1], strides = [1, 1]} : vector<16x1xf32> to vector<2x1xf32>
    %1025 = vector.extract_strided_slice %516 {offsets = [2, 0], sizes = [2, 1], strides = [1, 1]} : vector<16x1xf32> to vector<2x1xf32>
    %1026 = vector.extract_strided_slice %511 {offsets = [12, 0], sizes = [2, 128], strides = [1, 1]} : vector<16x256xf32> to vector<2x128xf32>
    %cst_175 = arith.constant dense<0.000000e+00> : vector<2x128xf32>
    %1027 = tpu.matmul %1003, %512, %cst_175 {dimension_numbers = #tpu.dot_dimension_numbers<[1], [0], [0], [1], [0, 0, 1, 1], [], []>} : vector<2x32xf32>, vector<32x128xf32>, vector<2x128xf32> -> vector<2x128xf32>
    %1028 = arith.addf %1026, %1027 : vector<2x128xf32>
    %1029 = vector.broadcast %513 : vector<1x128xf32> to vector<2x128xf32>
    %1030 = arith.addf %1028, %1029 : vector<2x128xf32>
    %1031 = vector.extract_strided_slice %1030 {offsets = [0, 0], sizes = [2, 32], strides = [1, 1]} : vector<2x128xf32> to vector<2x32xf32>
    %1032 = arith.negf %1031 : vector<2x32xf32>
    %1033 = math.exp %1032 : vector<2x32xf32>
    %cst_176 = arith.constant 1.000000e+00 : f32
    %1034 = vector.broadcast %cst_176 : f32 to vector<2x32xf32>
    %1035 = arith.addf %1034, %1033 : vector<2x32xf32>
    %1036 = arith.divf %1034, %1035 : vector<2x32xf32>
    %1037 = vector.extract_strided_slice %1030 {offsets = [0, 32], sizes = [2, 32], strides = [1, 1]} : vector<2x128xf32> to vector<2x32xf32>
    %1038 = arith.negf %1037 : vector<2x32xf32>
    %1039 = math.exp %1038 : vector<2x32xf32>
    %cst_177 = arith.constant 1.000000e+00 : f32
    %1040 = vector.broadcast %cst_177 : f32 to vector<2x32xf32>
    %1041 = arith.addf %1040, %1039 : vector<2x32xf32>
    %1042 = arith.divf %1040, %1041 : vector<2x32xf32>
    %1043 = vector.extract_strided_slice %1030 {offsets = [0, 64], sizes = [2, 32], strides = [1, 1]} : vector<2x128xf32> to vector<2x32xf32>
    %1044 = math.tanh %1043 : vector<2x32xf32>
    %1045 = vector.extract_strided_slice %1030 {offsets = [0, 96], sizes = [2, 32], strides = [1, 1]} : vector<2x128xf32> to vector<2x32xf32>
    %1046 = arith.negf %1045 : vector<2x32xf32>
    %1047 = math.exp %1046 : vector<2x32xf32>
    %cst_178 = arith.constant 1.000000e+00 : f32
    %1048 = vector.broadcast %cst_178 : f32 to vector<2x32xf32>
    %1049 = arith.addf %1048, %1047 : vector<2x32xf32>
    %1050 = arith.divf %1048, %1049 : vector<2x32xf32>
    %1051 = arith.mulf %1042, %1005 : vector<2x32xf32>
    %1052 = arith.mulf %1036, %1044 : vector<2x32xf32>
    %1053 = arith.addf %1051, %1052 : vector<2x32xf32>
    %1054 = math.tanh %1053 : vector<2x32xf32>
    %1055 = arith.mulf %1050, %1054 : vector<2x32xf32>
    %1056 = vector.extract_strided_slice %511 {offsets = [2, 128], sizes = [2, 128], strides = [1, 1]} : vector<16x256xf32> to vector<2x128xf32>
    %cst_179 = arith.constant dense<0.000000e+00> : vector<2x128xf32>
    %1057 = tpu.matmul %1007, %514, %cst_179 {dimension_numbers = #tpu.dot_dimension_numbers<[1], [0], [0], [1], [0, 0, 1, 1], [], []>} : vector<2x32xf32>, vector<32x128xf32>, vector<2x128xf32> -> vector<2x128xf32>
    %1058 = arith.addf %1056, %1057 : vector<2x128xf32>
    %1059 = vector.broadcast %515 : vector<1x128xf32> to vector<2x128xf32>
    %1060 = arith.addf %1058, %1059 : vector<2x128xf32>
    %1061 = vector.extract_strided_slice %1060 {offsets = [0, 0], sizes = [2, 32], strides = [1, 1]} : vector<2x128xf32> to vector<2x32xf32>
    %1062 = arith.negf %1061 : vector<2x32xf32>
    %1063 = math.exp %1062 : vector<2x32xf32>
    %cst_180 = arith.constant 1.000000e+00 : f32
    %1064 = vector.broadcast %cst_180 : f32 to vector<2x32xf32>
    %1065 = arith.addf %1064, %1063 : vector<2x32xf32>
    %1066 = arith.divf %1064, %1065 : vector<2x32xf32>
    %1067 = vector.extract_strided_slice %1060 {offsets = [0, 32], sizes = [2, 32], strides = [1, 1]} : vector<2x128xf32> to vector<2x32xf32>
    %1068 = arith.negf %1067 : vector<2x32xf32>
    %1069 = math.exp %1068 : vector<2x32xf32>
    %cst_181 = arith.constant 1.000000e+00 : f32
    %1070 = vector.broadcast %cst_181 : f32 to vector<2x32xf32>
    %1071 = arith.addf %1070, %1069 : vector<2x32xf32>
    %1072 = arith.divf %1070, %1071 : vector<2x32xf32>
    %1073 = vector.extract_strided_slice %1060 {offsets = [0, 64], sizes = [2, 32], strides = [1, 1]} : vector<2x128xf32> to vector<2x32xf32>
    %1074 = math.tanh %1073 : vector<2x32xf32>
    %1075 = vector.extract_strided_slice %1060 {offsets = [0, 96], sizes = [2, 32], strides = [1, 1]} : vector<2x128xf32> to vector<2x32xf32>
    %1076 = arith.negf %1075 : vector<2x32xf32>
    %1077 = math.exp %1076 : vector<2x32xf32>
    %cst_182 = arith.constant 1.000000e+00 : f32
    %1078 = vector.broadcast %cst_182 : f32 to vector<2x32xf32>
    %1079 = arith.addf %1078, %1077 : vector<2x32xf32>
    %1080 = arith.divf %1078, %1079 : vector<2x32xf32>
    %1081 = arith.mulf %1072, %1009 : vector<2x32xf32>
    %1082 = arith.mulf %1066, %1074 : vector<2x32xf32>
    %1083 = arith.addf %1081, %1082 : vector<2x32xf32>
    %1084 = math.tanh %1083 : vector<2x32xf32>
    %1085 = arith.mulf %1080, %1084 : vector<2x32xf32>
    %1086 = vector.broadcast %1024 : vector<2x1xf32> to vector<2x32xf32>
    %1087 = arith.mulf %1055, %1086 : vector<2x32xf32>
    %1088 = vector.broadcast %1024 : vector<2x1xf32> to vector<2x32xf32>
    %1089 = arith.mulf %1053, %1088 : vector<2x32xf32>
    %1090 = vector.broadcast %1025 : vector<2x1xf32> to vector<2x32xf32>
    %1091 = arith.mulf %1085, %1090 : vector<2x32xf32>
    %1092 = vector.broadcast %1025 : vector<2x1xf32> to vector<2x32xf32>
    %1093 = arith.mulf %1083, %1092 : vector<2x32xf32>
    %cst_183 = arith.constant 1.000000e+00 : f32
    %1094 = vector.broadcast %cst_183 : f32 to vector<2x1xf32>
    %1095 = arith.subf %1024, %1094 : vector<2x1xf32>
    %cst_184 = arith.constant 1.000000e+06 : f32
    %1096 = vector.broadcast %cst_184 : f32 to vector<2x1xf32>
    %1097 = arith.mulf %1095, %1096 : vector<2x1xf32>
    %1098 = vector.broadcast %1097 : vector<2x1xf32> to vector<2x32xf32>
    %1099 = arith.addf %1087, %1098 : vector<2x32xf32>
    %1100 = arith.maximumf %1016, %1099 : vector<2x32xf32>
    %cst_185 = arith.constant 1.000000e+00 : f32
    %1101 = vector.broadcast %cst_185 : f32 to vector<2x1xf32>
    %1102 = arith.subf %1025, %1101 : vector<2x1xf32>
    %cst_186 = arith.constant 1.000000e+06 : f32
    %1103 = vector.broadcast %cst_186 : f32 to vector<2x1xf32>
    %1104 = arith.mulf %1102, %1103 : vector<2x1xf32>
    %1105 = vector.broadcast %1104 : vector<2x1xf32> to vector<2x32xf32>
    %1106 = arith.addf %1091, %1105 : vector<2x32xf32>
    %1107 = arith.maximumf %1023, %1106 : vector<2x32xf32>
    %1108 = vector.extract_strided_slice %516 {offsets = [14, 0], sizes = [2, 1], strides = [1, 1]} : vector<16x1xf32> to vector<2x1xf32>
    %1109 = vector.extract_strided_slice %516 {offsets = [0, 0], sizes = [2, 1], strides = [1, 1]} : vector<16x1xf32> to vector<2x1xf32>
    %1110 = vector.extract_strided_slice %511 {offsets = [14, 0], sizes = [2, 128], strides = [1, 1]} : vector<16x256xf32> to vector<2x128xf32>
    %cst_187 = arith.constant dense<0.000000e+00> : vector<2x128xf32>
    %1111 = tpu.matmul %1087, %512, %cst_187 {dimension_numbers = #tpu.dot_dimension_numbers<[1], [0], [0], [1], [0, 0, 1, 1], [], []>} : vector<2x32xf32>, vector<32x128xf32>, vector<2x128xf32> -> vector<2x128xf32>
    %1112 = arith.addf %1110, %1111 : vector<2x128xf32>
    %1113 = vector.broadcast %513 : vector<1x128xf32> to vector<2x128xf32>
    %1114 = arith.addf %1112, %1113 : vector<2x128xf32>
    %1115 = vector.extract_strided_slice %1114 {offsets = [0, 0], sizes = [2, 32], strides = [1, 1]} : vector<2x128xf32> to vector<2x32xf32>
    %1116 = arith.negf %1115 : vector<2x32xf32>
    %1117 = math.exp %1116 : vector<2x32xf32>
    %cst_188 = arith.constant 1.000000e+00 : f32
    %1118 = vector.broadcast %cst_188 : f32 to vector<2x32xf32>
    %1119 = arith.addf %1118, %1117 : vector<2x32xf32>
    %1120 = arith.divf %1118, %1119 : vector<2x32xf32>
    %1121 = vector.extract_strided_slice %1114 {offsets = [0, 32], sizes = [2, 32], strides = [1, 1]} : vector<2x128xf32> to vector<2x32xf32>
    %1122 = arith.negf %1121 : vector<2x32xf32>
    %1123 = math.exp %1122 : vector<2x32xf32>
    %cst_189 = arith.constant 1.000000e+00 : f32
    %1124 = vector.broadcast %cst_189 : f32 to vector<2x32xf32>
    %1125 = arith.addf %1124, %1123 : vector<2x32xf32>
    %1126 = arith.divf %1124, %1125 : vector<2x32xf32>
    %1127 = vector.extract_strided_slice %1114 {offsets = [0, 64], sizes = [2, 32], strides = [1, 1]} : vector<2x128xf32> to vector<2x32xf32>
    %1128 = math.tanh %1127 : vector<2x32xf32>
    %1129 = vector.extract_strided_slice %1114 {offsets = [0, 96], sizes = [2, 32], strides = [1, 1]} : vector<2x128xf32> to vector<2x32xf32>
    %1130 = arith.negf %1129 : vector<2x32xf32>
    %1131 = math.exp %1130 : vector<2x32xf32>
    %cst_190 = arith.constant 1.000000e+00 : f32
    %1132 = vector.broadcast %cst_190 : f32 to vector<2x32xf32>
    %1133 = arith.addf %1132, %1131 : vector<2x32xf32>
    %1134 = arith.divf %1132, %1133 : vector<2x32xf32>
    %1135 = arith.mulf %1126, %1089 : vector<2x32xf32>
    %1136 = arith.mulf %1120, %1128 : vector<2x32xf32>
    %1137 = arith.addf %1135, %1136 : vector<2x32xf32>
    %1138 = math.tanh %1137 : vector<2x32xf32>
    %1139 = arith.mulf %1134, %1138 : vector<2x32xf32>
    %1140 = vector.extract_strided_slice %511 {offsets = [0, 128], sizes = [2, 128], strides = [1, 1]} : vector<16x256xf32> to vector<2x128xf32>
    %cst_191 = arith.constant dense<0.000000e+00> : vector<2x128xf32>
    %1141 = tpu.matmul %1091, %514, %cst_191 {dimension_numbers = #tpu.dot_dimension_numbers<[1], [0], [0], [1], [0, 0, 1, 1], [], []>} : vector<2x32xf32>, vector<32x128xf32>, vector<2x128xf32> -> vector<2x128xf32>
    %1142 = arith.addf %1140, %1141 : vector<2x128xf32>
    %1143 = vector.broadcast %515 : vector<1x128xf32> to vector<2x128xf32>
    %1144 = arith.addf %1142, %1143 : vector<2x128xf32>
    %1145 = vector.extract_strided_slice %1144 {offsets = [0, 0], sizes = [2, 32], strides = [1, 1]} : vector<2x128xf32> to vector<2x32xf32>
    %1146 = arith.negf %1145 : vector<2x32xf32>
    %1147 = math.exp %1146 : vector<2x32xf32>
    %cst_192 = arith.constant 1.000000e+00 : f32
    %1148 = vector.broadcast %cst_192 : f32 to vector<2x32xf32>
    %1149 = arith.addf %1148, %1147 : vector<2x32xf32>
    %1150 = arith.divf %1148, %1149 : vector<2x32xf32>
    %1151 = vector.extract_strided_slice %1144 {offsets = [0, 32], sizes = [2, 32], strides = [1, 1]} : vector<2x128xf32> to vector<2x32xf32>
    %1152 = arith.negf %1151 : vector<2x32xf32>
    %1153 = math.exp %1152 : vector<2x32xf32>
    %cst_193 = arith.constant 1.000000e+00 : f32
    %1154 = vector.broadcast %cst_193 : f32 to vector<2x32xf32>
    %1155 = arith.addf %1154, %1153 : vector<2x32xf32>
    %1156 = arith.divf %1154, %1155 : vector<2x32xf32>
    %1157 = vector.extract_strided_slice %1144 {offsets = [0, 64], sizes = [2, 32], strides = [1, 1]} : vector<2x128xf32> to vector<2x32xf32>
    %1158 = math.tanh %1157 : vector<2x32xf32>
    %1159 = vector.extract_strided_slice %1144 {offsets = [0, 96], sizes = [2, 32], strides = [1, 1]} : vector<2x128xf32> to vector<2x32xf32>
    %1160 = arith.negf %1159 : vector<2x32xf32>
    %1161 = math.exp %1160 : vector<2x32xf32>
    %cst_194 = arith.constant 1.000000e+00 : f32
    %1162 = vector.broadcast %cst_194 : f32 to vector<2x32xf32>
    %1163 = arith.addf %1162, %1161 : vector<2x32xf32>
    %1164 = arith.divf %1162, %1163 : vector<2x32xf32>
    %1165 = arith.mulf %1156, %1093 : vector<2x32xf32>
    %1166 = arith.mulf %1150, %1158 : vector<2x32xf32>
    %1167 = arith.addf %1165, %1166 : vector<2x32xf32>
    %1168 = math.tanh %1167 : vector<2x32xf32>
    %1169 = arith.mulf %1164, %1168 : vector<2x32xf32>
    %1170 = vector.broadcast %1108 : vector<2x1xf32> to vector<2x32xf32>
    %1171 = arith.mulf %1139, %1170 : vector<2x32xf32>
    %1172 = vector.broadcast %1109 : vector<2x1xf32> to vector<2x32xf32>
    %1173 = arith.mulf %1169, %1172 : vector<2x32xf32>
    %cst_195 = arith.constant 1.000000e+00 : f32
    %1174 = vector.broadcast %cst_195 : f32 to vector<2x1xf32>
    %1175 = arith.subf %1108, %1174 : vector<2x1xf32>
    %cst_196 = arith.constant 1.000000e+06 : f32
    %1176 = vector.broadcast %cst_196 : f32 to vector<2x1xf32>
    %1177 = arith.mulf %1175, %1176 : vector<2x1xf32>
    %1178 = vector.broadcast %1177 : vector<2x1xf32> to vector<2x32xf32>
    %1179 = arith.addf %1171, %1178 : vector<2x32xf32>
    %1180 = arith.maximumf %1100, %1179 : vector<2x32xf32>
    %cst_197 = arith.constant 1.000000e+00 : f32
    %1181 = vector.broadcast %cst_197 : f32 to vector<2x1xf32>
    %1182 = arith.subf %1109, %1181 : vector<2x1xf32>
    %cst_198 = arith.constant 1.000000e+06 : f32
    %1183 = vector.broadcast %cst_198 : f32 to vector<2x1xf32>
    %1184 = arith.mulf %1182, %1183 : vector<2x1xf32>
    %1185 = vector.broadcast %1184 : vector<2x1xf32> to vector<2x32xf32>
    %1186 = arith.addf %1173, %1185 : vector<2x32xf32>
    %1187 = arith.maximumf %1107, %1186 : vector<2x32xf32>
    %c0_199 = arith.constant 0 : index
    %c0_200 = arith.constant 0 : index
    %1188 = vector.load %arg15[%c0_199, %c0_200] : memref<64x5xf32, #tpu.memory_space<vmem>>, vector<32x5xf32>
    %cst_201 = arith.constant dense<0.000000e+00> : vector<2x5xf32>
    %1189 = tpu.matmul %1180, %1188, %cst_201 {dimension_numbers = #tpu.dot_dimension_numbers<[1], [0], [0], [1], [0, 0, 1, 1], [], []>} : vector<2x32xf32>, vector<32x5xf32>, vector<2x5xf32> -> vector<2x5xf32>
    %c32_202 = arith.constant 32 : index
    %c0_203 = arith.constant 0 : index
    %1190 = vector.load %arg15[%c32_202, %c0_203] : memref<64x5xf32, #tpu.memory_space<vmem>>, vector<32x5xf32>
    %cst_204 = arith.constant dense<0.000000e+00> : vector<2x5xf32>
    %1191 = tpu.matmul %1187, %1190, %cst_204 {dimension_numbers = #tpu.dot_dimension_numbers<[1], [0], [0], [1], [0, 0, 1, 1], [], []>} : vector<2x32xf32>, vector<32x5xf32>, vector<2x5xf32> -> vector<2x5xf32>
    %1192 = arith.addf %1189, %1191 : vector<2x5xf32>
    %c0_205 = arith.constant 0 : index
    %c0_206 = arith.constant 0 : index
    %1193 = vector.load %arg16[%c0_205, %c0_206] : memref<2x5xf32, #tpu.memory_space<vmem>>, vector<2x5xf32>
    tpu.vector_store %arg16[%c0_205, %c0_206], %1192 {strides = array<i32>} : memref<2x5xf32, #tpu.memory_space<vmem>>, vector<2x5xf32>,
    return
  }
}

</mosaic_0001>

<bundles_post_ra>
// kernel: bilstm_model_forward.1
= control target key start
LH: loop header
LB: loop body
LE: loop exit
PB: predicated region body
PF: predicated region fallthrough
CT: control target
= control target key end

     0   :  { %s6647_s0 = inlined_call_operand.vmem [shape: f32[3], index: 0, kind: input, shape index: {}]   ;;  %s6648_s1 = inlined_call_operand.vmem [shape: f32[16,96], index: 1, kind: input, shape index: {}]   ;;  %s6649_s2 = inlined_call_operand.vmem [shape: f32[16,16], index: 2, kind: input, shape index: {}]   ;;  %s6650_s3 = inlined_call_operand.vmem [shape: f32[16,1], index: 3, kind: input, shape index: {}]   ;;  %s6651_s4 = inlined_call_operand.vmem [shape: f32[32,16], index: 4, kind: input, shape index: {}]   ;;  %s6652_s5 = inlined_call_operand.vmem [shape: f32[32,192], index: 5, kind: input, shape index: {}]   ;;  %s6653_s6 = inlined_call_operand.vmem [shape: f32[32,96], index: 6, kind: input, shape index: {}]   ;;  %s6654_s7 = inlined_call_operand.vmem [shape: f32[1,96], index: 7, kind: input, shape index: {}]   ;;  %s6655_s8 = inlined_call_operand.vmem [shape: f32[32,96], index: 8, kind: input, shape index: {}]   ;;  %s6656_s9 = inlined_call_operand.vmem [shape: f32[1,96], index: 9, kind: input, shape index: {}]   ;;  %s6657_s10 = inlined_call_operand.vmem [shape: f32[64,256], index: 10, kind: input, shape index: {}]   ;;  %s6658_s11 = inlined_call_operand.vmem [shape: f32[32,128], index: 11, kind: input, shape index: {}]   ;;  %s6659_s12 = inlined_call_operand.vmem [shape: f32[1,128], index: 12, kind: input, shape index: {}]   ;;  %s6660_s13 = inlined_call_operand.vmem [shape: f32[32,128], index: 13, kind: input, shape index: {}]   ;;  %s6661_s14 = inlined_call_operand.vmem [shape: f32[1,128], index: 14, kind: input, shape index: {}]   ;;  %s6662_s15 = inlined_call_operand.vmem [shape: f32[64,5], index: 15, kind: input, shape index: {}]   ;;  %s6663_s16 = inlined_call_operand.hbm [shape: f32[2,5], index: 16, kind: output, shape index: {}]  }
   0x1   :  { %6664 = sst [smem:[#allocation8_spill]] %s6647_s0 }
   0x2   :  { %21 = vsyncpa [#allocation4], 0 }
   0x3   :  { %22 = vsyncpa [#allocation3], 0  ;;  %s6665_s23 = sld [smem:[#allocation8_spill]] }
   0x9   :  { %s29_s24 = sshll.u32 %s6665_s23, 4  ;;  %s30_s24 = int_to_ptr.vmem [resolvable:$true] %s29_s24 }
   0xa   :  { %s5523_s25 = scalar_lea.vmem %s30_s24, 16  ;;  %p5528_p1 = scmp.lt.s32.totalorder %s30_s24, %s30_s24 }
   0xb   :  { %p5524_p0 = scmp.ne.s32.totalorder %s30_s24, %s5523_s25  ;;  %p5529_p2 = scmp.lt.s32.totalorder %s5523_s25, %s5523_s25 }
   0xd   :  { %p5530_p3 = por %p5529_p2, %p5528_p1 }
   0xf   :  { %p5531_p4 = pnand %p5530_p3, %p5524_p0 }
  0x11   :  { %5534 = shalt.err (!%p5531_p4)
}
  0x12   :  { %s5561_s26 = smov [#allocation2]  }
  0x13   :  { %32 = dma.vmem_to_smem %s30_s24, 16, %s5561_s26, [#allocation4]  }
  0x14   :  { %5557 = dma.done.wait [#allocation4], 16  }
  0x15   :  { %5558 = vsyncadd [#allocation4], 4294967280 }
  0x16   :  { %66 = sfence }
  0x17   :  { %s71_s27 = sld [smem:[#allocation2]]  ;;  %vm91_vm0 = vcmask 785408   ;;  %s5658_s28 = sld [smem:[#allocation2 + $0x1]]  ;;  %v89_v0 = vld [vmem:[%s6648_s1] sm:$0xff]  ;;  %v68_v2 = vld [vmem:[%s6651_s4 + $0x8] sm:$0xff]  ;;  %v69_v3 = vld [vmem:[%s6651_s4 + $0x10] sm:$0xff] }
  0x18   :  { %v67_v1 = vld [vmem:[%s6651_s4] sm:$0xff]  ;;  %4614 = vmatprep.mubr.msk.f32.mxu0 %vm91_vm0, %v89_v0  ;;  %v180_v4 = vld [vmem:[%s6652_s5 + $0x28] sm:$0xff]  ;;  %v182_v5 = vld [vmem:[%s6652_s5 + $0x38] sm:$0xff]  ;;  %v5562_v9 = vmov 0.0   ;;  %s4319_s29 = sld [smem:[#allocation2 + $0x2]]  ;;  %vm183_vm1 = vcmask 130048  }
  0x19   :  { %v5015_v6 = vpack.c.bf16 %v182_v5, %v180_v4  ;;  %v179_v7 = vld [vmem:[%s6652_s5 + $0x20] sm:$0xff]  ;;  %v181_v8 = vld [vmem:[%s6652_s5 + $0x30] sm:$0xff]  ;;  %254 = vmatprep.mubr.f32.mxu1 %v5562_v9  ;;  %v176_v10 = vld [vmem:[%s6652_s5 + $0x8] sm:$0xff]  ;;  %v5563_v45 = vmov 0.0|0.0   ;;  %vm5564_vm2 = vmmov 0   ;;  %s5566_s0 = smov 96  }
  0x1a   :  { %v70_v11 = vld [vmem:[%s6651_s4 + $0x18] sm:$0xff]  ;;  %v5017_v12 = vpack.c.bf16 %v181_v8, %v179_v7  ;;  %v175_v14 = vld [vmem:[%s6652_s5] sm:$0xff]  ;;  %v177_v16 = vld [vmem:[%s6652_s5 + $0x10] sm:$0xff]  ;;  %s5567_s17 = smov 32   ;;  %vm366_vm3 = vcmask 261120   ;;  %vm2102_vm4 = vcmask 1041408  }
  0x1b   :  { %v178_v13 = vld [vmem:[%s6652_s5 + $0x18] sm:$0xff]  ;;  %5016 = vmatprep.subr.bf16.mxu1 %v5015_v6  ;;  %v173_v18 = vld [vmem:[%s6649_s2] sm:$0xff]  ;;  %v5021_v19 = vpack.c.bf16 %v177_v16, %v175_v14  ;;  %v174_v29 = vld [vmem:[%s6649_s2 + $0x8] sm:$0xff]  ;;  %vm2104_vm5 = vcmask 1043456   ;;  %vm2106_vm6 = vcmask 1045504   ;;  %vm4301_vm7 = vcmask 33792  }
  0x1c   :  { %v5019_v15 = vpack.c.bf16 %v178_v13, %v176_v10  ;;  %5018 = vmatpush1.bf16.msra.mxu1 %v5017_v12  ;;  %v90_v41 = vld [vmem:[%s6648_s1 + $0x8] sm:$0xff]  ;;  %v350_v42 = vld [vmem:[%s6653_s6] sm:$0xff]  ;;  %v352_v46 = vld [vmem:[%s6653_s6 + $0x10] sm:$0xff] }
  0x1d   :  { %v72_v17 = vstv %s71_s27  ;;  %v78_v24 = vstv %s5658_s28  ;;  %v351_v43 = vld [vmem:[%s6653_s6 + $0x8] sm:$0xff]  ;;  %v353_v47 = vld [vmem:[%s6653_s6 + $0x18] sm:$0xff]  ;;  %s5565_s27 = smov 64  }
  0x1e   :  { %v73_v20 = vmul.f32 %v72_v17, %v67_v1  ;;  %v74_v21 = vmul.f32 %v72_v17, %v68_v2  ;;  %v75_v22 = vmul.f32 %v72_v17, %v69_v3  ;;  %v76_v23 = vmul.f32 %v72_v17, %v70_v11  ;;  %5020 = vmatprep.subr.bf16.mxu1 %v5019_v15  ;;  %v355_v51 = vld [vmem:[%s6655_s8] sm:$0xff]  ;;  %v356_v52 = vld [vmem:[%s6655_s8 + $0x8] sm:$0xff]  ;;  %v357_v54 = vld [vmem:[%s6655_s8 + $0x10] sm:$0xff] }
  0x1f   :  { %v79_v27 = vmul.f32 %v78_v24, %v67_v1  ;;  %v80_v28 = vmul.f32 %v78_v24, %v68_v2  ;;  %4322 = vmatmul.mubr.msk.f32.vlgmr.msra.gmra.mrb[0].mxu1 %vm183_vm1, %v173_v18  ;;  %v81_v31 = vmul.f32 %v78_v24, %v69_v3  ;;  %v82_v32 = vmul.f32 %v78_v24, %v70_v11  ;;  %v358_v55 = vld [vmem:[%s6655_s8 + $0x18] sm:$0xff]  ;;  %v5790_v61 = vld [vmem:[%s6654_s7] ss:$0 sm:$0xff] }
  0x20   :  { %v4991_v25 = vpack.c.bf16 %v74_v21, %v73_v20  ;;  %v4995_v26 = vpack.c.bf16 %v76_v23, %v75_v22  ;;  %5022 = vmatpush1.bf16.msra.mxu1 %v5021_v19  ;;  %260 = vmatprep.mubr.f32.mxu1 %v5562_v9  ;;  %v84_v33 = vstv %s4319_s29  ;;  %v5722_v44 = vpack.c.bf16 %v351_v43, %v350_v42  ;;  %v5798_v7 = vld [vmem:[%s6656_s9] ss:$0 sm:$0xff] }
  0x21   :  { %v4999_v30 = vpack.c.bf16 %v80_v28, %v79_v27  ;;  %v5003_v34 = vpack.c.bf16 %v82_v32, %v81_v31  ;;  %v85_v35 = vmul.f32 %v84_v33, %v67_v1  ;;  %v86_v36 = vmul.f32 %v84_v33, %v68_v2  ;;  %5023 = vmatprep.subr.bf16.mxu1 %v5563_v45 }
  0x22   :  { %4992 = vmatprep.subr.bf16.mxu0 %v4991_v25  ;;  %v87_v38 = vmul.f32 %v84_v33, %v69_v3  ;;  %v88_v39 = vmul.f32 %v84_v33, %v70_v11  ;;  %v5734_v48 = vpack.c.bf16 %v353_v47, %v352_v46  ;;  %v5754_v53 = vpack.c.bf16 %v356_v52, %v355_v51 }
  0x23   :  { %4994 = vmatpush3.bf16.msra.mxu0 %v4991_v25  ;;  %4323 = vmatmul.mubr.msk.f32.gmra.mrb[2].mxu1 %vm183_vm1, %v174_v29  ;;  %v5007_v37 = vpack.c.bf16 %v86_v36, %v85_v35  ;;  %v5765_v56 = vpack.c.bf16 %v358_v55, %v357_v54 }
  0x24   :  { %4996 = vmatprep.subr.bf16.mxu0 %v4995_v26  ;;  %337 = vmatprep.mubr.f32.mxu1 %v5562_v9  ;;  %v5011_v40 = vpack.c.bf16 %v88_v39, %v87_v38 }
  0x27   :  { %4998 = vmatpush3.bf16.msra.mxu0 %v4995_v26 }
  0x28   :  { %5000 = vmatprep.subr.bf16.mxu0 %v4999_v30 }
  0x2b   :  { %5002 = vmatpush3.bf16.msra.mxu0 %v4999_v30 }
  0x2c   :  { %5004 = vmatprep.subr.bf16.mxu0 %v5003_v34 }
  0x2f   :  { %5006 = vmatpush3.bf16.msra.mxu0 %v5003_v34 }
  0x30   :  { %5008 = vmatprep.subr.bf16.mxu0 %v5007_v37 }
  0x33   :  { %5010 = vmatpush3.bf16.msra.mxu0 %v5007_v37 }
  0x34   :  { %5012 = vmatprep.subr.bf16.mxu0 %v5011_v40 }
  0x37   :  { %5014 = vmatpush3.bf16.msra.mxu0 %v5011_v40 }
  0x38   :  { %5047 = vmatprep.subr.bf16.mxu0 %v5563_v45 }
  0x3a   :  { %4615 = vmatmul.mubr.msk.f32.vlgmr.msra.gmra.mrb[0].mxu0 %vm91_vm0, %v90_v41 }
  0x3b   :  { %5049 = vmatpush3.bf16.msra.mxu0 %v5722_v44  ;;  %4669 = vmatprep.mubr.msk.f32.mxu0 %vm5564_vm2, %v5562_v9 }
  0x3c   :  { %5050 = vmatprep.subr.bf16.mxu0 %v5563_v45 }
  0x3f   :  { %5052 = vmatpush3.bf16.msra.mxu0 %v5734_v48 }
  0x40   :  { %5059 = vmatprep.subr.bf16.mxu0 %v5563_v45 }
 0x10d   :  { %v4616_v49 = vpop.f32.mrb[0].mxu0 }
 0x10e   :  { %v164_v50 = vpop.f32.mrb[1].mxu0 }
 0x10f   :  { %4324 = vmatmul.mubr.msk.f32.vlgmr.msra.gmra.mrb[0].mxu1 %vm183_vm1, %v164_v50 }
 0x110   :  { %5025 = vmatpush3.bf16.msra.mxu1 %v5722_v44  ;;  %343 = vmatprep.mubr.f32.mxu1 %v5562_v9 }
 0x111   :  { %5026 = vmatprep.subr.bf16.mxu1 %v5563_v45 }
 0x113   :  { %4325 = vmatmul.mubr.msk.f32.gmra.mrb[2].mxu1 %vm183_vm1, %v4616_v49 }
 0x114   :  { %5028 = vmatpush3.bf16.msra.mxu1 %v5734_v48  ;;  %4625 = vmatprep.mubr.msk.f32.mxu1 %vm5564_vm2, %v5562_v9 }
 0x115   :  { %5029 = vmatprep.subr.bf16.mxu1 %v5563_v45 }
 0x117   :  { %4626 = vmatmul.mubr.f32.vlgmr.msra.gmra.mrb[4].mxu1 %v5562_v9 }
 0x118   :  { %5031 = vmatpush3.bf16.msra.mxu1 %v5754_v53  ;;  %4636 = vmatprep.mubr.msk.f32.mxu1 %vm5564_vm2, %v5562_v9 }
 0x119   :  { %5032 = vmatprep.subr.bf16.mxu1 %v5563_v45 }
 0x11c   :  { %5034 = vmatpush3.bf16.msra.mxu1 %v5765_v56 }
 0x11d   :  { %5035 = vmatprep.subr.bf16.mxu1 %v5563_v45 }
 0x11f   :  { %4637 = vmatmul.mubr.f32.vlgmr.msra.gmra.mrb[6].mxu1 %v5562_v9 }
 0x120   :  { %5037 = vmatpush3.bf16.msra.mxu1 %v5722_v44  ;;  %4647 = vmatprep.mubr.msk.f32.mxu1 %vm5564_vm2, %v5562_v9 }
 0x121   :  { %5038 = vmatprep.subr.bf16.mxu1 %v5563_v45 }
 0x124   :  { %5040 = vmatpush3.bf16.msra.mxu1 %v5734_v48 }
 0x125   :  { %5041 = vmatprep.subr.bf16.mxu1 %v5563_v45 }
 0x1e2   :  { %v5779_v57 = vpop.f32.mrb[0].mxu1 }
 0x1e3   :  { %v5781_v58 = vpop.f32.mrb[1].mxu1 }
 0x1e6   :  { %v5783_v59 = vpop.f32.mrb[2].mxu1 }
 0x1e7   :  { %v5785_v60 = vpop.f32.mrb[3].mxu1 }
 0x1ea   :  { %v436_v62 = vpop.f32.mrb[4].mxu1 }
 0x1eb   :  { %v437_v63 = vadd.f32 %v5790_v61, %v436_v62  ;;  %v4627_v0 = vpop.f32.mrb[5].mxu1 }
 0x1ed   :  { %v440_v1 = vadd.f32 %v437_v63, %v5779_v57  ;;  %448 = vrot.lane.b32.xlu0 %v437_v63, %s5565_s27 }
 0x1ef   :  { %v4327_v4 = vmul.f32 -1.442695, %v440_v1 }
 0x1f1   :  { %5264 = vpow2.f32 %v4327_v4 }
 0x1f2   :  { %v538_v2 = vpop.f32.mrb[6].mxu1 }
 0x1f3   :  { %v4638_v3 = vpop.f32.mrb[7].mxu1  ;;  %v539_v8 = vadd.f32 %v5798_v7, %v538_v2 }
 0x1f5   :  { %v543_v13 = vrot.slane %v539_v8, 2 }
 0x1fb   :  { %v5265_v5 = vpop.eup %5264 }
 0x1fc   :  { %v444_v6 = vadd.f32 1.0, %v5265_v5 }
 0x1fe   :  { %5266 = vrcp.f32 %v444_v6 }
 0x208   :  { %v5267_v10 = vpop.eup %5266 }
 0x209   :  { %v458_v17 = vsub.f32 1.0, %v5267_v10  ;;  %v464_v19 = vmul.f32 0.0, %v5267_v10 }
 0x25f   :  { %v449_v11 = vpop.permute.xlu0 %448 }
 0x260   :  { %v451_v12 = vmul.f32 %v5267_v10, %v449_v11 }
 0x262   :  { %453 = vrot.lane.b32.xlu0 %v451_v12, %s5565_s27 }
 0x266   :  { %544 = vrot.lane.b32.xlu0 %v543_v13, %s5566_s0 }
 0x2d4   :  { %v454_v14 = vpop.permute.xlu0 %453 }
 0x2d5   :  { %v456_v15 = vadd.f32 %v454_v14, %v5779_v57 }
 0x2d7   :  { %5268 = vtanh.f32 %v456_v15 }
 0x2d8   :  { %v545_v22 = vpop.permute.xlu0 %544 }
 0x2d9   :  { %v547_v23 = vadd.f32 %v545_v22, %v5783_v59  ;;  %v554_v34 = vadd.f32 %v545_v22, %v5785_v60 }
 0x2db   :  { %v4329_v24 = vmul.f32 -1.442695, %v547_v23  ;;  %v4330_v38 = vmul.f32 -1.442695, %v554_v34 }
 0x2dd   :  { %5270 = vpow2.f32 %v4329_v24 }
 0x2e1   :  { %v5269_v16 = vpop.eup %5268 }
 0x2e2   :  { %460 = vrot.lane.b32.xlu1 %v5269_v16, %s5566_s0 }
 0x2e7   :  { %v5271_v25 = vpop.eup %5270 }
 0x2e8   :  { %v551_v26 = vadd.f32 1.0, %v5271_v25 }
 0x2ea   :  { %5272 = vrcp.f32 %v551_v26 }
 0x2f4   :  { %v5273_v28 = vpop.eup %5272 }
 0x354   :  { %v461_v18 = vpop.permute.xlu1 %460 }
 0x355   :  { %v463_v20 = vmul.f32 %v461_v18, %v458_v17 }
 0x357   :  { %v5805_v21 = vadd.f32 %v464_v19, %v463_v20 }
 0x359   :  { %580 = vrot.lane.b32.xlu1 %v5805_v21, %s5566_s0  ;;  %v680_v12 = vrot.slane %v5805_v21, 6 }
 0x35d   :  { %561 = vrot.lane.b32.xlu1 %v543_v13, %s5567_s17 }
 0x3cb   :  { %v581_v27 = vpop.permute.xlu1 %580 }
 0x3cc   :  { %4648 = vmatmul.mubr.msk.f32.vlgmr.msra.gmra.mrb[8].mxu1 %vm366_vm3, %v581_v27 }
 0x3cd   :  { %5043 = vmatpush3.bf16.msra.mxu1 %v5754_v53  ;;  %4658 = vmatprep.mubr.msk.f32.mxu1 %vm5564_vm2, %v5562_v9 }
 0x3ce   :  { %5044 = vmatprep.subr.bf16.mxu1 %v5563_v45 }
 0x3cf   :  { %v562_v29 = vpop.permute.xlu1 %561 }
 0x3d0   :  { %v564_v30 = vmul.f32 %v5273_v28, %v562_v29 }
 0x3d1   :  { %5046 = vmatpush3.bf16.msra.mxu1 %v5765_v56 }
 0x3d2   :  { %566 = vrot.lane.b32.xlu0 %v564_v30, %s5565_s27  ;;  %5053 = vmatprep.subr.bf16.mxu1 %v5563_v45 }
 0x444   :  { %v567_v31 = vpop.permute.xlu0 %566 }
 0x445   :  { %v569_v32 = vadd.f32 %v567_v31, %v5785_v60 }
 0x447   :  { %5274 = vtanh.f32 %v569_v32 }
 0x448   :  { %5276 = vpow2.f32 %v4330_v38 }
 0x451   :  { %v5275_v33 = vpop.eup %5274 }
 0x452   :  { %573 = vrot.lane.b32.xlu1 %v5275_v33, %s5566_s0  ;;  %v5277_v41 = vpop.eup %5276 }
 0x453   :  { %v558_v42 = vadd.f32 1.0, %v5277_v41 }
 0x455   :  { %5278 = vrcp.f32 %v558_v42 }
 0x45f   :  { %v5279_v43 = vpop.eup %5278 }
 0x460   :  { %v571_v46 = vsub.f32 1.0, %v5279_v43  ;;  %v577_v49 = vmul.f32 0.0, %v5279_v43 }
 0x49f   :  { %v650_v35 = vpop.f32.mrb[8].mxu1 }
 0x4a0   :  { %v651_v36 = vadd.f32 %v5790_v61, %v650_v35  ;;  %v4649_v37 = vpop.f32.mrb[9].mxu1 }
 0x4a2   :  { %v655_v39 = vrot.slane %v651_v36, 6 }
 0x4a4   :  { %v657_v40 = vadd.f32 %v655_v39, %v5779_v57  ;;  %664 = vrot.lane.b32.xlu0 %v655_v39, %s5565_s27 }
 0x4a6   :  { %v4332_v54 = vmul.f32 -1.442695, %v657_v40 }
 0x4a8   :  { %5280 = vpow2.f32 %v4332_v54 }
 0x4b2   :  { %v5281_v55 = vpop.eup %5280 }
 0x4b3   :  { %v661_v62 = vadd.f32 1.0, %v5281_v55 }
 0x4b5   :  { %5282 = vrcp.f32 %v661_v62 }
 0x4bf   :  { %v5283_v63 = vpop.eup %5282 }
 0x4c0   :  { %v674_v11 = vsub.f32 1.0, %v5283_v63  ;;  %v682_v14 = vmul.f32 %v5283_v63, %v680_v12 }
 0x4c4   :  { %v574_v47 = vpop.permute.xlu1 %573 }
 0x4c5   :  { %v576_v50 = vmul.f32 %v574_v47, %v571_v46 }
 0x4c7   :  { %v5825_v51 = vadd.f32 %v577_v49, %v576_v50 }
 0x4c9   :  { %v685_v52 = vrot.slane %v5825_v51, 6  ;;  %v793_v42 = vrot.slane %v5825_v51, 2 }
 0x4cb   :  { %4659 = vmatmul.mubr.msk.f32.vlgmr.msra.gmra.mrb[10].mxu1 %vm366_vm3, %v685_v52 }
 0x4cc   :  { %5055 = vmatpush3.bf16.msra.mxu1 %v5754_v53  ;;  %4680 = vmatprep.mubr.msk.f32.mxu1 %vm5564_vm2, %v5562_v9 }
 0x4cd   :  { %5056 = vmatprep.subr.bf16.mxu1 %v5563_v45 }
 0x4d0   :  { %5058 = vmatpush3.bf16.msra.mxu1 %v5765_v56 }
 0x4d1   :  { %5065 = vmatprep.subr.bf16.mxu1 %v5563_v45 }
 0x516   :  { %v665_v0 = vpop.permute.xlu0 %664 }
 0x517   :  { %v667_v1 = vmul.f32 %v5283_v63, %v665_v0 }
 0x519   :  { %669 = vrot.lane.b32.xlu1 %v667_v1, %s5565_s27 }
 0x58b   :  { %v670_v2 = vpop.permute.xlu1 %669 }
 0x58c   :  { %v672_v3 = vadd.f32 %v670_v2, %v5779_v57 }
 0x58e   :  { %5284 = vtanh.f32 %v672_v3 }
 0x598   :  { %v5285_v4 = vpop.eup %5284 }
 0x599   :  { %676 = vrot.lane.b32.xlu0 %v5285_v4, %s5566_s0 }
 0x59e   :  { %v754_v5 = vpop.f32.mrb[10].mxu1 }
 0x59f   :  { %v755_v6 = vadd.f32 %v5798_v7, %v754_v5  ;;  %v4660_v8 = vpop.f32.mrb[11].mxu1 }
 0x5a1   :  { %v759_v10 = vrot.slane %v755_v6, 4 }
 0x5a3   :  { %760 = vrot.lane.b32.xlu0 %v759_v10, %s5566_s0 }
 0x60b   :  { %v677_v13 = vpop.permute.xlu0 %676 }
 0x60c   :  { %v679_v15 = vmul.f32 %v677_v13, %v674_v11 }
 0x60e   :  { %v5841_v16 = vadd.f32 %v682_v14, %v679_v15 }
 0x610   :  { %v798_v17 = vrot.slane %v5841_v16, 2  ;;  %v899_v11 = vrot.slane %v5841_v16, 6 }
 0x612   :  { %799 = vrot.lane.b32.xlu1 %v798_v17, %s5566_s0  ;;  %v2103_v17 = vsel %vm2102_vm4, %v5805_v21, %v5841_v16 }
 0x615   :  { %v761_v18 = vpop.permute.xlu0 %760 }
 0x616   :  { %777 = vrot.lane.b32.xlu1 %v759_v10, %s5567_s17  ;;  %v763_v19 = vadd.f32 %v761_v18, %v5783_v59  ;;  %v770_v31 = vadd.f32 %v761_v18, %v5785_v60 }
 0x618   :  { %v4334_v20 = vmul.f32 -1.442695, %v763_v19  ;;  %v4335_v35 = vmul.f32 -1.442695, %v770_v31 }
 0x61a   :  { %5286 = vpow2.f32 %v4334_v20 }
 0x624   :  { %v5287_v22 = vpop.eup %5286 }
 0x625   :  { %v767_v23 = vadd.f32 1.0, %v5287_v22 }
 0x627   :  { %5288 = vrcp.f32 %v767_v23 }
 0x631   :  { %v5289_v25 = vpop.eup %5288 }
 0x684   :  { %v800_v24 = vpop.permute.xlu1 %799 }
 0x685   :  { %4670 = vmatmul.mubr.msk.f32.vlgmr.msra.gmra.mrb[2].mxu0 %vm366_vm3, %v800_v24 }
 0x686   :  { %5061 = vmatpush3.bf16.msra.mxu0 %v5722_v44  ;;  %4691 = vmatprep.mubr.msk.f32.mxu0 %vm5564_vm2, %v5562_v9 }
 0x687   :  { %5062 = vmatprep.subr.bf16.mxu0 %v5563_v45 }
 0x688   :  { %v778_v26 = vpop.permute.xlu1 %777 }
 0x689   :  { %v780_v27 = vmul.f32 %v5289_v25, %v778_v26 }
 0x68a   :  { %5064 = vmatpush3.bf16.msra.mxu0 %v5734_v48 }
 0x68b   :  { %782 = vrot.lane.b32.xlu0 %v780_v27, %s5565_s27  ;;  %5071 = vmatprep.subr.bf16.mxu0 %v5563_v45 }
 0x6fd   :  { %v783_v28 = vpop.permute.xlu0 %782 }
 0x6fe   :  { %v785_v29 = vadd.f32 %v783_v28, %v5785_v60 }
 0x700   :  { %5290 = vtanh.f32 %v785_v29 }
 0x701   :  { %5292 = vpow2.f32 %v4335_v35 }
 0x70a   :  { %v5291_v30 = vpop.eup %5290 }
 0x70b   :  { %789 = vrot.lane.b32.xlu1 %v5291_v30, %s5566_s0  ;;  %v5293_v38 = vpop.eup %5292 }
 0x70c   :  { %v774_v39 = vadd.f32 1.0, %v5293_v38 }
 0x70e   :  { %5294 = vrcp.f32 %v774_v39 }
 0x718   :  { %v5295_v40 = vpop.eup %5294 }
 0x719   :  { %v787_v41 = vsub.f32 1.0, %v5295_v40  ;;  %v795_v46 = vmul.f32 %v5295_v40, %v793_v42 }
 0x758   :  { %v869_v32 = vpop.f32.mrb[2].mxu0 }
 0x759   :  { %v870_v33 = vadd.f32 %v5790_v61, %v869_v32  ;;  %v4671_v34 = vpop.f32.mrb[3].mxu0 }
 0x75b   :  { %v874_v36 = vrot.slane %v870_v33, 4 }
 0x75d   :  { %v876_v37 = vadd.f32 %v874_v36, %v5779_v57  ;;  %883 = vrot.lane.b32.xlu0 %v874_v36, %s5565_s27 }
 0x75f   :  { %v4337_v52 = vmul.f32 -1.442695, %v876_v37 }
 0x761   :  { %5296 = vpow2.f32 %v4337_v52 }
 0x76b   :  { %v5297_v54 = vpop.eup %5296 }
 0x76c   :  { %v880_v55 = vadd.f32 1.0, %v5297_v54 }
 0x76e   :  { %5298 = vrcp.f32 %v880_v55 }
 0x778   :  { %v5299_v62 = vpop.eup %5298 }
 0x779   :  { %v893_v10 = vsub.f32 1.0, %v5299_v62  ;;  %v901_v13 = vmul.f32 %v5299_v62, %v899_v11 }
 0x77d   :  { %v790_v43 = vpop.permute.xlu1 %789 }
 0x77e   :  { %v792_v47 = vmul.f32 %v790_v43, %v787_v41 }
 0x780   :  { %v5862_v49 = vadd.f32 %v795_v46, %v792_v47 }
 0x782   :  { %v904_v50 = vrot.slane %v5862_v49, 4  ;;  %v1012_v37 = vrot.slane %v5862_v49, 2 }
 0x784   :  { %4681 = vmatmul.mubr.msk.f32.vlgmr.msra.gmra.mrb[12].mxu1 %vm366_vm3, %v904_v50 }
 0x785   :  { %5067 = vmatpush3.bf16.msra.mxu1 %v5754_v53  ;;  %4702 = vmatprep.mubr.msk.f32.mxu1 %vm5564_vm2, %v5562_v9 }
 0x786   :  { %5068 = vmatprep.subr.bf16.mxu1 %v5563_v45 }
 0x789   :  { %5070 = vmatpush3.bf16.msra.mxu1 %v5765_v56 }
 0x78a   :  { %5077 = vmatprep.subr.bf16.mxu1 %v5563_v45 }
 0x7cf   :  { %v884_v63 = vpop.permute.xlu0 %883 }
 0x7d0   :  { %v886_v0 = vmul.f32 %v5299_v62, %v884_v63 }
 0x7d2   :  { %888 = vrot.lane.b32.xlu1 %v886_v0, %s5565_s27 }
 0x844   :  { %v889_v1 = vpop.permute.xlu1 %888 }
 0x845   :  { %v891_v2 = vadd.f32 %v889_v1, %v5779_v57 }
 0x847   :  { %5300 = vtanh.f32 %v891_v2 }
 0x851   :  { %v5301_v3 = vpop.eup %5300 }
 0x852   :  { %895 = vrot.lane.b32.xlu0 %v5301_v3, %s5566_s0 }
 0x857   :  { %v973_v4 = vpop.f32.mrb[12].mxu1 }
 0x858   :  { %v974_v5 = vadd.f32 %v5798_v7, %v973_v4  ;;  %v4682_v6 = vpop.f32.mrb[13].mxu1 }
 0x85a   :  { %v978_v8 = vrot.slane %v974_v5, 6 }
 0x85c   :  { %979 = vrot.lane.b32.xlu1 %v978_v8, %s5566_s0 }
 0x860   :  { %996 = vrot.lane.b32.xlu1 %v978_v8, %s5567_s17 }
 0x8c4   :  { %v896_v12 = vpop.permute.xlu0 %895 }
 0x8c5   :  { %v898_v14 = vmul.f32 %v896_v12, %v893_v10 }
 0x8c7   :  { %v5879_v15 = vadd.f32 %v901_v13, %v898_v14 }
 0x8c9   :  { %v1017_v18 = vrot.slane %v5879_v15, 4  ;;  %v5887_v19 = vsel %vm2104_vm5, %v2103_v17, %v5879_v15 }
 0x8cb   :  { %1018 = vrot.lane.b32.xlu0 %v1017_v18, %s5566_s0  ;;  %v1118_v18 = vrot.slane %v5879_v15, 6 }
 0x8ce   :  { %v980_v20 = vpop.permute.xlu1 %979 }
 0x8cf   :  { %v982_v22 = vadd.f32 %v980_v20, %v5783_v59  ;;  %v989_v31 = vadd.f32 %v980_v20, %v5785_v60 }
 0x8d1   :  { %v4339_v23 = vmul.f32 -1.442695, %v982_v22  ;;  %v4340_v32 = vmul.f32 -1.442695, %v989_v31 }
 0x8d2   :  { %v997_v27 = vpop.permute.xlu1 %996 }
 0x8d3   :  { %5302 = vpow2.f32 %v4339_v23 }
 0x8dd   :  { %v5303_v24 = vpop.eup %5302 }
 0x8de   :  { %v986_v25 = vadd.f32 1.0, %v5303_v24 }
 0x8e0   :  { %5304 = vrcp.f32 %v986_v25 }
 0x8ea   :  { %v5305_v26 = vpop.eup %5304 }
 0x8eb   :  { %v999_v28 = vmul.f32 %v5305_v26, %v997_v27 }
 0x8ed   :  { %1001 = vrot.lane.b32.xlu0 %v999_v28, %s5565_s27 }
 0x93d   :  { %v1019_v21 = vpop.permute.xlu0 %1018 }
 0x93e   :  { %4692 = vmatmul.mubr.msk.f32.vlgmr.msra.gmra.mrb[4].mxu0 %vm366_vm3, %v1019_v21 }
 0x93f   :  { %5073 = vmatpush3.bf16.msra.mxu0 %v5722_v44  ;;  %4713 = vmatprep.mubr.msk.f32.mxu0 %vm5564_vm2, %v5562_v9 }
 0x940   :  { %5074 = vmatprep.subr.bf16.mxu0 %v5563_v45 }
 0x943   :  { %5076 = vmatpush3.bf16.msra.mxu0 %v5734_v48 }
 0x944   :  { %5083 = vmatprep.subr.bf16.mxu0 %v5563_v45 }
 0x95f   :  { %v1002_v16 = vpop.permute.xlu0 %1001 }
 0x960   :  { %v1004_v29 = vadd.f32 %v1002_v16, %v5785_v60 }
 0x962   :  { %5306 = vtanh.f32 %v1004_v29 }
 0x963   :  { %5308 = vpow2.f32 %v4340_v32 }
 0x96c   :  { %v5307_v30 = vpop.eup %5306 }
 0x96d   :  { %1008 = vrot.lane.b32.xlu1 %v5307_v30, %s5566_s0  ;;  %v5309_v33 = vpop.eup %5308 }
 0x96e   :  { %v993_v34 = vadd.f32 1.0, %v5309_v33 }
 0x970   :  { %5310 = vrcp.f32 %v993_v34 }
 0x97a   :  { %v5311_v35 = vpop.eup %5310 }
 0x97b   :  { %v1006_v36 = vsub.f32 1.0, %v5311_v35  ;;  %v1014_v39 = vmul.f32 %v5311_v35, %v1012_v37 }
 0x9df   :  { %v1009_v38 = vpop.permute.xlu1 %1008 }
 0x9e0   :  { %v1011_v40 = vmul.f32 %v1009_v38, %v1006_v36 }
 0x9e2   :  { %v5903_v41 = vadd.f32 %v1014_v39, %v1011_v40 }
 0x9e4   :  { %v1123_v42 = vrot.slane %v5903_v41, 2 }
 0x9e6   :  { %4703 = vmatmul.mubr.msk.f32.vlgmr.msra.gmra.mrb[14].mxu1 %vm366_vm3, %v1123_v42 }
 0x9e7   :  { %5079 = vmatpush3.bf16.msra.mxu1 %v5754_v53  ;;  %4724 = vmatprep.mubr.msk.f32.mxu1 %vm5564_vm2, %v5562_v9 }
 0x9e8   :  { %5080 = vmatprep.subr.bf16.mxu1 %v5563_v45 }
 0x9eb   :  { %5082 = vmatpush3.bf16.msra.mxu1 %v5765_v56 }
 0x9ec   :  { %5089 = vmatprep.subr.bf16.mxu1 %v5563_v45 }
 0xa11   :  { %v1088_v43 = vpop.f32.mrb[4].mxu0 }
 0xa12   :  { %v1089_v46 = vadd.f32 %v5790_v61, %v1088_v43  ;;  %v4693_v47 = vpop.f32.mrb[5].mxu0 }
 0xa14   :  { %v1093_v50 = vrot.slane %v1089_v46, 2 }
 0xa16   :  { %v1095_v52 = vadd.f32 %v1093_v50, %v5779_v57  ;;  %1102 = vrot.lane.b32.xlu0 %v1093_v50, %s5565_s27 }
 0xa18   :  { %v4342_v54 = vmul.f32 -1.442695, %v1095_v52 }
 0xa1a   :  { %5312 = vpow2.f32 %v4342_v54 }
 0xa24   :  { %v5313_v55 = vpop.eup %5312 }
 0xa25   :  { %v1099_v62 = vadd.f32 1.0, %v5313_v55 }
 0xa27   :  { %5314 = vrcp.f32 %v1099_v62 }
 0xa31   :  { %v5315_v63 = vpop.eup %5314 }
 0xa32   :  { %v1112_v17 = vsub.f32 1.0, %v5315_v63  ;;  %v1120_v22 = vmul.f32 %v5315_v63, %v1118_v18 }
 0xa88   :  { %v1103_v0 = vpop.permute.xlu0 %1102 }
 0xa89   :  { %v1105_v1 = vmul.f32 %v5315_v63, %v1103_v0 }
 0xa8b   :  { %1107 = vrot.lane.b32.xlu1 %v1105_v1, %s5565_s27 }
 0xab9   :  { %v1192_v2 = vpop.f32.mrb[14].mxu1 }
 0xaba   :  { %v1193_v3 = vadd.f32 %v5798_v7, %v1192_v2  ;;  %v4704_v4 = vpop.f32.mrb[15].mxu1 }
 0xabc   :  { %1197 = vrot.lane.b32.xlu1 %v1193_v3, %s5566_s0 }
 0xafd   :  { %v1108_v5 = vpop.permute.xlu1 %1107 }
 0xafe   :  { %v1110_v6 = vadd.f32 %v1108_v5, %v5779_v57 }
 0xb00   :  { %5316 = vtanh.f32 %v1110_v6 }
 0xb0a   :  { %v5317_v8 = vpop.eup %5316 }
 0xb0b   :  { %1114 = vrot.lane.b32.xlu0 %v5317_v8, %s5566_s0 }
 0xb0f   :  { %1214 = vrot.lane.b32.xlu0 %v1193_v3, %s5567_s17 }
 0xb2e   :  { %v1198_v10 = vpop.permute.xlu1 %1197 }
 0xb2f   :  { %v1200_v11 = vadd.f32 %v1198_v10, %v5783_v59  ;;  %v1207_v30 = vadd.f32 %v1198_v10, %v5785_v60 }
 0xb31   :  { %v4344_v12 = vmul.f32 -1.442695, %v1200_v11  ;;  %v4345_v31 = vmul.f32 -1.442695, %v1207_v30 }
 0xb33   :  { %5318 = vpow2.f32 %v4344_v12 }
 0xb3d   :  { %v5319_v13 = vpop.eup %5318 }
 0xb3e   :  { %v1204_v14 = vadd.f32 1.0, %v5319_v13 }
 0xb40   :  { %5320 = vrcp.f32 %v1204_v14 }
 0xb4a   :  { %v5321_v25 = vpop.eup %5320 }
 0xb7d   :  { %v1115_v20 = vpop.permute.xlu0 %1114 }
 0xb7e   :  { %v1117_v23 = vmul.f32 %v1115_v20, %v1112_v17 }
 0xb80   :  { %v5926_v24 = vadd.f32 %v1120_v22, %v1117_v23 }
 0xb81   :  { %v1215_v26 = vpop.permute.xlu0 %1214 }
 0xb82   :  { %v1217_v27 = vmul.f32 %v5321_v25, %v1215_v26  ;;  %v1234_v28 = vrot.slane %v5926_v24, 6  ;;  %v5932_v21 = vsel %vm2106_vm6, %v5887_v19, %v5926_v24 }
 0xb84   :  { %1235 = vrot.lane.b32.xlu1 %v1234_v28, %s5566_s0  ;;  %1219 = vrot.lane.b32.xlu0 %v1217_v27, %s5565_s27 }
 0xbf6   :  { %v1220_v15 = vpop.permute.xlu0 %1219  ;;  %v1236_v16 = vpop.permute.xlu1 %1235 }
 0xbf7   :  { %v1222_v29 = vadd.f32 %v1220_v15, %v5785_v60  ;;  %4714 = vmatmul.mubr.msk.f32.vlgmr.msra.gmra.mrb[6].mxu0 %vm366_vm3, %v1236_v16 }
 0xbf8   :  { %5085 = vmatpush3.bf16.msra.mxu0 %v5722_v44  ;;  %4735 = vmatprep.mubr.msk.f32.mxu0 %vm5564_vm2, %v5562_v9 }
 0xbf9   :  { %5322 = vtanh.f32 %v1222_v29  ;;  %5086 = vmatprep.subr.bf16.mxu0 %v5563_v45 }
 0xbfa   :  { %5324 = vpow2.f32 %v4345_v31 }
 0xbfc   :  { %5088 = vmatpush3.bf16.msra.mxu0 %v5734_v48 }
 0xbfd   :  { %5095 = vmatprep.subr.bf16.mxu0 %v5563_v45 }
 0xc03   :  { %v5323_v19 = vpop.eup %5322 }
 0xc04   :  { %1226 = vrot.lane.b32.xlu1 %v5323_v19, %s5566_s0  ;;  %v5325_v32 = vpop.eup %5324 }
 0xc05   :  { %v1211_v33 = vadd.f32 1.0, %v5325_v32 }
 0xc07   :  { %5326 = vrcp.f32 %v1211_v33 }
 0xc11   :  { %v5327_v34 = vpop.eup %5326 }
 0xc12   :  { %v1224_v35 = vsub.f32 1.0, %v5327_v34  ;;  %v1231_v37 = vmul.f32 %v5327_v34, %v1123_v42 }
 0xc76   :  { %v1227_v36 = vpop.permute.xlu1 %1226 }
 0xc77   :  { %v1229_v38 = vmul.f32 %v1227_v36, %v1224_v35 }
 0xc79   :  { %v5950_v39 = vadd.f32 %v1231_v37, %v1229_v38 }
 0xc7b   :  { %4725 = vmatmul.mubr.msk.f32.vlgmr.msra.gmra.mrb[16].mxu1 %vm366_vm3, %v5950_v39  ;;  %v1444_v22 = vrot.slane %v5950_v39, 2 }
 0xc7c   :  { %5091 = vmatpush3.bf16.msra.mxu1 %v5754_v53  ;;  %4746 = vmatprep.mubr.msk.f32.mxu1 %vm5564_vm2, %v5562_v9 }
 0xc7d   :  { %5092 = vmatprep.subr.bf16.mxu1 %v5563_v45 }
 0xc80   :  { %5094 = vmatpush3.bf16.msra.mxu1 %v5765_v56 }
 0xc81   :  { %5101 = vmatprep.subr.bf16.mxu1 %v5563_v45 }
 0xcca   :  { %v1305_v60 = vpop.f32.mrb[6].mxu0 }
 0xccb   :  { %v1306_v40 = vadd.f32 %v5790_v61, %v1305_v60  ;;  %v4715_v42 = vpop.f32.mrb[7].mxu0 }
 0xccd   :  { %v1309_v43 = vadd.f32 %v1306_v40, %v5783_v59  ;;  %1317 = vrot.lane.b32.xlu0 %v1306_v40, %s5565_s27 }
 0xccf   :  { %v4347_v46 = vmul.f32 -1.442695, %v1309_v43 }
 0xcd1   :  { %5328 = vpow2.f32 %v4347_v46 }
 0xcdb   :  { %v5329_v47 = vpop.eup %5328 }
 0xcdc   :  { %v1313_v50 = vadd.f32 1.0, %v5329_v47 }
 0xcde   :  { %5330 = vrcp.f32 %v1313_v50 }
 0xce8   :  { %v5331_v52 = vpop.eup %5330 }
 0xce9   :  { %v1327_v27 = vsub.f32 1.0, %v5331_v52  ;;  %v1334_v16 = vmul.f32 %v5331_v52, %v1234_v28 }
 0xd3f   :  { %v1318_v54 = vpop.permute.xlu0 %1317 }
 0xd40   :  { %v1320_v55 = vmul.f32 %v5331_v52, %v1318_v54 }
 0xd42   :  { %1322 = vrot.lane.b32.xlu1 %v1320_v55, %s5565_s27 }
 0xd4e   :  { %v1405_v62 = vpop.f32.mrb[16].mxu1 }
 0xd4f   :  { %v1406_v63 = vadd.f32 %v5798_v7, %v1405_v62  ;;  %v4726_v0 = vpop.f32.mrb[17].mxu1 }
 0xd51   :  { %v1410_v1 = vrot.slane %v1406_v63, 2 }
 0xd53   :  { %1411 = vrot.lane.b32.xlu0 %v1410_v1, %s5566_s0 }
 0xd57   :  { %1428 = vrot.lane.b32.xlu0 %v1410_v1, %s5567_s17 }
 0xdb4   :  { %v1323_v2 = vpop.permute.xlu1 %1322 }
 0xdb5   :  { %v1325_v3 = vadd.f32 %v1323_v2, %v5783_v59 }
 0xdb7   :  { %5332 = vtanh.f32 %v1325_v3 }
 0xdc1   :  { %v5333_v4 = vpop.eup %5332 }
 0xdc2   :  { %1329 = vrot.lane.b32.xlu1 %v5333_v4, %s5566_s0 }
 0xdc5   :  { %v1412_v5 = vpop.permute.xlu0 %1411 }
 0xdc6   :  { %v1414_v6 = vadd.f32 %v1412_v5, %v5779_v57  ;;  %v1421_v8 = vadd.f32 %v1412_v5, %v5781_v58 }
 0xdc8   :  { %v4349_v10 = vmul.f32 -1.442695, %v1414_v6  ;;  %v4350_v11 = vmul.f32 -1.442695, %v1421_v8 }
 0xdc9   :  { %v1429_v20 = vpop.permute.xlu0 %1428 }
 0xdca   :  { %5334 = vpow2.f32 %v4349_v10 }
 0xdcb   :  { %5336 = vpow2.f32 %v4350_v11 }
 0xdd4   :  { %v5335_v12 = vpop.eup %5334 }
 0xdd5   :  { %v5337_v13 = vpop.eup %5336  ;;  %v1418_v14 = vadd.f32 1.0, %v5335_v12 }
 0xdd6   :  { %v1425_v17 = vadd.f32 1.0, %v5337_v13 }
 0xdd7   :  { %5338 = vrcp.f32 %v1418_v14 }
 0xdd8   :  { %5340 = vrcp.f32 %v1425_v17 }
 0xde1   :  { %v5339_v18 = vpop.eup %5338 }
 0xde2   :  { %v5341_v23 = vpop.eup %5340  ;;  %v1431_v25 = vmul.f32 %v5339_v18, %v1429_v20 }
 0xde3   :  { %v1446_v26 = vmul.f32 %v5341_v23, %v1444_v22  ;;  %v1438_v24 = vsub.f32 1.0, %v5341_v23 }
 0xde4   :  { %1433 = vrot.lane.b32.xlu0 %v1431_v25, %s5565_s27 }
 0xe34   :  { %v1330_v15 = vpop.permute.xlu1 %1329 }
 0xe35   :  { %v1332_v29 = vmul.f32 %v1330_v15, %v1327_v27 }
 0xe37   :  { %v5975_v19 = vadd.f32 %v1334_v16, %v1332_v29 }
 0xe39   :  { %1449 = vrot.lane.b32.xlu1 %v5975_v19, %s5566_s0  ;;  %v1549_v20 = vrot.slane %v5975_v19, 6 }
 0xe56   :  { %v1434_v30 = vpop.permute.xlu0 %1433 }
 0xe57   :  { %v1436_v31 = vadd.f32 %v1434_v30, %v5781_v58 }
 0xe59   :  { %5342 = vtanh.f32 %v1436_v31 }
 0xe63   :  { %v5343_v32 = vpop.eup %5342 }
 0xe64   :  { %1440 = vrot.lane.b32.xlu1 %v5343_v32, %s5566_s0 }
 0xeab   :  { %v1450_v33 = vpop.permute.xlu1 %1449 }
 0xeac   :  { %4736 = vmatmul.mubr.msk.f32.vlgmr.msra.gmra.mrb[8].mxu0 %vm366_vm3, %v1450_v33 }
 0xead   :  { %5097 = vmatpush3.bf16.msra.mxu0 %v5722_v44  ;;  %4757 = vmatprep.mubr.msk.f32.mxu0 %vm5564_vm2, %v5562_v9 }
 0xeae   :  { %5098 = vmatprep.subr.bf16.mxu0 %v5563_v45 }
 0xeb1   :  { %5100 = vmatpush3.bf16.msra.mxu0 %v5734_v48 }
 0xeb2   :  { %5107 = vmatprep.subr.bf16.mxu0 %v5563_v45 }
 0xed6   :  { %v1441_v28 = vpop.permute.xlu1 %1440 }
 0xed7   :  { %v1443_v34 = vmul.f32 %v1441_v28, %v1438_v24 }
 0xed9   :  { %v5988_v35 = vadd.f32 %v1446_v26, %v1443_v34 }
 0xedb   :  { %v1554_v36 = vrot.slane %v5988_v35, 6  ;;  %v1662_v24 = vrot.slane %v5988_v35, 2 }
 0xedd   :  { %4747 = vmatmul.mubr.msk.f32.vlgmr.msra.gmra.mrb[18].mxu1 %vm366_vm3, %v1554_v36 }
 0xede   :  { %5103 = vmatpush3.bf16.msra.mxu1 %v5754_v53  ;;  %4768 = vmatprep.mubr.msk.f32.mxu1 %vm5564_vm2, %v5562_v9 }
 0xedf   :  { %5104 = vmatprep.subr.bf16.mxu1 %v5563_v45 }
 0xee2   :  { %5106 = vmatpush3.bf16.msra.mxu1 %v5765_v56 }
 0xee3   :  { %5113 = vmatprep.subr.bf16.mxu1 %v5563_v45 }
 0xf7f   :  { %v1519_v37 = vpop.f32.mrb[8].mxu0 }
 0xf80   :  { %v1520_v38 = vadd.f32 %v5790_v61, %v1519_v37  ;;  %v4737_v60 = vpop.f32.mrb[9].mxu0 }
 0xf82   :  { %v1524_v40 = vrot.slane %v1520_v38, 6 }
 0xf84   :  { %v1526_v42 = vadd.f32 %v1524_v40, %v5783_v59  ;;  %1533 = vrot.lane.b32.xlu0 %v1524_v40, %s5565_s27 }
 0xf86   :  { %v4352_v52 = vmul.f32 -1.442695, %v1526_v42 }
 0xf88   :  { %5344 = vpow2.f32 %v4352_v52 }
 0xf92   :  { %v5345_v54 = vpop.eup %5344 }
 0xf93   :  { %v1530_v55 = vadd.f32 1.0, %v5345_v54 }
 0xf95   :  { %5346 = vrcp.f32 %v1530_v55 }
 0xf9f   :  { %v5347_v62 = vpop.eup %5346 }
 0xfa0   :  { %v1543_v18 = vsub.f32 1.0, %v5347_v62  ;;  %v1551_v23 = vmul.f32 %v5347_v62, %v1549_v20 }
 0xfb0   :  { %v1623_v43 = vpop.f32.mrb[18].mxu1 }
 0xfb1   :  { %v1624_v46 = vadd.f32 %v5798_v7, %v1623_v43  ;;  %v4748_v47 = vpop.f32.mrb[19].mxu1 }
 0xfb3   :  { %v1628_v50 = vrot.slane %v1624_v46, 4 }
 0xfb5   :  { %1629 = vrot.lane.b32.xlu0 %v1628_v50, %s5566_s0 }
 0xff6   :  { %v1534_v63 = vpop.permute.xlu0 %1533 }
 0xff7   :  { %v1536_v0 = vmul.f32 %v5347_v62, %v1534_v63 }
 0xff9   :  { %1538 = vrot.lane.b32.xlu1 %v1536_v0, %s5565_s27 }
 0xffd   :  { %1646 = vrot.lane.b32.xlu1 %v1628_v50, %s5567_s17 }
0x1027   :  { %v1630_v1 = vpop.permute.xlu0 %1629 }
0x1028   :  { %v1632_v2 = vadd.f32 %v1630_v1, %v5779_v57  ;;  %v1639_v16 = vadd.f32 %v1630_v1, %v5781_v58 }
0x102a   :  { %v4354_v3 = vmul.f32 -1.442695, %v1632_v2  ;;  %v4355_v29 = vmul.f32 -1.442695, %v1639_v16 }
0x102c   :  { %5348 = vpow2.f32 %v4354_v3 }
0x1036   :  { %v5349_v4 = vpop.eup %5348 }
0x1037   :  { %v1636_v5 = vadd.f32 1.0, %v5349_v4 }
0x1039   :  { %5350 = vrcp.f32 %v1636_v5 }
0x1043   :  { %v5351_v10 = vpop.eup %5350 }
0x106b   :  { %v1539_v6 = vpop.permute.xlu1 %1538 }
0x106c   :  { %v1541_v8 = vadd.f32 %v1539_v6, %v5783_v59 }
0x106e   :  { %5352 = vtanh.f32 %v1541_v8 }
0x106f   :  { %v1647_v11 = vpop.permute.xlu1 %1646 }
0x1070   :  { %v1649_v12 = vmul.f32 %v5351_v10, %v1647_v11 }
0x1072   :  { %1651 = vrot.lane.b32.xlu1 %v1649_v12, %s5565_s27 }
0x1078   :  { %v5353_v13 = vpop.eup %5352 }
0x1079   :  { %1545 = vrot.lane.b32.xlu0 %v5353_v13, %s5566_s0 }
0x10e4   :  { %v1652_v14 = vpop.permute.xlu1 %1651 }
0x10e5   :  { %v1654_v17 = vadd.f32 %v1652_v14, %v5781_v58 }
0x10e7   :  { %5354 = vtanh.f32 %v1654_v17 }
0x10e8   :  { %5356 = vpow2.f32 %v4355_v29 }
0x10eb   :  { %v1546_v22 = vpop.permute.xlu0 %1545 }
0x10ec   :  { %v1548_v25 = vmul.f32 %v1546_v22, %v1543_v18 }
0x10ee   :  { %v6011_v26 = vadd.f32 %v1551_v23, %v1548_v25 }
0x10f0   :  { %v1667_v27 = vrot.slane %v6011_v26, 2  ;;  %v1768_v20 = vrot.slane %v6011_v26, 6 }
0x10f1   :  { %v5355_v15 = vpop.eup %5354 }
0x10f2   :  { %1658 = vrot.lane.b32.xlu1 %v5355_v15, %s5566_s0  ;;  %1668 = vrot.lane.b32.xlu0 %v1667_v27, %s5566_s0  ;;  %v5357_v30 = vpop.eup %5356  ;;  %v2108_v15 = vsel %vm2102_vm4, %v5975_v19, %v6011_v26 }
0x10f3   :  { %v1643_v31 = vadd.f32 1.0, %v5357_v30 }
0x10f5   :  { %5358 = vrcp.f32 %v1643_v31 }
0x10ff   :  { %v5359_v32 = vpop.eup %5358 }
0x1100   :  { %v1656_v33 = vsub.f32 1.0, %v5359_v32  ;;  %v1664_v36 = vmul.f32 %v5359_v32, %v1662_v24 }
0x1164   :  { %v1659_v28 = vpop.permute.xlu1 %1658  ;;  %v1669_v34 = vpop.permute.xlu0 %1668 }
0x1165   :  { %v1661_v37 = vmul.f32 %v1659_v28, %v1656_v33  ;;  %4758 = vmatmul.mubr.msk.f32.vlgmr.msra.gmra.mrb[10].mxu0 %vm366_vm3, %v1669_v34 }
0x1166   :  { %5109 = vmatpush3.bf16.msra.mxu0 %v5722_v44  ;;  %4779 = vmatprep.mubr.msk.f32.mxu0 %vm5564_vm2, %v5562_v9 }
0x1167   :  { %v6022_v38 = vadd.f32 %v1664_v36, %v1661_v37  ;;  %5110 = vmatprep.subr.bf16.mxu0 %v5563_v45 }
0x1169   :  { %v1773_v60 = vrot.slane %v6022_v38, 4  ;;  %v1881_v24 = vrot.slane %v6022_v38, 2 }
0x116a   :  { %5112 = vmatpush3.bf16.msra.mxu0 %v5734_v48 }
0x116b   :  { %4769 = vmatmul.mubr.msk.f32.vlgmr.msra.gmra.mrb[20].mxu1 %vm366_vm3, %v1773_v60 }
0x116c   :  { %5115 = vmatpush3.bf16.msra.mxu1 %v5754_v53  ;;  %4790 = vmatprep.mubr.msk.f32.mxu1 %vm5564_vm2, %v5562_v9 }
0x116d   :  { %5116 = vmatprep.subr.bf16.mxu1 %v5563_v45 }
0x1170   :  { %5118 = vmatpush3.bf16.msra.mxu1 %v5765_v56 }
0x1171   :  { %5135 = vmatprep.subr.bf16.mxu1 %v5563_v45 }
0x1238   :  { %v1738_v44 = vpop.f32.mrb[10].mxu0 }
0x1239   :  { %v1739_v40 = vadd.f32 %v5790_v61, %v1738_v44  ;;  %v4759_v42 = vpop.f32.mrb[11].mxu0  ;;  %v5520_v44 = vld [vmem:[%s6656_s9] ss:$0 sm:$0xff] }
0x123b   :  { %v1743_v43 = vrot.slane %v1739_v40, 4 }
0x123d   :  { %v1745_v48 = vadd.f32 %v1743_v43, %v5783_v59  ;;  %1752 = vrot.lane.b32.xlu0 %v1743_v43, %s5565_s27 }
0x123e   :  { %v1842_v46 = vpop.f32.mrb[20].mxu1 }
0x123f   :  { %v1843_v53 = vadd.f32 %v5798_v7, %v1842_v46  ;;  %v4770_v47 = vpop.f32.mrb[21].mxu1  ;;  %v4357_v56 = vmul.f32 -1.442695, %v1745_v48  ;;  %v5521_v48 = vld [vmem:[%s6654_s7] ss:$0 sm:$0xff] }
0x1241   :  { %v1847_v50 = vrot.slane %v1843_v53, 6  ;;  %5360 = vpow2.f32 %v4357_v56 }
0x1243   :  { %1848 = vrot.lane.b32.xlu1 %v1847_v50, %s5566_s0 }
0x1247   :  { %1865 = vrot.lane.b32.xlu1 %v1847_v50, %s5567_s17 }
0x124b   :  { %v5361_v52 = vpop.eup %5360 }
0x124c   :  { %v1749_v54 = vadd.f32 1.0, %v5361_v52 }
0x124e   :  { %5362 = vrcp.f32 %v1749_v54 }
0x1258   :  { %v5363_v61 = vpop.eup %5362 }
0x1259   :  { %v1762_v18 = vsub.f32 1.0, %v5363_v61  ;;  %v1770_v23 = vmul.f32 %v5363_v61, %v1768_v20  ;;  %v2132_v20 = vld [vmem:[%s6657_s10 + $0x78] sm:$0xff] }
0x12af   :  { %v1753_v55 = vpop.permute.xlu0 %1752 }
0x12b0   :  { %v1755_v62 = vmul.f32 %v5363_v61, %v1753_v55 }
0x12b2   :  { %1757 = vrot.lane.b32.xlu0 %v1755_v62, %s5565_s27 }
0x12b5   :  { %v1849_v63 = vpop.permute.xlu1 %1848 }
0x12b6   :  { %v1851_v0 = vadd.f32 %v1849_v63, %v5779_v57  ;;  %v1858_v7 = vadd.f32 %v1849_v63, %v5781_v58 }
0x12b8   :  { %v4359_v1 = vmul.f32 -1.442695, %v1851_v0  ;;  %v4360_v17 = vmul.f32 -1.442695, %v1858_v7 }
0x12b9   :  { %v1866_v5 = vpop.permute.xlu1 %1865 }
0x12ba   :  { %5364 = vpow2.f32 %v4359_v1 }
0x12c4   :  { %v5365_v2 = vpop.eup %5364 }
0x12c5   :  { %v1855_v3 = vadd.f32 1.0, %v5365_v2 }
0x12c7   :  { %5366 = vrcp.f32 %v1855_v3 }
0x12d1   :  { %v5367_v4 = vpop.eup %5366 }
0x12d2   :  { %v1868_v6 = vmul.f32 %v5367_v4, %v1866_v5 }
0x12d4   :  { %1870 = vrot.lane.b32.xlu1 %v1868_v6, %s5565_s27 }
0x1324   :  { %v1758_v8 = vpop.permute.xlu0 %1757 }
0x1325   :  { %v1760_v10 = vadd.f32 %v1758_v8, %v5783_v59  ;;  %v2126_v8 = vld [vmem:[%s6657_s10 + $0x48] sm:$0xff] }
0x1327   :  { %5368 = vtanh.f32 %v1760_v10  ;;  %v2128_v10 = vld [vmem:[%s6657_s10 + $0x58] sm:$0xff] }
0x1331   :  { %v5369_v11 = vpop.eup %5368 }
0x1332   :  { %1764 = vrot.lane.b32.xlu0 %v5369_v11, %s5566_s0  ;;  %v5119_v11 = vpack.c.bf16 %v2128_v10, %v2126_v8 }
0x1334   :  { %5120 = vmatprep.subr.bf16.mxu0 %v5119_v11  ;;  %v2121_v11 = vld [vmem:[%s6657_s10 + $0x20] sm:$0xff] }
0x1346   :  { %v1871_v12 = vpop.permute.xlu1 %1870 }
0x1347   :  { %v1873_v13 = vadd.f32 %v1871_v12, %v5781_v58  ;;  %v2125_v12 = vld [vmem:[%s6657_s10 + $0x40] sm:$0xff] }
0x1349   :  { %5370 = vtanh.f32 %v1873_v13  ;;  %v2127_v13 = vld [vmem:[%s6657_s10 + $0x50] sm:$0xff] }
0x134a   :  { %5372 = vpow2.f32 %v4360_v17 }
0x1353   :  { %v5371_v14 = vpop.eup %5370 }
0x1354   :  { %1877 = vrot.lane.b32.xlu1 %v5371_v14, %s5566_s0  ;;  %v5373_v30 = vpop.eup %5372 }
0x1355   :  { %v1862_v31 = vadd.f32 1.0, %v5373_v30  ;;  %v2120_v30 = vld [vmem:[%s6657_s10 + $0x18] sm:$0xff] }
0x1357   :  { %5374 = vrcp.f32 %v1862_v31 }
0x1361   :  { %v5375_v32 = vpop.eup %5374 }
0x1362   :  { %v1875_v33 = vsub.f32 1.0, %v5375_v32  ;;  %v1883_v34 = vmul.f32 %v5375_v32, %v1881_v24  ;;  %v2303_v32 = vld [vmem:[%s6658_s11] sm:$0xff] }
0x13a4   :  { %v1765_v22 = vpop.permute.xlu0 %1764 }
0x13a5   :  { %v1767_v25 = vmul.f32 %v1765_v22, %v1762_v18  ;;  %v2130_v18 = vld [vmem:[%s6657_s10 + $0x68] sm:$0xff] }
0x13a6   :  { %v5123_v22 = vpack.c.bf16 %v2132_v20, %v2130_v18  ;;  %v6236_v18 = vld [vmem:[%s6659_s12] ss:$0 sm:$0xff] }
0x13a7   :  { %v6049_v27 = vadd.f32 %v1770_v23, %v1767_v25  ;;  %v2129_v23 = vld [vmem:[%s6657_s10 + $0x60] sm:$0xff]  ;;  %v2131_v25 = vld [vmem:[%s6657_s10 + $0x70] sm:$0xff] }
0x13a9   :  { %v1886_v16 = vrot.slane %v6049_v27, 4  ;;  %v6057_v29 = vsel %vm2104_vm5, %v2108_v15, %v6049_v27  ;;  %v5125_v15 = vpack.c.bf16 %v2131_v25, %v2129_v23 }
0x13ab   :  { %1887 = vrot.lane.b32.xlu0 %v1886_v16, %s5566_s0  ;;  %v2118_v16 = vld [vmem:[%s6657_s10 + $0x8] sm:$0xff] }
0x13ac   :  { %v5127_v31 = vpack.c.bf16 %v2120_v30, %v2118_v16 }
0x13c6   :  { %v1878_v28 = vpop.permute.xlu1 %1877 }
0x13c7   :  { %v1880_v36 = vmul.f32 %v1878_v28, %v1875_v33  ;;  %v2304_v33 = vld [vmem:[%s6658_s11 + $0x8] sm:$0xff] }
0x13c8   :  { %v6128_v28 = vpack.c.bf16 %v2304_v33, %v2303_v32  ;;  %v6250_v32 = vld [vmem:[%s6661_s14] ss:$0 sm:$0xff] }
0x13c9   :  { %v6061_v37 = vadd.f32 %v1883_v34, %v1880_v36  ;;  %v2305_v34 = vld [vmem:[%s6658_s11 + $0x10] sm:$0xff]  ;;  %v2306_v36 = vld [vmem:[%s6658_s11 + $0x18] sm:$0xff] }
0x13cb   :  { %v1992_v19 = vrot.slane %v6061_v37, 2 }
0x13cd   :  { %4791 = vmatmul.mubr.msk.f32.vlgmr.msra.gmra.mrb[22].mxu1 %vm366_vm3, %v1992_v19 }
0x13ce   :  { %4801 = vmatprep.mubr.msk.f32.mxu1 %vm5564_vm2, %v5562_v9  ;;  %5137 = vmatpush3.bf16.msra.mxu1 %v6128_v28 }
0x13cf   :  { %5138 = vmatprep.subr.bf16.mxu1 %v5563_v45 }
0x141d   :  { %v1888_v26 = vpop.permute.xlu0 %1887 }
0x141e   :  { %4780 = vmatmul.mubr.msk.f32.vlgmr.msra.gmra.mrb[12].mxu0 %vm366_vm3, %v1888_v26 }
0x141f   :  { %2203 = vmatprep.mubr.f32.mxu0 %v5562_v9 }
0x14a0   :  { %v2061_v60 = vpop.f32.mrb[22].mxu1 }
0x14a1   :  { %v2062_v40 = vadd.f32 %v5520_v44, %v2061_v60  ;;  %v4792_v42 = vpop.f32.mrb[23].mxu1  ;;  %v6139_v60 = vpack.c.bf16 %v2306_v36, %v2305_v34  ;;  %v2308_v44 = vld [vmem:[%s6660_s13] sm:$0xff]  ;;  %v5568_v34 = vmov 0  }
0x14a2   :  { %v2310_v42 = vld [vmem:[%s6660_s13 + $0x10] sm:$0xff]  ;;  %5262 = vset.pattern.permute.xlu1 %v5568_v34  ;;  %5263 = vset.pattern.permute.xlu0 %v5568_v34 }
0x14a3   :  { %2066 = vrot.lane.b32.xlu1 %v2062_v40, %s5566_s0  ;;  %5140 = vmatpush3.bf16.msra.mxu1 %v6139_v60 }
0x14a4   :  { %5141 = vmatprep.subr.bf16.mxu1 %v5563_v45 }
0x14a6   :  { %4802 = vmatmul.mubr.f32.vlgmr.msra.gmra.mrb[24].mxu1 %v5562_v9 }
0x14a7   :  { %4812 = vmatprep.mubr.msk.f32.mxu1 %vm5564_vm2, %v5562_v9 }
0x14f1   :  { %v1957_v43 = vpop.f32.mrb[12].mxu0 }
0x14f2   :  { %v1958_v46 = vadd.f32 %v5521_v48, %v1957_v43  ;;  %v4781_v53 = vpop.f32.mrb[13].mxu0 }
0x14f4   :  { %v1962_v47 = vrot.slane %v1958_v46, 2 }
0x14f6   :  { %v1964_v50 = vadd.f32 %v1962_v47, %v5783_v59  ;;  %1971 = vrot.lane.b32.xlu0 %v1962_v47, %s5565_s27 }
0x14f8   :  { %v4362_v52 = vmul.f32 -1.442695, %v1964_v50 }
0x14fa   :  { %2083 = vrot.lane.b32.xlu0 %v2062_v40, %s5567_s17  ;;  %5376 = vpow2.f32 %v4362_v52  ;;  %v2309_v40 = vld [vmem:[%s6660_s13 + $0x8] sm:$0xff] }
0x14fb   :  { %v6155_v43 = vpack.c.bf16 %v2309_v40, %v2308_v44 }
0x14fd   :  { %5143 = vmatpush3.bf16.msra.mxu1 %v6155_v43 }
0x14fe   :  { %5144 = vmatprep.subr.bf16.mxu1 %v5563_v45 }
0x1504   :  { %v5377_v55 = vpop.eup %5376 }
0x1505   :  { %v1968_v62 = vadd.f32 1.0, %v5377_v55 }
0x1515   :  { %v6081_v56 = vpop.permute.xlu1 %2066 }
0x1516   :  { %v2069_v54 = vadd.f32 %v6081_v56, %v5779_v57  ;;  %v2076_v46 = vadd.f32 %v6081_v56, %v5781_v58 }
0x1518   :  { %v4364_v61 = vmul.f32 -1.442695, %v2069_v54  ;;  %v4365_v53 = vmul.f32 -1.442695, %v2076_v46  ;;  %v1987_v54 = vrot.slane %v6049_v27, 6  ;;  %v2117_v27 = vld [vmem:[%s6657_s10] sm:$0xff] }
0x151a   :  { %5378 = vpow2.f32 %v4364_v61 }
0x151b   :  { %5380 = vrcp.f32 %v1968_v62 }
0x1524   :  { %v5379_v63 = vpop.eup %5378 }
0x1525   :  { %v2073_v0 = vadd.f32 1.0, %v5379_v63  ;;  %v6085_v7 = vpop.eup %5380 }
0x1526   :  { %v1981_v52 = vsub.f32 1.0, %v6085_v7  ;;  %v1989_v62 = vmul.f32 %v6085_v7, %v1987_v54 }
0x1527   :  { %5382 = vrcp.f32 %v2073_v0 }
0x1531   :  { %v5383_v3 = vpop.eup %5382 }
0x1568   :  { %v1972_v1 = vpop.permute.xlu0 %1971 }
0x1569   :  { %v1974_v2 = vmul.f32 %v6085_v7, %v1972_v1  ;;  %v2119_v7 = vld [vmem:[%s6657_s10 + $0x10] sm:$0xff] }
0x156b   :  { %1976 = vrot.lane.b32.xlu1 %v1974_v2, %s5565_s27 }
0x156c   :  { %v2084_v4 = vpop.permute.xlu0 %2083 }
0x156d   :  { %v2086_v5 = vmul.f32 %v5383_v3, %v2084_v4 }
0x156f   :  { %2088 = vrot.lane.b32.xlu0 %v2086_v5, %s5565_s27  ;;  %v2122_v5 = vld [vmem:[%s6657_s10 + $0x28] sm:$0xff] }
0x15dd   :  { %v1977_v57 = vpop.permute.xlu1 %1976 }
0x15de   :  { %v1979_v6 = vadd.f32 %v1977_v57, %v5783_v59  ;;  %v5121_v59 = vpack.c.bf16 %v2127_v13, %v2125_v12  ;;  %v5129_v57 = vpack.c.bf16 %v2119_v7, %v2117_v27  ;;  %v2123_v12 = vld [vmem:[%s6657_s10 + $0x30] sm:$0xff] }
0x15e0   :  { %5384 = vtanh.f32 %v1979_v6  ;;  %5122 = vmatpush1.bf16.msra.mxu0 %v5121_v59  ;;  %v2114_v6 = vsel %vm2102_vm4, %v5950_v39, %v5903_v41  ;;  %v5133_v39 = vpack.c.bf16 %v2123_v12, %v2121_v11 }
0x15e1   :  { %v2089_v14 = vpop.permute.xlu0 %2088  ;;  %5124 = vmatprep.subr.bf16.mxu0 %v5123_v22  ;;  %v2115_v41 = vsel %vm2104_vm5, %v2114_v6, %v5862_v49 }
0x15e2   :  { %v2091_v17 = vadd.f32 %v2089_v14, %v5781_v58 }
0x15e4   :  { %5386 = vtanh.f32 %v2091_v17  ;;  %5126 = vmatpush1.bf16.msra.mxu0 %v5125_v15 }
0x15e5   :  { %5128 = vmatprep.subr.bf16.mxu0 %v5127_v31  ;;  %5388 = vpow2.f32 %v4365_v53 }
0x15ea   :  { %v5385_v24 = vpop.eup %5384 }
0x15eb   :  { %1983 = vrot.lane.b32.xlu1 %v5385_v24, %s5566_s0 }
0x15ee   :  { %v5387_v26 = vpop.eup %5386 }
0x15ef   :  { %2095 = vrot.lane.b32.xlu0 %v5387_v26, %s5566_s0  ;;  %2218 = vrot.lane.b32.xlu1 %v5932_v21, %s5566_s0  ;;  %v2311_v21 = vld [vmem:[%s6660_s13 + $0x18] sm:$0xff]  ;;  %v5389_v47 = vpop.eup %5388 }
0x15f0   :  { %v6162_v48 = vpack.c.bf16 %v2311_v21, %v2310_v42  ;;  %v2080_v50 = vadd.f32 1.0, %v5389_v47 }
0x15f2   :  { %5146 = vmatpush3.bf16.msra.mxu1 %v6162_v48  ;;  %5390 = vrcp.f32 %v2080_v50 }
0x15f3   :  { %5153 = vmatprep.subr.bf16.mxu1 %v5563_v45 }
0x15f5   :  { %4813 = vmatmul.mubr.f32.vlgmr.msra.gmra.mrb[26].mxu1 %v5562_v9 }
0x15f6   :  { %5155 = vmatpush3.bf16.msra.mxu1 %v6155_v43  ;;  %4834 = vmatprep.mubr.msk.f32.mxu1 %vm5564_vm2, %v5562_v9 }
0x15f7   :  { %5156 = vmatprep.subr.bf16.mxu1 %v5563_v45 }
0x15fa   :  { %5158 = vmatpush3.bf16.msra.mxu1 %v6162_v48 }
0x15fb   :  { %5165 = vmatprep.subr.bf16.mxu1 %v5563_v45 }
0x15fc   :  { %v5391_v61 = vpop.eup %5390 }
0x15fd   :  { %v2093_v1 = vsub.f32 1.0, %v5391_v61  ;;  %v2100_v58 = vmul.f32 %v5391_v61, %v1992_v19  ;;  %v2124_v19 = vld [vmem:[%s6657_s10 + $0x38] sm:$0xff]  ;;  %v6260_v61 = vld [vmem:[%s6650_s3 + $0x8] sm:$0xff] }
0x15fe   :  { %v5131_v10 = vpack.c.bf16 %v2124_v19, %v2122_v5 }
0x165d   :  { %v1984_v55 = vpop.permute.xlu1 %1983 }
0x165e   :  { %v1986_v63 = vmul.f32 %v1984_v55, %v1981_v52  ;;  %v6266_v55 = vld [vmem:[%s6650_s3] sm:$0xff] }
0x1660   :  { %v1990_v0 = vadd.f32 %v1989_v62, %v1986_v63 }
0x1661   :  { %v2096_v2 = vpop.permute.xlu0 %2095 }
0x1662   :  { %v2098_v56 = vmul.f32 %v2096_v2, %v2093_v1  ;;  %v2110_v3 = vsel %vm2106_vm6, %v6057_v29, %v1990_v0 }
0x1663   :  { %2220 = vrot.lane.b32.xlu0 %v2110_v3, %s5566_s0 }
0x1664   :  { %v2101_v4 = vadd.f32 %v2100_v58, %v2098_v56 }
0x1666   :  { %v2111_v29 = vsel %vm2102_vm4, %v2101_v4, %v6061_v37 }
0x1667   :  { %v2112_v8 = vsel %vm2104_vm5, %v2111_v29, %v6022_v38  ;;  %v2116_v38 = vsel %vm2106_vm6, %v2115_v41, %v5825_v51  ;;  %v2381_v51 = vpop.f32.mrb[24].mxu1 }
0x1668   :  { %v2113_v37 = vsel %vm2106_vm6, %v2112_v8, %v5988_v35  ;;  %v2219_v35 = vpop.permute.xlu1 %2218  ;;  %v4803_v49 = vpop.f32.mrb[25].mxu1 }
0x1669   :  { %4366 = vmatmul.mubr.msk.f32.vlgmr.msra.gmra.mrb[14].mxu0 %vm366_vm3, %v2113_v37 }
0x166a   :  { %5130 = vmatpush1.bf16.msra.mxu0 %v5129_v57  ;;  %2209 = vmatprep.mubr.f32.mxu0 %v5562_v9 }
0x166b   :  { %5132 = vmatprep.subr.bf16.mxu0 %v5131_v10 }
0x166d   :  { %4367 = vmatmul.mubr.msk.f32.gmra.mrb[16].mxu0 %vm366_vm3, %v2116_v38 }
0x166e   :  { %5134 = vmatpush1.bf16.msra.mxu0 %v5133_v39  ;;  %2290 = vmatprep.mubr.f32.mxu0 %v5562_v9 }
0x166f   :  { %5147 = vmatprep.subr.bf16.mxu0 %v5563_v45 }
0x1671   :  { %4368 = vmatmul.mubr.msk.f32.vlgmr.msra.gmra.mrb[14].mxu0 %vm366_vm3, %v2219_v35 }
0x1672   :  { %2296 = vmatprep.mubr.f32.mxu0 %v5562_v9  ;;  %5149 = vmatpush3.bf16.msra.mxu0 %v6128_v28 }
0x1673   :  { %5150 = vmatprep.subr.bf16.mxu0 %v5563_v45 }
0x1676   :  { %5152 = vmatpush3.bf16.msra.mxu0 %v6139_v60 }
0x1677   :  { %5159 = vmatprep.subr.bf16.mxu0 %v5563_v45 }
0x16c8   :  { %v2483_v14 = vpop.f32.mrb[26].mxu1 }
0x16c9   :  { %v4814_v59 = vpop.f32.mrb[27].mxu1  ;;  %v2488_v16 = vrot.slane %v2483_v14, 2 }
0x16d5   :  { %v2221_v13 = vpop.permute.xlu0 %2220 }
0x16d6   :  { %4369 = vmatmul.mubr.msk.f32.gmra.mrb[16].mxu0 %vm366_vm3, %v2221_v13 }
0x16d7   :  { %4823 = vmatprep.mubr.msk.f32.mxu0 %vm5564_vm2, %v5562_v9 }
0x1744   :  { %v6231_v17 = vpop.f32.mrb[14].mxu0 }
0x1745   :  { %v2385_v20 = vadd.f32 %v2381_v51, %v6231_v17  ;;  %v6239_v22 = vpop.f32.mrb[15].mxu0 }
0x1747   :  { %v2392_v23 = vadd.f32 %v6236_v18, %v2385_v20 }
0x1749   :  { %5392 = vtanh.f32 %v2392_v23  ;;  %v4371_v15 = vmul.f32 -1.442695, %v2392_v23 }
0x174b   :  { %5394 = vpow2.f32 %v4371_v15 }
0x1753   :  { %v5393_v25 = vpop.eup %5392 }
0x1754   :  { %2402 = vrot.lane.b32.xlu0 %v5393_v25, %s5565_s27 }
0x1755   :  { %v5395_v36 = vpop.eup %5394 }
0x1756   :  { %v2396_v26 = vadd.f32 1.0, %v5395_v36 }
0x17a9   :  { %v6243_v30 = vpop.f32.mrb[16].mxu0 }
0x17aa   :  { %v6245_v31 = vpop.f32.mrb[17].mxu0 }
0x17ab   :  { %v2490_v33 = vadd.f32 %v2488_v16, %v6245_v31 }
0x17ad   :  { %v2497_v24 = vadd.f32 %v6250_v32, %v2490_v33 }
0x17af   :  { %5396 = vtanh.f32 %v2497_v24  ;;  %v4373_v46 = vmul.f32 -1.442695, %v2497_v24 }
0x17b0   :  { %5398 = vrcp.f32 %v2396_v26 }
0x17b1   :  { %5400 = vpow2.f32 %v4373_v46 }
0x17b9   :  { %v5397_v44 = vpop.eup %5396 }
0x17ba   :  { %2507 = vrot.lane.b32.xlu1 %v5397_v44, %s5565_s27  ;;  %v5399_v40 = vpop.eup %5398 }
0x17bb   :  { %v5401_v53 = vpop.eup %5400  ;;  %v2400_v1 = vmul.f32 0.0, %v5399_v40 }
0x17bc   :  { %v2501_v47 = vadd.f32 1.0, %v5401_v53 }
0x17be   :  { %5402 = vrcp.f32 %v2501_v47 }
0x17c6   :  { %v2403_v42 = vpop.permute.xlu0 %2402 }
0x17c7   :  { %v2405_v21 = vmul.f32 %v5399_v40, %v2403_v42 }
0x17c8   :  { %v5403_v50 = vpop.eup %5402 }
0x17c9   :  { %2407 = vrot.lane.b32.xlu0 %v2405_v21, %s5567_s17  ;;  %v2505_v62 = vmul.f32 0.0, %v5403_v50 }
0x182c   :  { %v2508_v52 = vpop.permute.xlu1 %2507 }
0x182d   :  { %v2510_v54 = vmul.f32 %v5403_v50, %v2508_v52 }
0x182f   :  { %2512 = vrot.lane.b32.xlu1 %v2510_v54, %s5567_s17 }
0x1833   :  { %2531 = vperm.xlu1 %5262, %v6260_v61  }
0x1837   :  { %2524 = vperm.xlu1 %5262, %v6266_v55  }
0x183b   :  { %v2408_v63 = vpop.permute.xlu0 %2407 }
0x183c   :  { %v6271_v58 = vadd.f32 %v2408_v63, %v2400_v1 }
0x18a1   :  { %v2513_v0 = vpop.permute.xlu1 %2512 }
0x18a2   :  { %v6269_v2 = vadd.f32 %v2513_v0, %v2505_v62 }
0x18a4   :  { %5404 = vtanh.f32 %v6269_v2 }
0x18a5   :  { %5406 = vtanh.f32 %v6271_v58 }
0x18ae   :  { %v5405_v56 = vpop.eup %5404 }
0x18af   :  { %2518 = vrot.lane.b32.xlu0 %v5405_v56, %s5565_s27  ;;  %v5407_v3 = vpop.eup %5406 }
0x18b2   :  { %v6277_v27 = vpop.permute.xlu1 %2531 }
0x18b3   :  { %2413 = vrot.lane.b32.xlu0 %v5407_v3, %s5565_s27  ;;  %v2535_v21 = vmul.f32 %v6277_v27, %v6269_v2 }
0x18b5   :  { %v2748_v53 = vrot.slane %v2535_v21, 2 }
0x18b6   :  { %v6283_v6 = vpop.permute.xlu1 %2524 }
0x18b7   :  { %v2528_v46 = vmul.f32 %v6283_v6, %v6271_v58 }
0x18b9   :  { %v2640_v52 = vrot.slane %v2528_v46, 6 }
0x1921   :  { %v2519_v7 = vpop.permute.xlu0 %2518 }
0x1922   :  { %v2521_v4 = vmul.f32 %v5403_v50, %v2519_v7 }
0x1924   :  { %v6280_v5 = vmul.f32 %v6277_v27, %v2521_v4 }
0x1925   :  { %v2414_v19 = vpop.permute.xlu0 %2413 }
0x1926   :  { %v2416_v29 = vmul.f32 %v5399_v40, %v2414_v19  ;;  %v2660_v57 = vrot.slane %v6280_v5, 6 }
0x1928   :  { %v6286_v8 = vmul.f32 %v6283_v6, %v2416_v29  ;;  %2661 = vrot.lane.b32.xlu1 %v2660_v57, %s5567_s17 }
0x192a   :  { %2553 = vrot.lane.b32.xlu0 %v6286_v8, %s5567_s17 }
0x199a   :  { %v2662_v10 = vpop.permute.xlu1 %2661 }
0x199b   :  { %4835 = vmatmul.mubr.msk.f32.vlgmr.msra.gmra.mrb[28].mxu1 %vm366_vm3, %v2662_v10 }
0x199c   :  { %v2554_v11 = vpop.permute.xlu0 %2553  ;;  %5167 = vmatpush3.bf16.msra.mxu1 %v6155_v43  ;;  %4856 = vmatprep.mubr.msk.f32.mxu1 %vm5564_vm2, %v5562_v9 }
0x199d   :  { %4824 = vmatmul.mubr.msk.f32.vlgmr.msra.gmra.mrb[18].mxu0 %vm366_vm3, %v2554_v11  ;;  %5168 = vmatprep.subr.bf16.mxu1 %v5563_v45 }
0x199e   :  { %5161 = vmatpush3.bf16.msra.mxu0 %v6128_v28  ;;  %4845 = vmatprep.mubr.msk.f32.mxu0 %vm5564_vm2, %v5562_v9 }
0x199f   :  { %5162 = vmatprep.subr.bf16.mxu0 %v5563_v45 }
0x19a0   :  { %5170 = vmatpush3.bf16.msra.mxu1 %v6162_v48 }
0x19a1   :  { %5177 = vmatprep.subr.bf16.mxu1 %v5563_v45 }
0x19a2   :  { %5164 = vmatpush3.bf16.msra.mxu0 %v6139_v60 }
0x19a3   :  { %5171 = vmatprep.subr.bf16.mxu0 %v5563_v45 }
0x1a6e   :  { %v2731_v12 = vpop.f32.mrb[28].mxu1 }
0x1a6f   :  { %v2736_v37 = vrot.slane %v2731_v12, 4  ;;  %v4836_v41 = vpop.f32.mrb[29].mxu1 }
0x1a70   :  { %v2623_v39 = vpop.f32.mrb[18].mxu0 }
0x1a71   :  { %v2738_v38 = vadd.f32 %v2736_v37, %v6245_v31  ;;  %v2628_v35 = vrot.slane %v2623_v39, 6  ;;  %v4825_v51 = vpop.f32.mrb[19].mxu0 }
0x1a73   :  { %v2739_v49 = vadd.f32 %v6250_v32, %v2738_v38  ;;  %v2630_v13 = vadd.f32 %v2628_v35, %v6231_v17 }
0x1a75   :  { %5408 = vtanh.f32 %v2739_v49  ;;  %v2631_v14 = vadd.f32 %v6236_v18, %v2630_v13  ;;  %v4379_v23 = vmul.f32 -1.442695, %v2739_v49 }
0x1a77   :  { %5410 = vtanh.f32 %v2631_v14  ;;  %v4377_v25 = vmul.f32 -1.442695, %v2631_v14 }
0x1a78   :  { %5412 = vpow2.f32 %v4379_v23 }
0x1a79   :  { %5414 = vpow2.f32 %v4377_v25 }
0x1a7f   :  { %v5409_v59 = vpop.eup %5408 }
0x1a80   :  { %2752 = vrot.lane.b32.xlu1 %v5409_v59, %s5565_s27 }
0x1a81   :  { %v5411_v20 = vpop.eup %5410 }
0x1a82   :  { %2644 = vrot.lane.b32.xlu0 %v5411_v20, %s5565_s27  ;;  %v5413_v15 = vpop.eup %5412 }
0x1a83   :  { %v5415_v16 = vpop.eup %5414  ;;  %v2743_v33 = vadd.f32 1.0, %v5413_v15 }
0x1a84   :  { %v2635_v24 = vadd.f32 1.0, %v5415_v16 }
0x1a85   :  { %5416 = vrcp.f32 %v2743_v33 }
0x1a86   :  { %5418 = vrcp.f32 %v2635_v24 }
0x1a8f   :  { %v5417_v34 = vpop.eup %5416 }
0x1a90   :  { %v5419_v44 = vpop.eup %5418  ;;  %v2750_v47 = vmul.f32 %v5417_v34, %v2748_v53 }
0x1a91   :  { %v2642_v62 = vmul.f32 %v5419_v44, %v2640_v52 }
0x1af2   :  { %v2753_v36 = vpop.permute.xlu1 %2752 }
0x1af3   :  { %v2755_v26 = vmul.f32 %v5417_v34, %v2753_v36 }
0x1af4   :  { %v2645_v40 = vpop.permute.xlu0 %2644 }
0x1af5   :  { %2757 = vrot.lane.b32.xlu1 %v2755_v26, %s5567_s17  ;;  %v2647_v42 = vmul.f32 %v5419_v44, %v2645_v40 }
0x1af7   :  { %2649 = vrot.lane.b32.xlu0 %v2647_v42, %s5567_s17 }
0x1b67   :  { %v2758_v50 = vpop.permute.xlu1 %2757 }
0x1b68   :  { %v6317_v54 = vadd.f32 %v2758_v50, %v2750_v47 }
0x1b69   :  { %v2650_v63 = vpop.permute.xlu0 %2649 }
0x1b6a   :  { %5420 = vtanh.f32 %v6317_v54  ;;  %v6320_v0 = vadd.f32 %v2650_v63, %v2642_v62  ;;  %v2770_v21 = vmul.f32 %v6317_v54, %v6277_v27 }
0x1b6c   :  { %5422 = vtanh.f32 %v6320_v0  ;;  %v2768_v46 = vmul.f32 %v6320_v0, %v6283_v6  ;;  %v2978_v53 = vrot.slane %v2770_v21, 2 }
0x1b6e   :  { %v2870_v50 = vrot.slane %v2768_v46, 6 }
0x1b74   :  { %v5421_v1 = vpop.eup %5420 }
0x1b75   :  { %2763 = vrot.lane.b32.xlu1 %v5421_v1, %s5565_s27 }
0x1b76   :  { %v5423_v2 = vpop.eup %5422 }
0x1b77   :  { %2655 = vrot.lane.b32.xlu0 %v5423_v2, %s5565_s27 }
0x1be7   :  { %v2764_v58 = vpop.permute.xlu1 %2763 }
0x1be8   :  { %v2766_v56 = vmul.f32 %v5417_v34, %v2764_v58 }
0x1be9   :  { %v2656_v7 = vpop.permute.xlu0 %2655 }
0x1bea   :  { %v6326_v3 = vmul.f32 %v2766_v56, %v6277_v27  ;;  %v2658_v4 = vmul.f32 %v5419_v44, %v2656_v7 }
0x1bec   :  { %v2890_v19 = vrot.slane %v6326_v3, 4  ;;  %v6330_v29 = vmul.f32 %v2658_v4, %v6283_v6 }
0x1bee   :  { %2891 = vrot.lane.b32.xlu1 %v2890_v19, %s5567_s17  ;;  %v2782_v57 = vrot.slane %v6330_v29, 2 }
0x1bf0   :  { %2783 = vrot.lane.b32.xlu0 %v2782_v57, %s5567_s17 }
0x1c60   :  { %v2892_v10 = vpop.permute.xlu1 %2891 }
0x1c61   :  { %4857 = vmatmul.mubr.msk.f32.vlgmr.msra.gmra.mrb[30].mxu1 %vm366_vm3, %v2892_v10 }
0x1c62   :  { %5179 = vmatpush3.bf16.msra.mxu1 %v6155_v43  ;;  %4878 = vmatprep.mubr.msk.f32.mxu1 %vm5564_vm2, %v5562_v9  ;;  %v2784_v11 = vpop.permute.xlu0 %2783 }
0x1c63   :  { %5180 = vmatprep.subr.bf16.mxu1 %v5563_v45  ;;  %4846 = vmatmul.mubr.msk.f32.vlgmr.msra.gmra.mrb[20].mxu0 %vm366_vm3, %v2784_v11 }
0x1c64   :  { %5173 = vmatpush3.bf16.msra.mxu0 %v6128_v28  ;;  %4867 = vmatprep.mubr.msk.f32.mxu0 %vm5564_vm2, %v5562_v9 }
0x1c65   :  { %5174 = vmatprep.subr.bf16.mxu0 %v5563_v45 }
0x1c66   :  { %5182 = vmatpush3.bf16.msra.mxu1 %v6162_v48 }
0x1c67   :  { %5189 = vmatprep.subr.bf16.mxu1 %v5563_v45 }
0x1c68   :  { %5176 = vmatpush3.bf16.msra.mxu0 %v6139_v60 }
0x1c69   :  { %5183 = vmatprep.subr.bf16.mxu0 %v5563_v45 }
0x1d34   :  { %v2961_v12 = vpop.f32.mrb[30].mxu1 }
0x1d35   :  { %v2966_v37 = vrot.slane %v2961_v12, 6  ;;  %v4858_v41 = vpop.f32.mrb[31].mxu1 }
0x1d36   :  { %v2853_v38 = vpop.f32.mrb[20].mxu0 }
0x1d37   :  { %v2968_v39 = vadd.f32 %v2966_v37, %v6245_v31  ;;  %v2858_v35 = vrot.slane %v2853_v38, 4  ;;  %v4847_v51 = vpop.f32.mrb[21].mxu0 }
0x1d39   :  { %v2969_v49 = vadd.f32 %v6250_v32, %v2968_v39  ;;  %v2860_v13 = vadd.f32 %v2858_v35, %v6231_v17 }
0x1d3b   :  { %5424 = vtanh.f32 %v2969_v49  ;;  %v2861_v14 = vadd.f32 %v6236_v18, %v2860_v13  ;;  %v4383_v23 = vmul.f32 -1.442695, %v2969_v49 }
0x1d3d   :  { %5426 = vtanh.f32 %v2861_v14  ;;  %v4381_v25 = vmul.f32 -1.442695, %v2861_v14 }
0x1d3e   :  { %5428 = vpow2.f32 %v4383_v23 }
0x1d3f   :  { %5430 = vpow2.f32 %v4381_v25 }
0x1d45   :  { %v5425_v59 = vpop.eup %5424 }
0x1d46   :  { %2982 = vrot.lane.b32.xlu1 %v5425_v59, %s5565_s27 }
0x1d47   :  { %v5427_v20 = vpop.eup %5426 }
0x1d48   :  { %2874 = vrot.lane.b32.xlu0 %v5427_v20, %s5565_s27  ;;  %v5429_v15 = vpop.eup %5428 }
0x1d49   :  { %v5431_v16 = vpop.eup %5430  ;;  %v2973_v33 = vadd.f32 1.0, %v5429_v15 }
0x1d4a   :  { %v2865_v24 = vadd.f32 1.0, %v5431_v16 }
0x1d4b   :  { %5432 = vrcp.f32 %v2973_v33 }
0x1d4c   :  { %5434 = vrcp.f32 %v2865_v24 }
0x1d55   :  { %v5433_v34 = vpop.eup %5432 }
0x1d56   :  { %v5435_v44 = vpop.eup %5434  ;;  %v2980_v47 = vmul.f32 %v5433_v34, %v2978_v53 }
0x1d57   :  { %v2872_v63 = vmul.f32 %v5435_v44, %v2870_v50 }
0x1db8   :  { %v2983_v36 = vpop.permute.xlu1 %2982 }
0x1db9   :  { %v2985_v26 = vmul.f32 %v5433_v34, %v2983_v36 }
0x1dba   :  { %v2875_v40 = vpop.permute.xlu0 %2874 }
0x1dbb   :  { %2987 = vrot.lane.b32.xlu1 %v2985_v26, %s5567_s17  ;;  %v2877_v42 = vmul.f32 %v5435_v44, %v2875_v40 }
0x1dbd   :  { %2879 = vrot.lane.b32.xlu0 %v2877_v42, %s5567_s17 }
0x1e2d   :  { %v2988_v52 = vpop.permute.xlu1 %2987 }
0x1e2e   :  { %v6361_v62 = vadd.f32 %v2988_v52, %v2980_v47 }
0x1e2f   :  { %v2880_v1 = vpop.permute.xlu0 %2879 }
0x1e30   :  { %5436 = vtanh.f32 %v6361_v62  ;;  %v6364_v2 = vadd.f32 %v2880_v1, %v2872_v63  ;;  %v3000_v42 = vmul.f32 %v6361_v62, %v6277_v27 }
0x1e32   :  { %5438 = vtanh.f32 %v6364_v2  ;;  %v3205_v21 = vrot.slane %v3000_v42, 2  ;;  %v2998_v46 = vmul.f32 %v6364_v2, %v6283_v6 }
0x1e34   :  { %v3100_v52 = vrot.slane %v2998_v46, 6 }
0x1e3a   :  { %v5437_v58 = vpop.eup %5436 }
0x1e3b   :  { %2993 = vrot.lane.b32.xlu1 %v5437_v58, %s5565_s27 }
0x1e3c   :  { %v5439_v54 = vpop.eup %5438 }
0x1e3d   :  { %2885 = vrot.lane.b32.xlu0 %v5439_v54, %s5565_s27 }
0x1ead   :  { %v2994_v0 = vpop.permute.xlu1 %2993 }
0x1eae   :  { %v2996_v56 = vmul.f32 %v5433_v34, %v2994_v0 }
0x1eaf   :  { %v2886_v4 = vpop.permute.xlu0 %2885 }
0x1eb0   :  { %v6370_v7 = vmul.f32 %v2996_v56, %v6277_v27  ;;  %v2888_v19 = vmul.f32 %v5435_v44, %v2886_v4 }
0x1eb2   :  { %v3120_v57 = vrot.slane %v6370_v7, 2  ;;  %v6374_v10 = vmul.f32 %v2888_v19, %v6283_v6 }
0x1eb4   :  { %3121 = vrot.lane.b32.xlu1 %v3120_v57, %s5567_s17  ;;  %v3012_v11 = vrot.slane %v6374_v10, 4 }
0x1eb6   :  { %3013 = vrot.lane.b32.xlu0 %v3012_v11, %s5567_s17 }
0x1f26   :  { %v3122_v12 = vpop.permute.xlu1 %3121 }
0x1f27   :  { %4879 = vmatmul.mubr.msk.f32.vlgmr.msra.gmra.mrb[32].mxu1 %vm366_vm3, %v3122_v12 }
0x1f28   :  { %5191 = vmatpush3.bf16.msra.mxu1 %v6155_v43  ;;  %4900 = vmatprep.mubr.msk.f32.mxu1 %vm5564_vm2, %v5562_v9  ;;  %v3014_v37 = vpop.permute.xlu0 %3013 }
0x1f29   :  { %5192 = vmatprep.subr.bf16.mxu1 %v5563_v45  ;;  %4868 = vmatmul.mubr.msk.f32.vlgmr.msra.gmra.mrb[22].mxu0 %vm366_vm3, %v3014_v37 }
0x1f2a   :  { %5185 = vmatpush3.bf16.msra.mxu0 %v6128_v28  ;;  %4889 = vmatprep.mubr.msk.f32.mxu0 %vm5564_vm2, %v5562_v9 }
0x1f2b   :  { %5186 = vmatprep.subr.bf16.mxu0 %v5563_v45 }
0x1f2c   :  { %5194 = vmatpush3.bf16.msra.mxu1 %v6162_v48 }
0x1f2d   :  { %5201 = vmatprep.subr.bf16.mxu1 %v5563_v45 }
0x1f2e   :  { %5188 = vmatpush3.bf16.msra.mxu0 %v6139_v60 }
0x1f2f   :  { %5195 = vmatprep.subr.bf16.mxu0 %v5563_v45 }
0x1ffa   :  { %v3191_v41 = vpop.f32.mrb[32].mxu1 }
0x1ffb   :  { %v3195_v39 = vadd.f32 %v3191_v41, %v6245_v31  ;;  %v4880_v38 = vpop.f32.mrb[33].mxu1 }
0x1ffc   :  { %v3083_v51 = vpop.f32.mrb[22].mxu0 }
0x1ffd   :  { %v3196_v35 = vadd.f32 %v6250_v32, %v3195_v39  ;;  %v3088_v49 = vrot.slane %v3083_v51, 2  ;;  %v4869_v13 = vpop.f32.mrb[23].mxu0 }
0x1fff   :  { %5440 = vtanh.f32 %v3196_v35  ;;  %v3090_v14 = vadd.f32 %v3088_v49, %v6231_v17  ;;  %v4387_v25 = vmul.f32 -1.442695, %v3196_v35 }
0x2001   :  { %v3091_v59 = vadd.f32 %v6236_v18, %v3090_v14 }
0x2003   :  { %5442 = vtanh.f32 %v3091_v59  ;;  %v4385_v31 = vmul.f32 -1.442695, %v3091_v59 }
0x2004   :  { %5444 = vpow2.f32 %v4387_v25 }
0x2005   :  { %5446 = vpow2.f32 %v4385_v31 }
0x2009   :  { %v5441_v20 = vpop.eup %5440 }
0x200a   :  { %3209 = vrot.lane.b32.xlu1 %v5441_v20, %s5565_s27 }
0x200d   :  { %v5443_v23 = vpop.eup %5442 }
0x200e   :  { %3104 = vrot.lane.b32.xlu0 %v5443_v23, %s5565_s27  ;;  %v5445_v15 = vpop.eup %5444 }
0x200f   :  { %v3200_v16 = vadd.f32 1.0, %v5445_v15  ;;  %v5447_v33 = vpop.eup %5446 }
0x2010   :  { %v3095_v24 = vadd.f32 1.0, %v5447_v33 }
0x2011   :  { %5448 = vrcp.f32 %v3200_v16 }
0x2012   :  { %5450 = vrcp.f32 %v3095_v24 }
0x201b   :  { %v5449_v17 = vpop.eup %5448 }
0x201c   :  { %v5451_v26 = vpop.eup %5450  ;;  %v3207_v53 = vmul.f32 %v5449_v17, %v3205_v21 }
0x201d   :  { %v3102_v63 = vmul.f32 %v5451_v26, %v3100_v52 }
0x207c   :  { %v3210_v34 = vpop.permute.xlu1 %3209 }
0x207d   :  { %v3212_v36 = vmul.f32 %v5449_v17, %v3210_v34 }
0x207f   :  { %3214 = vrot.lane.b32.xlu1 %v3212_v36, %s5567_s17 }
0x2080   :  { %v3105_v44 = vpop.permute.xlu0 %3104 }
0x2081   :  { %v3107_v40 = vmul.f32 %v5451_v26, %v3105_v44 }
0x2083   :  { %3109 = vrot.lane.b32.xlu0 %v3107_v40, %s5567_s17 }
0x20f1   :  { %v3215_v47 = vpop.permute.xlu1 %3214 }
0x20f2   :  { %v6405_v50 = vadd.f32 %v3215_v47, %v3207_v53 }
0x20f4   :  { %5452 = vtanh.f32 %v6405_v50  ;;  %v3227_v42 = vmul.f32 %v6405_v50, %v6277_v27 }
0x20f5   :  { %v3110_v1 = vpop.permute.xlu0 %3109 }
0x20f6   :  { %v6408_v58 = vadd.f32 %v3110_v1, %v3102_v63  ;;  %v3431_v21 = vrot.slane %v3227_v42, 2 }
0x20f8   :  { %5454 = vtanh.f32 %v6408_v58  ;;  %v3225_v46 = vmul.f32 %v6408_v58, %v6283_v6 }
0x20fa   :  { %v3324_v63 = vrot.slane %v3225_v46, 6 }
0x20fe   :  { %v5453_v54 = vpop.eup %5452 }
0x20ff   :  { %3220 = vrot.lane.b32.xlu1 %v5453_v54, %s5565_s27 }
0x2102   :  { %v5455_v62 = vpop.eup %5454 }
0x2103   :  { %3115 = vrot.lane.b32.xlu0 %v5455_v62, %s5565_s27 }
0x2171   :  { %v3221_v2 = vpop.permute.xlu1 %3220 }
0x2172   :  { %v3223_v0 = vmul.f32 %v5449_v17, %v3221_v2 }
0x2174   :  { %v6414_v56 = vmul.f32 %v3223_v0, %v6277_v27 }
0x2175   :  { %v3116_v4 = vpop.permute.xlu0 %3115 }
0x2176   :  { %3344 = vrot.lane.b32.xlu1 %v6414_v56, %s5567_s17  ;;  %v3118_v19 = vmul.f32 %v5451_v26, %v3116_v4 }
0x2178   :  { %v6419_v57 = vmul.f32 %v3118_v19, %v6283_v6 }
0x217a   :  { %v3239_v11 = vrot.slane %v6419_v57, 6 }
0x217c   :  { %3240 = vrot.lane.b32.xlu0 %v3239_v11, %s5567_s17 }
0x21e8   :  { %v3345_v12 = vpop.permute.xlu1 %3344 }
0x21e9   :  { %4901 = vmatmul.mubr.msk.f32.vlgmr.msra.gmra.mrb[34].mxu1 %vm366_vm3, %v3345_v12 }
0x21ea   :  { %5203 = vmatpush3.bf16.msra.mxu1 %v6155_v43  ;;  %4922 = vmatprep.mubr.msk.f32.mxu1 %vm5564_vm2, %v5562_v9 }
0x21eb   :  { %5204 = vmatprep.subr.bf16.mxu1 %v5563_v45 }
0x21ee   :  { %5206 = vmatpush3.bf16.msra.mxu1 %v6162_v48  ;;  %v3241_v37 = vpop.permute.xlu0 %3240 }
0x21ef   :  { %5213 = vmatprep.subr.bf16.mxu1 %v5563_v45  ;;  %4890 = vmatmul.mubr.msk.f32.vlgmr.msra.gmra.mrb[24].mxu0 %vm366_vm3, %v3241_v37 }
0x21f0   :  { %5197 = vmatpush3.bf16.msra.mxu0 %v6128_v28  ;;  %4911 = vmatprep.mubr.msk.f32.mxu0 %vm5564_vm2, %v5562_v9 }
0x21f1   :  { %5198 = vmatprep.subr.bf16.mxu0 %v5563_v45 }
0x21f4   :  { %5200 = vmatpush3.bf16.msra.mxu0 %v6139_v60 }
0x21f5   :  { %5207 = vmatprep.subr.bf16.mxu0 %v5563_v45 }
0x22bc   :  { %v3414_v41 = vpop.f32.mrb[34].mxu1 }
0x22bd   :  { %v3419_v39 = vrot.slane %v3414_v41, 2  ;;  %v4902_v38 = vpop.f32.mrb[35].mxu1 }
0x22bf   :  { %v3421_v35 = vadd.f32 %v3419_v39, %v6239_v22 }
0x22c1   :  { %v3422_v51 = vadd.f32 %v6250_v32, %v3421_v35 }
0x22c2   :  { %v3310_v49 = vpop.f32.mrb[24].mxu0 }
0x22c3   :  { %5456 = vtanh.f32 %v3422_v51  ;;  %v3314_v13 = vadd.f32 %v3310_v49, %v6243_v30  ;;  %v4891_v14 = vpop.f32.mrb[25].mxu0  ;;  %v4391_v25 = vmul.f32 -1.442695, %v3422_v51 }
0x22c5   :  { %v3315_v59 = vadd.f32 %v6236_v18, %v3314_v13 }
0x22c7   :  { %5458 = vtanh.f32 %v3315_v59  ;;  %v4389_v31 = vmul.f32 -1.442695, %v3315_v59 }
0x22c8   :  { %5460 = vpow2.f32 %v4391_v25 }
0x22c9   :  { %5462 = vpow2.f32 %v4389_v31 }
0x22cd   :  { %v5457_v20 = vpop.eup %5456 }
0x22ce   :  { %3435 = vrot.lane.b32.xlu1 %v5457_v20, %s5565_s27 }
0x22d1   :  { %v5459_v23 = vpop.eup %5458 }
0x22d2   :  { %3328 = vrot.lane.b32.xlu0 %v5459_v23, %s5565_s27  ;;  %v5461_v15 = vpop.eup %5460 }
0x22d3   :  { %v3426_v16 = vadd.f32 1.0, %v5461_v15  ;;  %v5463_v33 = vpop.eup %5462 }
0x22d4   :  { %v3319_v24 = vadd.f32 1.0, %v5463_v33 }
0x22d5   :  { %5464 = vrcp.f32 %v3426_v16 }
0x22d6   :  { %5466 = vrcp.f32 %v3319_v24 }
0x22df   :  { %v5465_v17 = vpop.eup %5464 }
0x22e0   :  { %v5467_v26 = vpop.eup %5466  ;;  %v3433_v53 = vmul.f32 %v5465_v17, %v3431_v21 }
0x22e1   :  { %v3326_v1 = vmul.f32 %v5467_v26, %v3324_v63 }
0x2340   :  { %v3436_v34 = vpop.permute.xlu1 %3435 }
0x2341   :  { %v3438_v36 = vmul.f32 %v5465_v17, %v3436_v34 }
0x2343   :  { %3440 = vrot.lane.b32.xlu1 %v3438_v36, %s5567_s17 }
0x2344   :  { %v3329_v44 = vpop.permute.xlu0 %3328 }
0x2345   :  { %v3331_v40 = vmul.f32 %v5467_v26, %v3329_v44 }
0x2347   :  { %3333 = vrot.lane.b32.xlu0 %v3331_v40, %s5567_s17 }
0x23b5   :  { %v3441_v47 = vpop.permute.xlu1 %3440 }
0x23b6   :  { %v6449_v52 = vadd.f32 %v3441_v47, %v3433_v53 }
0x23b8   :  { %5468 = vtanh.f32 %v6449_v52  ;;  %v3453_v53 = vmul.f32 %v6449_v52, %v6283_v6 }
0x23b9   :  { %v3334_v54 = vpop.permute.xlu0 %3333 }
0x23ba   :  { %v6452_v62 = vadd.f32 %v3334_v54, %v3326_v1  ;;  %v3654_v63 = vrot.slane %v3453_v53, 2 }
0x23bc   :  { %5470 = vtanh.f32 %v6452_v62  ;;  %v3451_v47 = vmul.f32 %v6452_v62, %v6277_v27 }
0x23be   :  { %v3546_v54 = vrot.slane %v3451_v47, 6 }
0x23c2   :  { %v5469_v2 = vpop.eup %5468 }
0x23c3   :  { %3446 = vrot.lane.b32.xlu1 %v5469_v2, %s5565_s27 }
0x23c6   :  { %v5471_v50 = vpop.eup %5470 }
0x23c7   :  { %3339 = vrot.lane.b32.xlu0 %v5471_v50, %s5565_s27 }
0x2435   :  { %v3447_v58 = vpop.permute.xlu1 %3446 }
0x2436   :  { %v3449_v0 = vmul.f32 %v5465_v17, %v3447_v58 }
0x2438   :  { %v6458_v4 = vmul.f32 %v3449_v0, %v6283_v6 }
0x2439   :  { %v3340_v11 = vpop.permute.xlu0 %3339 }
0x243a   :  { %v3566_v19 = vrot.slane %v6458_v4, 6  ;;  %v3342_v12 = vmul.f32 %v5467_v26, %v3340_v11 }
0x243c   :  { %3567 = vrot.lane.b32.xlu1 %v3566_v19, %s5567_s17  ;;  %v6463_v37 = vmul.f32 %v3342_v12, %v6277_v27 }
0x243e   :  { %3459 = vrot.lane.b32.xlu0 %v6463_v37, %s5567_s17 }
0x24ae   :  { %v3568_v41 = vpop.permute.xlu1 %3567 }
0x24af   :  { %4923 = vmatmul.mubr.msk.f32.vlgmr.msra.gmra.mrb[36].mxu1 %vm366_vm3, %v3568_v41 }
0x24b0   :  { %5215 = vmatpush3.bf16.msra.mxu1 %v6155_v43  ;;  %4944 = vmatprep.mubr.msk.f32.mxu1 %vm5564_vm2, %v5562_v9  ;;  %v3460_v39 = vpop.permute.xlu0 %3459 }
0x24b1   :  { %5216 = vmatprep.subr.bf16.mxu1 %v5563_v45  ;;  %4912 = vmatmul.mubr.msk.f32.vlgmr.msra.gmra.mrb[26].mxu0 %vm366_vm3, %v3460_v39 }
0x24b2   :  { %5209 = vmatpush3.bf16.msra.mxu0 %v6128_v28  ;;  %4933 = vmatprep.mubr.msk.f32.mxu0 %vm5564_vm2, %v5562_v9 }
0x24b3   :  { %5210 = vmatprep.subr.bf16.mxu0 %v5563_v45 }
0x24b4   :  { %5218 = vmatpush3.bf16.msra.mxu1 %v6162_v48 }
0x24b5   :  { %5225 = vmatprep.subr.bf16.mxu1 %v5563_v45 }
0x24b6   :  { %5212 = vmatpush3.bf16.msra.mxu0 %v6139_v60 }
0x24b7   :  { %5219 = vmatprep.subr.bf16.mxu0 %v5563_v45 }
0x2582   :  { %v3637_v38 = vpop.f32.mrb[36].mxu1 }
0x2583   :  { %v3642_v35 = vrot.slane %v3637_v38, 4  ;;  %v4924_v51 = vpop.f32.mrb[37].mxu1 }
0x2584   :  { %v3529_v13 = vpop.f32.mrb[26].mxu0 }
0x2585   :  { %v3644_v49 = vadd.f32 %v3642_v35, %v6239_v22  ;;  %v3534_v14 = vrot.slane %v3529_v13, 6  ;;  %v4913_v59 = vpop.f32.mrb[27].mxu0 }
0x2587   :  { %v3645_v20 = vadd.f32 %v6250_v32, %v3644_v49  ;;  %v3536_v23 = vadd.f32 %v3534_v14, %v6243_v30 }
0x2589   :  { %5472 = vtanh.f32 %v3645_v20  ;;  %v3537_v25 = vadd.f32 %v6236_v18, %v3536_v23  ;;  %v4395_v16 = vmul.f32 -1.442695, %v3645_v20 }
0x258b   :  { %5474 = vtanh.f32 %v3537_v25  ;;  %v4393_v33 = vmul.f32 -1.442695, %v3537_v25 }
0x258c   :  { %5476 = vpow2.f32 %v4395_v16 }
0x258d   :  { %5478 = vpow2.f32 %v4393_v33 }
0x2593   :  { %v5473_v31 = vpop.eup %5472 }
0x2594   :  { %3658 = vrot.lane.b32.xlu1 %v5473_v31, %s5565_s27 }
0x2595   :  { %v5475_v15 = vpop.eup %5474 }
0x2596   :  { %3550 = vrot.lane.b32.xlu0 %v5475_v15, %s5565_s27  ;;  %v5477_v24 = vpop.eup %5476 }
0x2597   :  { %v5479_v17 = vpop.eup %5478  ;;  %v3649_v34 = vadd.f32 1.0, %v5477_v24 }
0x2598   :  { %v3541_v36 = vadd.f32 1.0, %v5479_v17 }
0x2599   :  { %5480 = vrcp.f32 %v3649_v34 }
0x259a   :  { %5482 = vrcp.f32 %v3541_v36 }
0x25a3   :  { %v5481_v26 = vpop.eup %5480 }
0x25a4   :  { %v5483_v42 = vpop.eup %5482  ;;  %v3656_v1 = vmul.f32 %v5481_v26, %v3654_v63 }
0x25a5   :  { %v3548_v58 = vmul.f32 %v5483_v42, %v3546_v54 }
0x2606   :  { %v3659_v44 = vpop.permute.xlu1 %3658 }
0x2607   :  { %v3661_v40 = vmul.f32 %v5481_v26, %v3659_v44 }
0x2608   :  { %v3551_v21 = vpop.permute.xlu0 %3550 }
0x2609   :  { %3663 = vrot.lane.b32.xlu1 %v3661_v40, %s5567_s17  ;;  %v3553_v46 = vmul.f32 %v5483_v42, %v3551_v21 }
0x260b   :  { %3555 = vrot.lane.b32.xlu0 %v3553_v46, %s5567_s17 }
0x267b   :  { %v3664_v2 = vpop.permute.xlu1 %3663 }
0x267c   :  { %v6493_v50 = vadd.f32 %v3664_v2, %v3656_v1 }
0x267d   :  { %v3556_v0 = vpop.permute.xlu0 %3555 }
0x267e   :  { %5484 = vtanh.f32 %v6493_v50  ;;  %v6496_v19 = vadd.f32 %v3556_v0, %v3548_v58  ;;  %v3676_v47 = vmul.f32 %v6493_v50, %v6283_v6 }
0x2680   :  { %5486 = vtanh.f32 %v6496_v19  ;;  %v3674_v63 = vmul.f32 %v6496_v19, %v6277_v27  ;;  %v3884_v1 = vrot.slane %v3676_v47, 2 }
0x2682   :  { %v3776_v2 = vrot.slane %v3674_v63, 6 }
0x2688   :  { %v5485_v11 = vpop.eup %5484 }
0x2689   :  { %3669 = vrot.lane.b32.xlu1 %v5485_v11, %s5565_s27 }
0x268a   :  { %v5487_v52 = vpop.eup %5486 }
0x268b   :  { %3561 = vrot.lane.b32.xlu0 %v5487_v52, %s5565_s27 }
0x26fb   :  { %v3670_v62 = vpop.permute.xlu1 %3669 }
0x26fc   :  { %v3672_v12 = vmul.f32 %v5481_v26, %v3670_v62 }
0x26fd   :  { %v3562_v39 = vpop.permute.xlu0 %3561 }
0x26fe   :  { %v6502_v41 = vmul.f32 %v3672_v12, %v6283_v6  ;;  %v3564_v38 = vmul.f32 %v5483_v42, %v3562_v39 }
0x2700   :  { %v3796_v35 = vrot.slane %v6502_v41, 4  ;;  %v6506_v51 = vmul.f32 %v3564_v38, %v6277_v27 }
0x2702   :  { %3797 = vrot.lane.b32.xlu1 %v3796_v35, %s5567_s17  ;;  %v3688_v49 = vrot.slane %v6506_v51, 2 }
0x2704   :  { %3689 = vrot.lane.b32.xlu0 %v3688_v49, %s5567_s17 }
0x2774   :  { %v3798_v13 = vpop.permute.xlu1 %3797 }
0x2775   :  { %4945 = vmatmul.mubr.msk.f32.vlgmr.msra.gmra.mrb[38].mxu1 %vm366_vm3, %v3798_v13 }
0x2776   :  { %5227 = vmatpush3.bf16.msra.mxu1 %v6155_v43  ;;  %4966 = vmatprep.mubr.msk.f32.mxu1 %vm5564_vm2, %v5562_v9  ;;  %v3690_v14 = vpop.permute.xlu0 %3689 }
0x2777   :  { %5228 = vmatprep.subr.bf16.mxu1 %v5563_v45  ;;  %4934 = vmatmul.mubr.msk.f32.vlgmr.msra.gmra.mrb[28].mxu0 %vm366_vm3, %v3690_v14 }
0x2778   :  { %5221 = vmatpush3.bf16.msra.mxu0 %v6128_v28  ;;  %4955 = vmatprep.mubr.msk.f32.mxu0 %vm5564_vm2, %v5562_v9 }
0x2779   :  { %5222 = vmatprep.subr.bf16.mxu0 %v5563_v45 }
0x277a   :  { %5230 = vmatpush3.bf16.msra.mxu1 %v6162_v48 }
0x277c   :  { %5224 = vmatpush3.bf16.msra.mxu0 %v6139_v60 }
0x277d   :  { %5231 = vmatprep.subr.bf16.mxu0 %v5563_v45 }
0x2848   :  { %v3867_v43 = vpop.f32.mrb[38].mxu1 }
0x2849   :  { %v3872_v59 = vrot.slane %v3867_v43, 6  ;;  %v4946_v20 = vpop.f32.mrb[39].mxu1 }
0x284a   :  { %v3759_v25 = vpop.f32.mrb[28].mxu0 }
0x284b   :  { %v3874_v23 = vadd.f32 %v3872_v59, %v6239_v22  ;;  %v3764_v31 = vrot.slane %v3759_v25, 4  ;;  %v4935_v15 = vpop.f32.mrb[29].mxu0 }
0x284d   :  { %v3875_v28 = vadd.f32 %v6250_v32, %v3874_v23  ;;  %v3766_v16 = vadd.f32 %v3764_v31, %v6243_v30 }
0x284f   :  { %5488 = vtanh.f32 %v3875_v28  ;;  %v3767_v48 = vadd.f32 %v6236_v18, %v3766_v16  ;;  %v4399_v24 = vmul.f32 -1.442695, %v3875_v28 }
0x2851   :  { %5490 = vtanh.f32 %v3767_v48  ;;  %v4397_v17 = vmul.f32 -1.442695, %v3767_v48 }
0x2852   :  { %5492 = vpow2.f32 %v4399_v24 }
0x2853   :  { %5494 = vpow2.f32 %v4397_v17 }
0x2859   :  { %v5489_v33 = vpop.eup %5488 }
0x285a   :  { %3888 = vrot.lane.b32.xlu1 %v5489_v33, %s5565_s27 }
0x285b   :  { %v5491_v60 = vpop.eup %5490 }
0x285c   :  { %3780 = vrot.lane.b32.xlu0 %v5491_v60, %s5565_s27  ;;  %v5493_v34 = vpop.eup %5492  ;;  %v5522_v60 = vld [vmem:[%s6659_s12] ss:$0 sm:$0xff] }
0x285d   :  { %v5495_v36 = vpop.eup %5494  ;;  %v3879_v26 = vadd.f32 1.0, %v5493_v34 }
0x285e   :  { %v3771_v44 = vadd.f32 1.0, %v5495_v36 }
0x285f   :  { %5496 = vrcp.f32 %v3879_v26 }
0x2860   :  { %5498 = vrcp.f32 %v3771_v44 }
0x2869   :  { %v5497_v40 = vpop.eup %5496 }
0x286a   :  { %v5499_v21 = vpop.eup %5498  ;;  %v3886_v54 = vmul.f32 %v5497_v40, %v3884_v1 }
0x286b   :  { %v3778_v11 = vmul.f32 %v5499_v21, %v3776_v2 }
0x28cc   :  { %v3889_v42 = vpop.permute.xlu1 %3888 }
0x28cd   :  { %v3891_v18 = vmul.f32 %v5497_v40, %v3889_v42 }
0x28ce   :  { %v3781_v46 = vpop.permute.xlu0 %3780 }
0x28cf   :  { %3893 = vrot.lane.b32.xlu1 %v3891_v18, %s5567_s17  ;;  %v3783_v53 = vmul.f32 %v5499_v21, %v3781_v46 }
0x28d1   :  { %3785 = vrot.lane.b32.xlu0 %v3783_v53, %s5567_s17  ;;  %v4374_v53 = vadd.f32 -1.0, %v6266_v55 }
0x2941   :  { %v3894_v58 = vpop.permute.xlu1 %3893 }
0x2942   :  { %v6536_v0 = vadd.f32 %v3894_v58, %v3886_v54  ;;  %v2537_v54 = vmul.f32 1000000.0, %v4374_v53 }
0x2943   :  { %v3786_v52 = vpop.permute.xlu0 %3785 }
0x2944   :  { %5500 = vtanh.f32 %v6536_v0  ;;  %v6539_v62 = vadd.f32 %v3786_v52, %v3778_v11 }
0x2946   :  { %5502 = vtanh.f32 %v6539_v62  ;;  %v3904_v58 = vmul.f32 %v6539_v62, %v6277_v27  ;;  %v4147_v62 = vld [vmem:[%s6662_s15 + $0x28] sm:$0xff] }
0x294e   :  { %v5501_v12 = vpop.eup %5500 }
0x294f   :  { %3899 = vrot.lane.b32.xlu1 %v5501_v12, %s5565_s27  ;;  %v4006_v12 = vrot.slane %v3904_v58, 6 }
0x2950   :  { %v5503_v50 = vpop.eup %5502 }
0x2951   :  { %3791 = vrot.lane.b32.xlu0 %v5503_v50, %s5565_s27 }
0x29c1   :  { %v3900_v19 = vpop.permute.xlu1 %3899 }
0x29c2   :  { %v3902_v39 = vmul.f32 %v5497_v40, %v3900_v19  ;;  %v4375_v40 = vadd.f32 -1.0, %v6260_v61  ;;  %v3906_v61 = vmul.f32 %v6536_v0, %v6283_v6  ;;  %v4146_v0 = vld [vmem:[%s6662_s15 + $0x20] sm:$0xff] }
0x29c3   :  { %v3792_v35 = vpop.permute.xlu0 %3791 }
0x29c4   :  { %v6545_v38 = vmul.f32 %v3902_v39, %v6283_v6  ;;  %v3794_v49 = vmul.f32 %v5499_v21, %v3792_v35  ;;  %v2545_v46 = vmul.f32 1000000.0, %v4375_v40  ;;  %v4111_v2 = vrot.slane %v3906_v61, 2 }
0x29c6   :  { %v4026_v13 = vrot.slane %v6545_v38, 2  ;;  %v6549_v14 = vmul.f32 %v3794_v49, %v6277_v27  ;;  %v5232_v49 = vpack.c.bf16 %v4147_v62, %v4146_v0  ;;  %v4145_v0 = vld [vmem:[%s6662_s15 + $0x18] sm:$0xff] }
0x29c8   :  { %4027 = vrot.lane.b32.xlu1 %v4026_v13, %s5567_s17  ;;  %v3918_v43 = vrot.slane %v6549_v14, 4  ;;  %v4148_v13 = vld [vmem:[%s6662_s15 + $0x30] sm:$0xff] }
0x29ca   :  { %3919 = vrot.lane.b32.xlu0 %v3918_v43, %s5567_s17  ;;  %v4149_v43 = vld [vmem:[%s6662_s15 + $0x38] sm:$0xff] }
0x2a3a   :  { %v4028_v59 = vpop.permute.xlu1 %4027 }
0x2a3b   :  { %4967 = vmatmul.mubr.msk.f32.vlgmr.msra.gmra.mrb[40].mxu1 %vm366_vm3, %v4028_v59 }
0x2a3c   :  { %v3920_v20 = vpop.permute.xlu0 %3919 }
0x2a3d   :  { %4956 = vmatmul.mubr.msk.f32.vlgmr.msra.gmra.mrb[30].mxu0 %vm366_vm3, %v3920_v20  ;;  %v5235_v20 = vpack.c.bf16 %v4149_v43, %v4148_v13 }
0x2a3e   :  { %4977 = vmatprep.mubr.msk.f32.mxu0 %vm5564_vm2, %v5562_v9  ;;  %5233 = vmatpush3.bf16.msra.mxu0 %v5232_v49 }
0x2a3f   :  { %5234 = vmatprep.subr.bf16.mxu0 %v5563_v45 }
0x2a42   :  { %5236 = vmatpush3.bf16.msra.mxu0 %v5235_v20 }
0x2a43   :  { %5237 = vmatprep.subr.bf16.mxu0 %v5563_v45 }
0x2b0e   :  { %v4097_v23 = vpop.f32.mrb[40].mxu1 }
0x2b0f   :  { %v4101_v25 = vadd.f32 %v4097_v23, %v6239_v22  ;;  %v4968_v31 = vpop.f32.mrb[41].mxu1 }
0x2b10   :  { %v3989_v28 = vpop.f32.mrb[30].mxu0 }
0x2b11   :  { %v4102_v15 = vadd.f32 %v6250_v32, %v4101_v25  ;;  %v3994_v16 = vrot.slane %v3989_v28, 2  ;;  %v4957_v48 = vpop.f32.mrb[31].mxu0 }
0x2b13   :  { %5504 = vtanh.f32 %v4102_v15  ;;  %v3996_v33 = vadd.f32 %v3994_v16, %v6243_v30  ;;  %v4403_v22 = vmul.f32 -1.442695, %v4102_v15 }
0x2b15   :  { %v3997_v24 = vadd.f32 %v5522_v60, %v3996_v33 }
0x2b17   :  { %5506 = vtanh.f32 %v3997_v24  ;;  %v4401_v32 = vmul.f32 -1.442695, %v3997_v24 }
0x2b18   :  { %5508 = vpow2.f32 %v4403_v22 }
0x2b19   :  { %5510 = vpow2.f32 %v4401_v32 }
0x2b1d   :  { %v5505_v17 = vpop.eup %5504 }
0x2b1e   :  { %4115 = vrot.lane.b32.xlu1 %v5505_v17, %s5565_s27 }
0x2b21   :  { %v5507_v34 = vpop.eup %5506 }
0x2b22   :  { %4010 = vrot.lane.b32.xlu0 %v5507_v34, %s5565_s27  ;;  %v5509_v36 = vpop.eup %5508 }
0x2b23   :  { %v4106_v26 = vadd.f32 1.0, %v5509_v36  ;;  %v5511_v44 = vpop.eup %5510 }
0x2b24   :  { %v4001_v30 = vadd.f32 1.0, %v5511_v44 }
0x2b25   :  { %5512 = vrcp.f32 %v4106_v26 }
0x2b26   :  { %5514 = vrcp.f32 %v4001_v30 }
0x2b2f   :  { %v6567_v42 = vpop.eup %5512 }
0x2b30   :  { %v6572_v47 = vpop.eup %5514  ;;  %v4113_v11 = vmul.f32 %v6567_v42, %v4111_v2 }
0x2b31   :  { %v4008_v50 = vmul.f32 %v6572_v47, %v4006_v12 }
0x2b90   :  { %v4116_v18 = vpop.permute.xlu1 %4115 }
0x2b91   :  { %v4118_v21 = vmul.f32 %v6567_v42, %v4116_v18 }
0x2b93   :  { %4120 = vrot.lane.b32.xlu1 %v4118_v21, %s5567_s17 }
0x2b94   :  { %v4011_v63 = vpop.permute.xlu0 %4010 }
0x2b95   :  { %v4013_v1 = vmul.f32 %v6572_v47, %v4011_v63 }
0x2b97   :  { %2548 = vperm.xlu1 %5262, %v2545_v46   ;;  %4015 = vrot.lane.b32.xlu0 %v4013_v1, %s5567_s17 }
0x2b9b   :  { %2540 = vperm.xlu0 %5263, %v2537_v54  }
0x2c05   :  { %v4121_v55 = vpop.permute.xlu1 %4120 }
0x2c06   :  { %v4123_v52 = vadd.f32 %v4121_v55, %v4113_v11 }
0x2c08   :  { %5516 = vtanh.f32 %v4123_v52 }
0x2c09   :  { %v4016_v19 = vpop.permute.xlu0 %4015 }
0x2c0a   :  { %v4018_v39 = vadd.f32 %v4016_v19, %v4008_v50 }
0x2c0c   :  { %5518 = vtanh.f32 %v4018_v39 }
0x2c12   :  { %v5517_v35 = vpop.eup %5516 }
0x2c13   :  { %4126 = vrot.lane.b32.xlu1 %v5517_v35, %s5565_s27  ;;  %v4144_v35 = vld [vmem:[%s6662_s15 + $0x10] sm:$0xff] }
0x2c14   :  { %v5241_v49 = vpack.c.bf16 %v4145_v0, %v4144_v35 }
0x2c16   :  { %v5519_v59 = vpop.eup %5518  ;;  %v2549_v23 = vpop.permute.xlu1 %2548 }
0x2c17   :  { %4021 = vrot.lane.b32.xlu1 %v5519_v59, %s5565_s27  ;;  %v2776_v25 = vadd.f32 %v6326_v3, %v2549_v23  ;;  %v2551_v16 = vadd.f32 %v2549_v23, %v6280_v5  ;;  %v3006_v48 = vadd.f32 %v6370_v7, %v2549_v23  ;;  %v3233_v17 = vadd.f32 %v6414_v56, %v2549_v23 }
0x2c18   :  { %v3454_v53 = vadd.f32 %v6463_v37, %v2549_v23  ;;  %v3677_v63 = vadd.f32 %v6506_v51, %v2549_v23  ;;  %v3907_v58 = vadd.f32 %v6549_v14, %v2549_v23  ;;  %v4142_v14 = vld [vmem:[%s6662_s15] sm:$0xff] }
0x2c19   :  { %v2778_v15 = vrot.slane %v2776_v25, 6  ;;  %v3008_v24 = vrot.slane %v3006_v48, 4  ;;  %v3235_v3 = vrot.slane %v3233_v17, 2 }
0x2c1a   :  { %v2541_v31 = vpop.permute.xlu0 %2540  ;;  %v3679_v2 = vrot.slane %v3677_v63, 2  ;;  %v3909_v12 = vrot.slane %v3907_v58, 4 }
0x2c1b   :  { %v2771_v28 = vadd.f32 %v6330_v29, %v2541_v31  ;;  %v2780_v33 = vmax.f32 %v2551_v16, %v2778_v15  ;;  %v2543_v34 = vadd.f32 %v2541_v31, %v6286_v8  ;;  %v3001_v22 = vadd.f32 %v6374_v10, %v2541_v31 }
0x2c1c   :  { %v3228_v44 = vadd.f32 %v6419_v57, %v2541_v31  ;;  %v3456_v5 = vadd.f32 %v6458_v4, %v2541_v31  ;;  %v3682_v7 = vadd.f32 %v6502_v41, %v2541_v31  ;;  %v3912_v8 = vadd.f32 %v6545_v38, %v2541_v31 }
0x2c1d   :  { %v2773_v60 = vrot.slane %v2771_v28, 2  ;;  %v3010_v32 = vmax.f32 %v2780_v33, %v3008_v24  ;;  %v3003_v26 = vrot.slane %v3001_v22, 4 }
0x2c1e   :  { %v3230_v40 = vrot.slane %v3228_v44, 6  ;;  %v3684_v46 = vrot.slane %v3682_v7, 6  ;;  %v3914_v4 = vrot.slane %v3912_v8, 4 }
0x2c1f   :  { %v2775_v36 = vmax.f32 %v2543_v34, %v2773_v60  ;;  %v3237_v29 = vmax.f32 %v3010_v32, %v3235_v3 }
0x2c21   :  { %v3005_v30 = vmax.f32 %v2775_v36, %v3003_v26  ;;  %v3457_v18 = vmax.f32 %v3237_v29, %v3456_v5 }
0x2c23   :  { %v3232_v56 = vmax.f32 %v3005_v30, %v3230_v40  ;;  %v3686_v57 = vmax.f32 %v3457_v18, %v3684_v46 }
0x2c25   :  { %v3455_v54 = vmax.f32 %v3232_v56, %v3454_v53  ;;  %v3916_v55 = vmax.f32 %v3686_v57, %v3914_v4 }
0x2c27   :  { %v3681_v52 = vmax.f32 %v3455_v54, %v3679_v2 }
0x2c29   :  { %v3911_v19 = vmax.f32 %v3681_v52, %v3909_v12 }
0x2c85   :  { %v4127_v21 = vpop.permute.xlu1 %4126 }
0x2c86   :  { %v4129_v10 = vmul.f32 %v6567_v42, %v4127_v21 }
0x2c88   :  { %v4131_v1 = vmul.f32 %v4129_v10, %v6283_v6 }
0x2c89   :  { %v4022_v41 = vpop.permute.xlu1 %4021 }
0x2c8a   :  { %v4137_v61 = vadd.f32 %v4131_v1, %v2541_v31  ;;  %v4024_v11 = vmul.f32 %v6572_v47, %v4022_v41  ;;  %v4143_v47 = vld [vmem:[%s6662_s15 + $0x8] sm:$0xff] }
0x2c8c   :  { %v4139_v38 = vrot.slane %v4137_v61, 2  ;;  %v4130_v42 = vmul.f32 %v4024_v11, %v6277_v27  ;;  %v5238_v27 = vpack.c.bf16 %v4143_v47, %v4142_v14 }
0x2c8e   :  { %v4141_v37 = vmax.f32 %v3916_v55, %v4139_v38  ;;  %v4132_v51 = vadd.f32 %v4130_v42, %v2549_v23 }
0x2c90   :  { %v4151_v50 = vrot.slane %v4141_v37, 6  ;;  %v4134_v6 = vrot.slane %v4132_v51, 6 }
0x2c92   :  { %4152 = vrot.lane.b32.xlu0 %v4151_v50, %s5567_s17  ;;  %v4136_v39 = vmax.f32 %v3911_v19, %v4134_v6 }
0x2c94   :  { %4227 = vrot.lane.b32.xlu1 %v4136_v39, %s5567_s17  ;;  %s5569_s17 = smov [#allocation5]  }
0x2c95   :  { %s4309_s22 = sshll.u32 %s5569_s17, 4  ;;  %s4310_s22 = int_to_ptr.vmem [resolvable:$true] %s4309_s22 }
0x2c96   :  { %s5535_s15 = scalar_lea.vmem %s4310_s22, 32  ;;  %p5540_p6 = scmp.lt.s32.totalorder %s4310_s22, %s4310_s22 }
0x2c97   :  { %p5536_p5 = scmp.ne.s32.totalorder %s4310_s22, %s5535_s15  ;;  %p5541_p7 = scmp.lt.s32.totalorder %s5535_s15, %s5535_s15 }
0x2c99   :  { %p5542_p8 = por %p5541_p7, %p5540_p6 }
0x2c9b   :  { %p5543_p9 = pnand %p5542_p8, %p5536_p5 }
0x2d04   :  { %v4153_v62 = vpop.permute.xlu0 %4152 }
0x2d05   :  { %4978 = vmatmul.mubr.msk.f32.vlgmr.msra.gmra.mrb[32].mxu0 %vm366_vm3, %v4153_v62 }
0x2d06   :  { %5239 = vmatpush3.bf16.msra.mxu0 %v5238_v27  ;;  %4988 = vmatprep.mubr.msk.f32.mxu0 %vm5564_vm2, %v5562_v9  ;;  %v4228_v13 = vpop.permute.xlu1 %4227 }
0x2d07   :  { %5240 = vmatprep.subr.bf16.mxu0 %v5563_v45 }
0x2d0a   :  { %5242 = vmatpush3.bf16.msra.mxu0 %v5241_v49 }
0x2d0d   :  { %4989 = vmatmul.mubr.msk.f32.vlgmr.msra.gmra.mrb[32].mxu0 %vm366_vm3, %v4228_v13 }
0x2de0   :  { %v4297_v43 = vpop.f32.mrb[32].mxu0 }
0x2de1   :  { %v4990_v59 = vpop.f32.mrb[33].mxu0  ;;  %4302 = vst.msk [vmem:[#allocation5] sm:$0x3] %vm4301_vm7, %v4297_v43 }
0x2de2   :  { %5546 = shalt.err (!%p5543_p9)
}
0x2de3   :  { %s5547_s23 = scalar_lea.hbm %s6663_s16, 32 }
0x2de4   :  { %p5548_p10 = scmp.ne.s32.totalorder %s6663_s16, %s5547_s23  ;;  %p5551_p11 = scmp.lt.u32.totalorder %s5547_s23, %s6663_s16 }
0x2de6   :  { %p5553_p12 = pnand %p5551_p11, %p5548_p10 }
0x2de8   :  { %5556 = shalt.err (!%p5553_p12)
}
0x2de9   :  { %4312 = dma.vmem_to_hbm [thread:$0]  %s4310_s22, 32, %s6663_s16, [#allocation3]  }
0x2dea   :  { %5559 = dma.done.wait [#allocation3], 32  }
0x2deb   :  { %5560 = vsyncadd [#allocation3], 4294967264 }
0x2dec   :  { %4316 = vsyncpa [#allocation3], 1 }
0x2ded   :  { %4317 = vsyncpa [#allocation4], 1 }

</bundles_post_ra>
